<compile_context>
chip_gen: v7x
topology: tpu7x:2x2x1
jax: 0.10.0
libtpu: 0.0.40
codegen_flags: <defaults>
</compile_context>

<pallas_src>
import jax
import jax.numpy as jnp
from jax import lax
from jax.experimental import pallas as pl
from jax.experimental.pallas import tpu as pltpu


# ----------------------------------------------------------------------------------
# Fused BaseBlock kernel (one grid step = one batch element x one tile of output rows)
# ----------------------------------------------------------------------------------
def _make_fused_kernel(H, W, th_out, th_exp, w_out, stride, cin, cexp, cout,
                       shortcut, mm_dtype):
    wp = W + 2
    if shortcut:
        assert stride == 1 and cin == cout

    def kernel(x_ref, w1_ref, b1_ref, w2_ref, b2_ref, w3_ref, b3_ref, o_ref):
        # x_ref : (H+2, W+2, cin)  zero-padded input, resident across row tiles
        # w1_ref: (cin, cexp)  BN1-scale-folded expand weight   (mm_dtype)
        # w2_ref: (9, cexp)    BN2-scale-folded depthwise taps  (f32)
        # w3_ref: (cexp, cout) BN3-scale-folded project weight  (mm_dtype)
        # b*_ref: folded BN biases (f32)
        # o_ref : (th_out, w_out, cout)
        ht = pl.program_id(1)
        row_step = stride * th_out
        j0 = ht * row_step                      # first padded input row of this tile
        if row_step % 8 == 0:
            j0 = pl.multiple_of(j0, 8)

        # rows of the padded input needed for this output tile (incl. 1-row halo)
        xt = x_ref[pl.ds(j0, th_exp), :, :]                       # (th_exp, W+2, cin) f32

        # ---- stage 1: 1x1 expand (scale folded into weight) + bias + ReLU6 ----------
        xm = xt.reshape(th_exp * wp, cin).astype(mm_dtype)
        ea = jnp.dot(xm, w1_ref[...], preferred_element_type=jnp.float32)
        ea = jnp.clip(ea + b1_ref[...], 0.0, 6.0).reshape(th_exp, wp, cexp)

        # conv2's zero padding lives on the *expanded* activation: halo rows/cols must
        # be exactly 0 (not relu6(bias)), so mask them with an iota mask.
        rr = j0 + lax.broadcasted_iota(jnp.int32, (th_exp, wp), 0)
        cc = lax.broadcasted_iota(jnp.int32, (th_exp, wp), 1)
        valid = ((rr >= 1) & (rr <= H) & (cc >= 1) & (cc <= W)).astype(jnp.float32)
        ea = ea * valid[:, :, None]

        # ---- stage 2: 3x3 depthwise (scale folded) + bias + ReLU6, strided output ---
        w2 = w2_ref[...]                                          # (9, cexp) f32
        acc = jnp.zeros((th_out, w_out, cexp), jnp.float32)
        for dw in range(3):                      # 3 sublane shifts, hoisted out of dh
            cols = ea[:, dw:dw + stride * (w_out - 1) + 1:stride, :]
            for dh in range(3):                  # cheap outer-dim slices
                rows = cols[dh:dh + stride * (th_out - 1) + 1:stride]
                acc = acc + rows * w2[3 * dh + dw].reshape(1, 1, cexp)
        y = jnp.clip(acc + b2_ref[...].reshape(1, 1, cexp), 0.0, 6.0)

        # ---- stage 3: 1x1 project (scale folded) + bias (+ residual) ----------------
        ym = y.reshape(th_out * w_out, cexp).astype(mm_dtype)
        out = jnp.dot(ym, w3_ref[...], preferred_element_type=jnp.float32)
        out = out + b3_ref[...]
        if shortcut:  # stride == 1 and cin == cout
            res = xt[1:th_out + 1, 1:W + 1, :].reshape(th_out * w_out, cin)
            out = out + res
        o_ref[...] = out.reshape(th_out, w_out, cout).astype(o_ref.dtype)

    return kernel


def _pick_row_tile(h_out, w_pad, cexp, stride, budget_bytes=4 << 20):
    """Largest divisor of h_out whose in-kernel f32 intermediates fit the VMEM budget."""
    w_out = (w_pad - 3) // stride + 1
    divisors = [d for d in range(1, h_out + 1) if h_out % d == 0]
    fit = []
    for th in divisors:
        th_exp = stride * (th - 1) + 3
        ea_bytes = th_exp * w_pad * cexp * 4     # expanded activation
        acc_bytes = th * w_out * cexp * 4        # depthwise accumulator
        if 2 * ea_bytes + 2 * acc_bytes <= budget_bytes:
            fit.append(th)
    return max(fit) if fit else min(divisors)


# ----------------------------------------------------------------------------------
# BaseBlock forward (Pallas) + parameter setup + pure-JAX reference
# ----------------------------------------------------------------------------------
def base_block_forward_pallas(x_nchw, p, row_tile=None, use_bf16_matmul=True):
    # NCHW (PyTorch) -> NHWC for the TPU kernel
    x = jnp.transpose(x_nchw, (0, 2, 3, 1)).astype(jnp.float32)
    N, H, W, cin = x.shape
    stride = int(p["stride"])
    shortcut = bool(p["shortcut"])
    cexp = p["w1"].shape[1]
    cout = p["w3"].shape[1]
    h_out = (H - 1) // stride + 1
    w_out = (W - 1) // stride + 1
    hp, wp = H + 2, W + 2

    mm_dtype = jnp.bfloat16 if use_bf16_matmul else jnp.float32
    # fold BN scales into the conv weights (host-side, one-time)
    w1f = (p["w1"] * p["s1"][None, :]).astype(mm_dtype)                # (cin, cexp)
    w2f = (p["w2"].reshape(9, cexp) * p["s2"][None, :]).astype(jnp.float32)  # (9, cexp)
    w3f = (p["w3"] * p["s3"][None, :]).astype(mm_dtype)                # (cexp, cout)
    b1 = p["b1"].reshape(1, cexp).astype(jnp.float32)
    b2 = p["b2"].reshape(1, cexp).astype(jnp.float32)
    b3 = p["b3"].reshape(1, cout).astype(jnp.float32)

    # only the small (cin-wide) input is padded in the wrapper; the t*cin-wide expanded
    # activation is produced, zero-halo'd and consumed entirely inside the kernel.
    xp = jnp.pad(x, ((0, 0), (1, 1), (1, 1), (0, 0)))

    if row_tile is None:
        row_tile = _pick_row_tile(h_out, wp, cexp, stride)
    assert h_out % row_tile == 0, (h_out, row_tile)
    th_exp = stride * (row_tile - 1) + 3
    n_ht = h_out // row_tile

    kernel = _make_fused_kernel(H, W, row_tile, th_exp, w_out, stride,
                                cin, cexp, cout, shortcut, mm_dtype)

    out = pl.pallas_call(
        kernel,
        out_shape=jax.ShapeDtypeStruct((N, h_out, w_out, cout), jnp.float32),
        grid_spec=pltpu.PrefetchScalarGridSpec(
            num_scalar_prefetch=0,
            grid=(N, n_ht),
            in_specs=[
                # padded input: re-DMA'd only when the batch index changes
                pl.BlockSpec((None, hp, wp, cin), lambda n, t: (n, 0, 0, 0)),
                pl.BlockSpec((cin, cexp), lambda n, t: (0, 0)),
                pl.BlockSpec((1, cexp), lambda n, t: (0, 0)),
                pl.BlockSpec((9, cexp), lambda n, t: (0, 0)),
                pl.BlockSpec((1, cexp), lambda n, t: (0, 0)),
                pl.BlockSpec((cexp, cout), lambda n, t: (0, 0)),
                pl.BlockSpec((1, cout), lambda n, t: (0, 0)),
            ],
            out_specs=pl.BlockSpec((None, row_tile, w_out, cout),
                                   lambda n, t: (n, t, 0, 0)),
        ),
        compiler_params=pltpu.CompilerParams(
            dimension_semantics=("parallel", "parallel"),
            vmem_limit_bytes=32 * 1024 * 1024,
        ),
    )(xp, w1f, b1, w2f, b2, w3f, b3)

    return jnp.transpose(out, (0, 3, 1, 2))  # back to NCHW


def fold_bn(gamma, beta, mean, var, eps=1e-5):
    scale = gamma / jnp.sqrt(var + eps)
    bias = beta - mean * scale
    return scale, bias


def make_params(key, input_channel, output_channel, t=6, downsample=False):
    cin = input_channel
    cexp = t * input_channel
    cout = output_channel
    ks = jax.random.split(key, 15)

    def bn_params(k0, k1, k2, k3, c):
        gamma = jax.random.uniform(k0, (c,), jnp.float32, 0.5, 1.5)
        beta = 0.1 * jax.random.normal(k1, (c,), jnp.float32)
        mean = 0.1 * jax.random.normal(k2, (c,), jnp.float32)
        var = jax.random.uniform(k3, (c,), jnp.float32, 0.5, 1.5)
        return fold_bn(gamma, beta, mean, var)

    w1 = 0.1 * jax.random.normal(ks[0], (cin, cexp), jnp.float32)     # 1x1 expand
    w2 = 0.1 * jax.random.normal(ks[1], (3, 3, cexp), jnp.float32)    # 3x3 depthwise
    w3 = 0.1 * jax.random.normal(ks[2], (cexp, cout), jnp.float32)    # 1x1 project
    s1, b1 = bn_params(ks[3], ks[4], ks[5], ks[6], cexp)
    s2, b2 = bn_params(ks[7], ks[8], ks[9], ks[10], cexp)
    s3, b3 = bn_params(ks[11], ks[12], ks[13], ks[14], cout)
    stride = 2 if downsample else 1
    shortcut = (not downsample) and (cin == cout)
    return dict(w1=w1, w2=w2, w3=w3, s1=s1, b1=b1, s2=s2, b2=b2, s3=s3, b3=b3,
                stride=stride, shortcut=shortcut)


def base_block_forward_ref(x_nchw, p):
    x = jnp.transpose(x_nchw, (0, 2, 3, 1)).astype(jnp.float32)
    cexp = p["w1"].shape[1]
    y = jnp.einsum("nhwc,cd->nhwd", x, p["w1"])
    y = jnp.clip(y * p["s1"] + p["b1"], 0.0, 6.0)
    rhs = p["w2"].reshape(3, 3, 1, cexp)
    y = lax.conv_general_dilated(
        y, rhs, window_strides=(p["stride"], p["stride"]), padding=((1, 1), (1, 1)),
        dimension_numbers=("NHWC", "HWIO", "NHWC"), feature_group_count=cexp)
    y = jnp.clip(y * p["s2"] + p["b2"], 0.0, 6.0)
    y = jnp.einsum("nhwc,cd->nhwd", y, p["w3"])
    y = y * p["s3"] + p["b3"]
    if p["shortcut"]:
        y = y + x
    return jnp.transpose(y, (0, 3, 1, 2))


if __name__ == "__main__":
    key = jax.random.PRNGKey(0)
    kx, kp1, kp2 = jax.random.split(key, 3)

    N, C, H, W = 2, 4, 16, 16
    x = jax.random.normal(kx, (N, C, H, W), jnp.float32)   # NCHW like PyTorch

    # Case 1: BaseBlock(4, 4, t=6, downsample=False) -> residual shortcut active.
    # row_tile=8 forces 2 row tiles per image so the halo / tiling path is exercised.
    p1 = make_params(kp1, input_channel=C, output_channel=C, t=6, downsample=False)
    out1 = jax.block_until_ready(base_block_forward_pallas(x, p1, row_tile=8))
    ref1 = base_block_forward_ref(x, p1)
    assert out1.shape == (N, C, H, W), out1.shape
    err1 = float(jnp.max(jnp.abs(out1 - ref1)))
    assert jnp.allclose(out1, ref1, rtol=2e-2, atol=2e-2), err1

    # Case 2: BaseBlock(4, 8, t=6, downsample=False) -> no shortcut (cin != cout).
    p2 = make_params(kp2, input_channel=C, output_channel=2 * C, t=6, downsample=False)
    out2 = jax.block_until_ready(base_block_forward_pallas(x, p2))
    ref2 = base_block_forward_ref(x, p2)
    assert out2.shape == (N, 2 * C, H, W), out2.shape
    err2 = float(jnp.max(jnp.abs(out2 - ref2)))
    assert jnp.allclose(out2, ref2, rtol=2e-2, atol=2e-2), err2

    print("KERNEL_OK")
</pallas_src>

<mosaic_0001>
module attributes {stable_mosaic.version = 11 : i64} {
  func.func @kernel(%arg0: i32, %arg1: i32, %arg2: memref<1x18x18x4xf32, #tpu.memory_space<vmem>>, %arg3: memref<4x24xbf16, #tpu.memory_space<vmem>>, %arg4: memref<1x24xf32, #tpu.memory_space<vmem>>, %arg5: memref<9x24xf32, #tpu.memory_space<vmem>>, %arg6: memref<1x24xf32, #tpu.memory_space<vmem>>, %arg7: memref<24x4xbf16, #tpu.memory_space<vmem>>, %arg8: memref<1x4xf32, #tpu.memory_space<vmem>>, %arg9: memref<1x8x16x4xf32, #tpu.memory_space<vmem>>) attributes {dimension_semantics = [#tpu.dimension_semantics<parallel>, #tpu.dimension_semantics<parallel>], iteration_bounds = array<i64: 2, 2>, scalar_prefetch = 0 : i64, scratch_operands = 0 : i64, tpu.core_type = #tpu.core_type<tc>, window_params = [{transform_indices = @transform_0, window_bounds = array<i64: 1, 18, 18, 4>}, {pipeline_mode = #tpu.pipeline_mode<synchronous>, transform_indices = @transform_1, window_bounds = array<i64: 4, 24>}, {pipeline_mode = #tpu.pipeline_mode<synchronous>, transform_indices = @transform_2, window_bounds = array<i64: 1, 24>}, {pipeline_mode = #tpu.pipeline_mode<synchronous>, transform_indices = @transform_3, window_bounds = array<i64: 9, 24>}, {pipeline_mode = #tpu.pipeline_mode<synchronous>, transform_indices = @transform_4, window_bounds = array<i64: 1, 24>}, {pipeline_mode = #tpu.pipeline_mode<synchronous>, transform_indices = @transform_5, window_bounds = array<i64: 24, 4>}, {pipeline_mode = #tpu.pipeline_mode<synchronous>, transform_indices = @transform_6, window_bounds = array<i64: 1, 4>}, {transform_indices = @transform_7, window_bounds = array<i64: 1, 8, 16, 4>}]} {
    %c8_i32 = arith.constant 8 : i32
    %0 = arith.muli %arg1, %c8_i32 : i32
    %1 = tpu.assume_multiple %0, 8 : i32
    %c0 = arith.constant 0 : index
    %2 = arith.index_cast %1 : i32 to index
    %c0_0 = arith.constant 0 : index
    %c0_1 = arith.constant 0 : index
    %3 = vector.load %arg2[%c0, %2, %c0_0, %c0_1] : memref<1x18x18x4xf32, #tpu.memory_space<vmem>>, vector<1x10x18x4xf32>
    %4 = vector.shape_cast %3 : vector<1x10x18x4xf32> to vector<10x18x4xf32>
    %5 = vector.shape_cast %4 : vector<10x18x4xf32> to vector<180x4xf32>
    %6 = arith.truncf %5 : vector<180x4xf32> to vector<180x4xbf16>
    %c0_2 = arith.constant 0 : index
    %c0_3 = arith.constant 0 : index
    %7 = vector.load %arg3[%c0_2, %c0_3] : memref<4x24xbf16, #tpu.memory_space<vmem>>, vector<4x24xbf16>
    %cst = arith.constant dense<0.000000e+00> : vector<180x24xf32>
    %8 = tpu.matmul %6, %7, %cst {dimension_numbers = #tpu.dot_dimension_numbers<[1], [0], [0], [1], [0, 0, 1, 1], [], []>} : vector<180x4xbf16>, vector<4x24xbf16>, vector<180x24xf32> -> vector<180x24xf32>
    %c0_4 = arith.constant 0 : index
    %c0_5 = arith.constant 0 : index
    %9 = vector.load %arg4[%c0_4, %c0_5] : memref<1x24xf32, #tpu.memory_space<vmem>>, vector<1x24xf32>
    %10 = vector.broadcast %9 : vector<1x24xf32> to vector<180x24xf32>
    %11 = arith.addf %8, %10 : vector<180x24xf32>
    %cst_6 = arith.constant 0.000000e+00 : f32
    %cst_7 = arith.constant 6.000000e+00 : f32
    %12 = vector.broadcast %cst_6 : f32 to vector<180x24xf32>
    %13 = arith.maximumf %12, %11 : vector<180x24xf32>
    %14 = vector.broadcast %cst_7 : f32 to vector<180x24xf32>
    %15 = arith.minimumf %14, %13 : vector<180x24xf32>
    %16 = vector.shape_cast %15 : vector<180x24xf32> to vector<10x18x24xf32>
    %17 = tpu.iota {dimensions = array<i32: 0>} : vector<10x18xi32>
    %18 = vector.broadcast %1 : i32 to vector<10x18xi32>
    %19 = arith.addi %18, %17 : vector<10x18xi32>
    %20 = tpu.iota {dimensions = array<i32: 1>} : vector<10x18xi32>
    %c1_i32 = arith.constant 1 : i32
    %21 = vector.broadcast %c1_i32 : i32 to vector<10x18xi32>
    %22 = arith.cmpi sge, %19, %21 : vector<10x18xi32>
    %c16_i32 = arith.constant 16 : i32
    %23 = vector.broadcast %c16_i32 : i32 to vector<10x18xi32>
    %24 = arith.cmpi sle, %19, %23 : vector<10x18xi32>
    %25 = arith.andi %22, %24 : vector<10x18xi1>
    %c1_i32_8 = arith.constant 1 : i32
    %26 = vector.broadcast %c1_i32_8 : i32 to vector<10x18xi32>
    %27 = arith.cmpi sge, %20, %26 : vector<10x18xi32>
    %28 = arith.andi %25, %27 : vector<10x18xi1>
    %c16_i32_9 = arith.constant 16 : i32
    %29 = vector.broadcast %c16_i32_9 : i32 to vector<10x18xi32>
    %30 = arith.cmpi sle, %20, %29 : vector<10x18xi32>
    %31 = arith.andi %28, %30 : vector<10x18xi1>
    %32 = arith.extui %31 : vector<10x18xi1> to vector<10x18xi32>
    %33 = arith.sitofp %32 : vector<10x18xi32> to vector<10x18xf32>
    %34 = vector.shape_cast %33 : vector<10x18xf32> to vector<10x18x1xf32>
    %35 = vector.broadcast %34 : vector<10x18x1xf32> to vector<10x18x24xf32>
    %36 = arith.mulf %16, %35 : vector<10x18x24xf32>
    %c0_10 = arith.constant 0 : index
    %c0_11 = arith.constant 0 : index
    %37 = vector.load %arg5[%c0_10, %c0_11] : memref<9x24xf32, #tpu.memory_space<vmem>>, vector<9x24xf32>
    %cst_12 = arith.constant 0.000000e+00 : f32
    %38 = vector.broadcast %cst_12 : f32 to vector<8x16x24xf32>
    %39 = vector.extract_strided_slice %36 {offsets = [0, 0, 0], sizes = [10, 16, 24], strides = [1, 1, 1]} : vector<10x18x24xf32> to vector<10x16x24xf32>
    %40 = vector.extract_strided_slice %39 {offsets = [0, 0, 0], sizes = [8, 16, 24], strides = [1, 1, 1]} : vector<10x16x24xf32> to vector<8x16x24xf32>
    %41 = vector.extract_strided_slice %37 {offsets = [0, 0], sizes = [1, 24], strides = [1, 1]} : vector<9x24xf32> to vector<1x24xf32>
    %42 = vector.shape_cast %41 : vector<1x24xf32> to vector<24xf32>
    %43 = vector.shape_cast %42 : vector<24xf32> to vector<1x1x24xf32>
    %44 = vector.broadcast %43 : vector<1x1x24xf32> to vector<8x16x24xf32>
    %45 = arith.mulf %40, %44 : vector<8x16x24xf32>
    %46 = arith.addf %38, %45 : vector<8x16x24xf32>
    %47 = vector.extract_strided_slice %39 {offsets = [1, 0, 0], sizes = [8, 16, 24], strides = [1, 1, 1]} : vector<10x16x24xf32> to vector<8x16x24xf32>
    %48 = vector.extract_strided_slice %37 {offsets = [3, 0], sizes = [1, 24], strides = [1, 1]} : vector<9x24xf32> to vector<1x24xf32>
    %49 = vector.shape_cast %48 : vector<1x24xf32> to vector<24xf32>
    %50 = vector.shape_cast %49 : vector<24xf32> to vector<1x1x24xf32>
    %51 = vector.broadcast %50 : vector<1x1x24xf32> to vector<8x16x24xf32>
    %52 = arith.mulf %47, %51 : vector<8x16x24xf32>
    %53 = arith.addf %46, %52 : vector<8x16x24xf32>
    %54 = vector.extract_strided_slice %39 {offsets = [2, 0, 0], sizes = [8, 16, 24], strides = [1, 1, 1]} : vector<10x16x24xf32> to vector<8x16x24xf32>
    %55 = vector.extract_strided_slice %37 {offsets = [6, 0], sizes = [1, 24], strides = [1, 1]} : vector<9x24xf32> to vector<1x24xf32>
    %56 = vector.shape_cast %55 : vector<1x24xf32> to vector<24xf32>
    %57 = vector.shape_cast %56 : vector<24xf32> to vector<1x1x24xf32>
    %58 = vector.broadcast %57 : vector<1x1x24xf32> to vector<8x16x24xf32>
    %59 = arith.mulf %54, %58 : vector<8x16x24xf32>
    %60 = arith.addf %53, %59 : vector<8x16x24xf32>
    %61 = vector.extract_strided_slice %36 {offsets = [0, 1, 0], sizes = [10, 16, 24], strides = [1, 1, 1]} : vector<10x18x24xf32> to vector<10x16x24xf32>
    %62 = vector.extract_strided_slice %61 {offsets = [0, 0, 0], sizes = [8, 16, 24], strides = [1, 1, 1]} : vector<10x16x24xf32> to vector<8x16x24xf32>
    %63 = vector.extract_strided_slice %37 {offsets = [1, 0], sizes = [1, 24], strides = [1, 1]} : vector<9x24xf32> to vector<1x24xf32>
    %64 = vector.shape_cast %63 : vector<1x24xf32> to vector<24xf32>
    %65 = vector.shape_cast %64 : vector<24xf32> to vector<1x1x24xf32>
    %66 = vector.broadcast %65 : vector<1x1x24xf32> to vector<8x16x24xf32>
    %67 = arith.mulf %62, %66 : vector<8x16x24xf32>
    %68 = arith.addf %60, %67 : vector<8x16x24xf32>
    %69 = vector.extract_strided_slice %61 {offsets = [1, 0, 0], sizes = [8, 16, 24], strides = [1, 1, 1]} : vector<10x16x24xf32> to vector<8x16x24xf32>
    %70 = vector.extract_strided_slice %37 {offsets = [4, 0], sizes = [1, 24], strides = [1, 1]} : vector<9x24xf32> to vector<1x24xf32>
    %71 = vector.shape_cast %70 : vector<1x24xf32> to vector<24xf32>
    %72 = vector.shape_cast %71 : vector<24xf32> to vector<1x1x24xf32>
    %73 = vector.broadcast %72 : vector<1x1x24xf32> to vector<8x16x24xf32>
    %74 = arith.mulf %69, %73 : vector<8x16x24xf32>
    %75 = arith.addf %68, %74 : vector<8x16x24xf32>
    %76 = vector.extract_strided_slice %61 {offsets = [2, 0, 0], sizes = [8, 16, 24], strides = [1, 1, 1]} : vector<10x16x24xf32> to vector<8x16x24xf32>
    %77 = vector.extract_strided_slice %37 {offsets = [7, 0], sizes = [1, 24], strides = [1, 1]} : vector<9x24xf32> to vector<1x24xf32>
    %78 = vector.shape_cast %77 : vector<1x24xf32> to vector<24xf32>
    %79 = vector.shape_cast %78 : vector<24xf32> to vector<1x1x24xf32>
    %80 = vector.broadcast %79 : vector<1x1x24xf32> to vector<8x16x24xf32>
    %81 = arith.mulf %76, %80 : vector<8x16x24xf32>
    %82 = arith.addf %75, %81 : vector<8x16x24xf32>
    %83 = vector.extract_strided_slice %36 {offsets = [0, 2, 0], sizes = [10, 16, 24], strides = [1, 1, 1]} : vector<10x18x24xf32> to vector<10x16x24xf32>
    %84 = vector.extract_strided_slice %83 {offsets = [0, 0, 0], sizes = [8, 16, 24], strides = [1, 1, 1]} : vector<10x16x24xf32> to vector<8x16x24xf32>
    %85 = vector.extract_strided_slice %37 {offsets = [2, 0], sizes = [1, 24], strides = [1, 1]} : vector<9x24xf32> to vector<1x24xf32>
    %86 = vector.shape_cast %85 : vector<1x24xf32> to vector<24xf32>
    %87 = vector.shape_cast %86 : vector<24xf32> to vector<1x1x24xf32>
    %88 = vector.broadcast %87 : vector<1x1x24xf32> to vector<8x16x24xf32>
    %89 = arith.mulf %84, %88 : vector<8x16x24xf32>
    %90 = arith.addf %82, %89 : vector<8x16x24xf32>
    %91 = vector.extract_strided_slice %83 {offsets = [1, 0, 0], sizes = [8, 16, 24], strides = [1, 1, 1]} : vector<10x16x24xf32> to vector<8x16x24xf32>
    %92 = vector.extract_strided_slice %37 {offsets = [5, 0], sizes = [1, 24], strides = [1, 1]} : vector<9x24xf32> to vector<1x24xf32>
    %93 = vector.shape_cast %92 : vector<1x24xf32> to vector<24xf32>
    %94 = vector.shape_cast %93 : vector<24xf32> to vector<1x1x24xf32>
    %95 = vector.broadcast %94 : vector<1x1x24xf32> to vector<8x16x24xf32>
    %96 = arith.mulf %91, %95 : vector<8x16x24xf32>
    %97 = arith.addf %90, %96 : vector<8x16x24xf32>
    %98 = vector.extract_strided_slice %83 {offsets = [2, 0, 0], sizes = [8, 16, 24], strides = [1, 1, 1]} : vector<10x16x24xf32> to vector<8x16x24xf32>
    %99 = vector.extract_strided_slice %37 {offsets = [8, 0], sizes = [1, 24], strides = [1, 1]} : vector<9x24xf32> to vector<1x24xf32>
    %100 = vector.shape_cast %99 : vector<1x24xf32> to vector<24xf32>
    %101 = vector.shape_cast %100 : vector<24xf32> to vector<1x1x24xf32>
    %102 = vector.broadcast %101 : vector<1x1x24xf32> to vector<8x16x24xf32>
    %103 = arith.mulf %98, %102 : vector<8x16x24xf32>
    %104 = arith.addf %97, %103 : vector<8x16x24xf32>
    %c0_13 = arith.constant 0 : index
    %c0_14 = arith.constant 0 : index
    %105 = vector.load %arg6[%c0_13, %c0_14] : memref<1x24xf32, #tpu.memory_space<vmem>>, vector<1x24xf32>
    %106 = vector.shape_cast %105 : vector<1x24xf32> to vector<1x1x24xf32>
    %107 = vector.broadcast %106 : vector<1x1x24xf32> to vector<8x16x24xf32>
    %108 = arith.addf %104, %107 : vector<8x16x24xf32>
    %cst_15 = arith.constant 0.000000e+00 : f32
    %cst_16 = arith.constant 6.000000e+00 : f32
    %109 = vector.broadcast %cst_15 : f32 to vector<8x16x24xf32>
    %110 = arith.maximumf %109, %108 : vector<8x16x24xf32>
    %111 = vector.broadcast %cst_16 : f32 to vector<8x16x24xf32>
    %112 = arith.minimumf %111, %110 : vector<8x16x24xf32>
    %113 = vector.shape_cast %112 : vector<8x16x24xf32> to vector<128x24xf32>
    %114 = arith.truncf %113 : vector<128x24xf32> to vector<128x24xbf16>
    %c0_17 = arith.constant 0 : index
    %c0_18 = arith.constant 0 : index
    %115 = vector.load %arg7[%c0_17, %c0_18] : memref<24x4xbf16, #tpu.memory_space<vmem>>, vector<24x4xbf16>
    %cst_19 = arith.constant dense<0.000000e+00> : vector<128x4xf32>
    %116 = tpu.matmul %114, %115, %cst_19 {dimension_numbers = #tpu.dot_dimension_numbers<[1], [0], [0], [1], [0, 0, 1, 1], [], []>} : vector<128x24xbf16>, vector<24x4xbf16>, vector<128x4xf32> -> vector<128x4xf32>
    %c0_20 = arith.constant 0 : index
    %c0_21 = arith.constant 0 : index
    %117 = vector.load %arg8[%c0_20, %c0_21] : memref<1x4xf32, #tpu.memory_space<vmem>>, vector<1x4xf32>
    %118 = vector.broadcast %117 : vector<1x4xf32> to vector<128x4xf32>
    %119 = arith.addf %116, %118 : vector<128x4xf32>
    %120 = vector.extract_strided_slice %4 {offsets = [1, 1, 0], sizes = [8, 16, 4], strides = [1, 1, 1]} : vector<10x18x4xf32> to vector<8x16x4xf32>
    %121 = vector.shape_cast %120 : vector<8x16x4xf32> to vector<128x4xf32>
    %122 = arith.addf %119, %121 : vector<128x4xf32>
    %123 = vector.shape_cast %122 : vector<128x4xf32> to vector<8x16x4xf32>
    %c0_22 = arith.constant 0 : index
    %c0_23 = arith.constant 0 : index
    %c0_24 = arith.constant 0 : index
    %c0_25 = arith.constant 0 : index
    %124 = vector.load %arg9[%c0_22, %c0_23, %c0_24, %c0_25] : memref<1x8x16x4xf32, #tpu.memory_space<vmem>>, vector<1x8x16x4xf32>
    %125 = vector.shape_cast %124 : vector<1x8x16x4xf32> to vector<8x16x4xf32>
    %126 = vector.shape_cast %123 : vector<8x16x4xf32> to vector<1x8x16x4xf32>
    tpu.vector_store %arg9[%c0_22, %c0_23, %c0_24, %c0_25], %126 {strides = array<i32>} : memref<1x8x16x4xf32, #tpu.memory_space<vmem>>, vector<1x8x16x4xf32>,
    return
  }
  func.func @transform_0(%arg0: i32, %arg1: i32) -> (i32, i32, i32, i32) {
    %c0_i32 = arith.constant 0 : i32
    %c0_i32_0 = arith.constant 0 : i32
    %c0_i32_1 = arith.constant 0 : i32
    %c0_i32_2 = arith.constant 0 : i32
    return %arg0, %c0_i32, %c0_i32_0, %c0_i32_1 : i32, i32, i32, i32
  }
  func.func @transform_1(%arg0: i32, %arg1: i32) -> (i32, i32) {
    %c0_i32 = arith.constant 0 : i32
    %c0_i32_0 = arith.constant 0 : i32
    %c0_i32_1 = arith.constant 0 : i32
    return %c0_i32, %c0_i32_0 : i32, i32
  }
  func.func @transform_2(%arg0: i32, %arg1: i32) -> (i32, i32) {
    %c0_i32 = arith.constant 0 : i32
    %c0_i32_0 = arith.constant 0 : i32
    %c0_i32_1 = arith.constant 0 : i32
    return %c0_i32, %c0_i32_0 : i32, i32
  }
  func.func @transform_3(%arg0: i32, %arg1: i32) -> (i32, i32) {
    %c0_i32 = arith.constant 0 : i32
    %c0_i32_0 = arith.constant 0 : i32
    %c0_i32_1 = arith.constant 0 : i32
    return %c0_i32, %c0_i32_0 : i32, i32
  }
  func.func @transform_4(%arg0: i32, %arg1: i32) -> (i32, i32) {
    %c0_i32 = arith.constant 0 : i32
    %c0_i32_0 = arith.constant 0 : i32
    %c0_i32_1 = arith.constant 0 : i32
    return %c0_i32, %c0_i32_0 : i32, i32
  }
  func.func @transform_5(%arg0: i32, %arg1: i32) -> (i32, i32) {
    %c0_i32 = arith.constant 0 : i32
    %c0_i32_0 = arith.constant 0 : i32
    %c0_i32_1 = arith.constant 0 : i32
    return %c0_i32, %c0_i32_0 : i32, i32
  }
  func.func @transform_6(%arg0: i32, %arg1: i32) -> (i32, i32) {
    %c0_i32 = arith.constant 0 : i32
    %c0_i32_0 = arith.constant 0 : i32
    %c0_i32_1 = arith.constant 0 : i32
    return %c0_i32, %c0_i32_0 : i32, i32
  }
  func.func @transform_7(%arg0: i32, %arg1: i32) -> (i32, i32, i32, i32) {
    %c0_i32 = arith.constant 0 : i32
    %c0_i32_0 = arith.constant 0 : i32
    %c0_i32_1 = arith.constant 0 : i32
    return %arg0, %arg1, %c0_i32, %c0_i32_0 : i32, i32, i32, i32
  }
}

</mosaic_0001>

<bundles_post_ra>
// kernel: tpu_custom_call.1
= control target key start
LH: loop header
LB: loop body
LE: loop exit
PB: predicated region body
PF: predicated region fallthrough
CT: control target
= control target key end

     0   :  { %s6631_s24 = smov 0   ;;  %s6633_s25 = smov 0   ;;  %s10311_s0 = inlined_call_operand.vmem [shape: f32[2,18,18,4], index: 0, kind: input, shape index: {}]   ;;  %s10312_s1 = inlined_call_operand.vmem [shape: bf16[4,24], index: 1, kind: input, shape index: {}]   ;;  %s10313_s2 = inlined_call_operand.vmem [shape: f32[1,24], index: 2, kind: input, shape index: {}]   ;;  %s10314_s3 = inlined_call_operand.vmem [shape: f32[9,24], index: 3, kind: input, shape index: {}]   ;;  %s10315_s4 = inlined_call_operand.vmem [shape: f32[1,24], index: 4, kind: input, shape index: {}]   ;;  %s10316_s5 = inlined_call_operand.vmem [shape: bf16[24,4], index: 5, kind: input, shape index: {}]   ;;  %s10317_s6 = inlined_call_operand.vmem [shape: f32[1,4], index: 6, kind: input, shape index: {}]   ;;  %s10318_s7 = inlined_call_operand.vmem [shape: f32[2,16,16,4], index: 7, kind: output, shape index: {}]  }
   0x1   :  { %s6635_s26 = smov 0   ;;  %s6637_s27 = smov 0  }
   0x2   :  { %s6639_s28 = smov 0  }
   0x3 LB: > { %s26_s29 = sadd.s32 1, %s6575_s26  ;;  %s29_s30 = sadd.s32 1, %s6579_s27  ;;  %s6583_s28 = sphi %s6639_s28, %s17_s28   ;;  %s6579_s27 = sphi %s6637_s27, %s11597_s27   ;;  %s6575_s26 = sphi %s6635_s26, %s11596_s26   ;;  %s6571_s25 = sphi %s6633_s25, %s11595_s25   ;;  %s6567_s24 = sphi %s6631_s24, %s11594_s24  }
   0x4   : > { %p27_p0 = scmp.ge.s32.totalorder %s26_s29, 2  ;;  %p6305_p1 = scmp.ge.s32.totalorder %s6583_s28, 1 }
   0x5   : > { %p251_p2 = scmp.lt.s32.totalorder %s6583_s28, 5 }
   0x6   : > { %s11599_s29 = smov (%p27_p0, %s26_s29), 0  ;;  %s11601_s30 = smov (!%p27_p0, %s29_s30), %s6579_s27 }
   0x7   : > { %p252_p3 = pnand %p6305_p1, %p251_p2  ;;  %p31_p4 = scmp.ge.s32.totalorder %s11601_s30, 2 }
   0x9   : > { %s11603_s30 = smov (%p31_p4, %s11601_s30), 0  ;;  %255 = sbr.rel (%p252_p3) target bundleno = 1084 (0x43c), region = 48 }
  0x10   : > { %v1195_v0 = vld [vmem:[%s10312_s1] sm:$0x3]  ;;  %vm1240_vm0 = vcmask 1041408   ;;  %p288_p5 = scmp.lt.s32.totalorder %s6571_s25, 1  ;;  %v372_v1 = vlaneseq  ;;  %s6667_s10 = sshll.u32 %s6567_s24, 3  ;;  %vm1203_vm1 = vcmask 31744  }
  0x11   : > { %6440 = vmatprep.subr.msk.bf16.mxu0 %vm1240_vm0, %v1195_v0  ;;  %v1242_v2 = vsel %vm1240_vm0, %v1195_v0, 0  ;;  %6441 = vmatprep.subr.msk.bf16.mxu1 %vm1240_vm0, %v1195_v0  ;;  %v6585_v3 = vmov 1983009808   ;;  %s6312_s11 = smul.u32 192, %s6567_s24  ;;  %p296_p6 = scmp.lt.s32.totalorder %s6667_s10, 15  ;;  %v1916_v7 = vstv %s6667_s10  ;;  %vm3413_vm14 = vcmask 1040384  }
  0x12   : > { %6393 = vmatpush3.bf16.msra.mxu0 %v1242_v2  ;;  %s11605_s25 = smov (!%p288_p5, %s6571_s25), 1  ;;  %v370_v4 = vunpack.c.l.s4 %v6585_v3  ;;  %v6669_v5 = vshrl.u32 %v372_v1, 7  ;;  %6439 = vmatpush3.bf16.msra.mxu1 %v1242_v2  ;;  %v6690_v12 = vand.u32 127, %v372_v1  ;;  %vm3414_vm15 = vcmask 1042434  }
  0x13   : > { %s6443_s12 = smul.u32 432, %s11605_s25  ;;  %s6309_s13 = sshll.u32 %s11605_s25, 5  ;;  %vm3415_vm0 = vmor %vm3413_vm14, %vm3414_vm15 }
  0x14   : > { %v371_v6 = vunpack.c.0.s8 %v370_v4  ;;  %s297_s14 = scalar_select %p296_p6, %s6667_s10, 15  ;;  %v6688_v11 = vadd.s32 %v1916_v7, %v6669_v5  ;;  %v6693_v13 = vsub.s32 0, %v6669_v5  ;;  %v6698_v14 = vsub.s32 1, %v6669_v5 }
  0x15   : > { %s292_s17 = scalar_lea.vmem %s10311_s0, %s6443_s12  ;;  %vm1927_vm4 = vcmp.ge.s32.totalorder %v6690_v12, 1  ;;  %vm1930_vm5 = vcmp.le.s32.totalorder %v6690_v12, 16  ;;  %v6875_v12 = vld [vmem:[%s10314_s3] sm:$0xff] }
  0x16   : > { %v6679_v8 = vsub.s32 %v371_v6, %v6669_v5  ;;  %s6681_s18 = scalar_lea.vmem %s292_s17, %s6312_s11  ;;  %s6308_s19 = sshll.u32 %s297_s14, 1  ;;  %vm1921_vm2 = vcmp.ge.s32.totalorder %v6688_v11, 1  ;;  %vm1923_vm3 = vcmp.le.s32.totalorder %v6688_v11, 16 }
  0x17   : > { %v308_v9 = vld [vmem:[%s6681_s18] sm:$0xff]  ;;  %v309_v10 = vld [vmem:[%s6681_s18 + $0x8] sm:$0xff]  ;;  %s6695_s20 = sadd.s32 %s6309_s13, %s6308_s19  ;;  %v311_v19 = vld [vmem:[%s6681_s18 + $0x18] sm:$0xff] }
  0x18   : > { %10707 = vst [vmem:[#allocation2_spill] sm:$0xff] %v6679_v8  ;;  %v368_v15 = vcombine.high %v308_v9, %v308_v9  ;;  %v375_v16 = vrot.slane %v308_v9, %v6679_v8  ;;  %v385_v17 = vcombine.high %v309_v10, %v309_v10  ;;  %v392_v18 = vrot.slane %v309_v10, %v6679_v8  ;;  %v312_v20 = vld [vmem:[%s6681_s18 + $0x20] sm:$0xff]  ;;  %v6313_v29 = vld.sshfl [vmem:[%s6681_s18 + $0x10] sm:$0x3 pattern:$0x76325410]  ;;  %vm6806_vm6 = vmand %vm1921_vm2, %vm1923_vm3 }
  0x19   : > { %v409_v21 = vcombine.high %v311_v19, %v311_v19  ;;  %v416_v22 = vrot.slane %v311_v19, %v6679_v8  ;;  %v426_v23 = vcombine.high %v312_v20, %v312_v20  ;;  %v433_v24 = vrot.slane %v312_v20, %v6679_v8  ;;  %v6537_v42 = vld.sshfl [vmem:[%s6681_s18 + $0x28] sm:$0x3 pattern:$0x76325410]  ;;  %v314_v47 = vld [vmem:[%s6681_s18 + $0x30] sm:$0xff]  ;;  %v315_v52 = vld [vmem:[%s6681_s18 + $0x38] sm:$0xff] }
  0x1a   : > { %v382_v25 = vrot.slane %v368_v15, %v6679_v8  ;;  %v383_v26 = vcombine.high %v375_v16, %v375_v16  ;;  %v399_v27 = vrot.slane %v385_v17, %v6679_v8  ;;  %v400_v28 = vcombine.high %v392_v18, %v392_v18  ;;  %v6538_v60 = vld.sshfl [vmem:[%s6681_s18 + $0x40] sm:$0x3 pattern:$0x76325410]  ;;  %v317_v4 = vld [vmem:[%s6681_s18 + $0x48] sm:$0xff]  ;;  %v318_v6 = vld [vmem:[%s6681_s18 + $0x50] sm:$0xff] }
  0x1b   : > { %v423_v30 = vrot.slane %v409_v21, %v6679_v8  ;;  %v424_v31 = vcombine.high %v416_v22, %v416_v22  ;;  %v440_v32 = vrot.slane %v426_v23, %v6679_v8  ;;  %v441_v33 = vcombine.high %v433_v24, %v433_v24  ;;  %vm1928_vm7 = vmand %vm6806_vm6, %vm1927_vm4  ;;  %s6310_s21 = sshll.u32 %s6695_s20, 3 }
  0x1c   : > { %v384_v34 = vcombine.high %v382_v25, %v382_v25  ;;  %v401_v35 = vcombine.high %v399_v27, %v399_v27  ;;  %v778_v36 = vcombine.low %v375_v16, %v383_v26  ;;  %v795_v37 = vcombine.low %v392_v18, %v400_v28  ;;  %vm1931_vm8 = vmand %vm1928_vm7, %vm1930_vm5  ;;  %s10210_s23 = scalar_lea.vmem %s10318_s7, %s6310_s21 }
  0x1d   : > { %v425_v38 = vcombine.high %v423_v30, %v423_v30  ;;  %v812_v39 = vcombine.low %v6313_v29, %v416_v22  ;;  %v813_v40 = vcombine.low %v424_v31, %v423_v30  ;;  %v830_v41 = vcombine.low %v441_v33, %v440_v32  ;;  %v6539_v33 = vld.sshfl [vmem:[%s6681_s18 + $0x58] sm:$0x3 pattern:$0x76325410] }
  0x1e   : > { %v779_v43 = vcombine.low %v382_v25, %v384_v34  ;;  %v786_v44 = vrot.slane %v778_v36, %v6679_v8  ;;  %v796_v45 = vcombine.low %v399_v27, %v401_v35  ;;  %v803_v46 = vrot.slane %v795_v37, %v6679_v8  ;;  %v320_v37 = vld [vmem:[%s6681_s18 + $0x60] sm:$0xff] }
  0x1f   : > { %v820_v48 = vrot.slane %v812_v39, %v6679_v8  ;;  %v827_v49 = vrot.slane %v813_v40, %v6679_v8  ;;  %v829_v50 = vcombine.low %v425_v38, %v433_v24  ;;  %v844_v51 = vrot.slane %v830_v41, %v6679_v8 }
  0x20   : > { %v793_v53 = vrot.slane %v779_v43, %v6679_v8  ;;  %v810_v54 = vrot.slane %v796_v45, %v6679_v8  ;;  %v442_v55 = vcombine.high %v440_v32, %v440_v32  ;;  %v450_v58 = vcombine.high %v314_v47, %v314_v47 }
  0x21   : > { %v828_v56 = vcombine.low %v820_v48, %v827_v49  ;;  %v837_v57 = vrot.slane %v829_v50, %v6679_v8  ;;  %v457_v59 = vrot.slane %v314_v47, %v6679_v8  ;;  %v474_v63 = vrot.slane %v315_v52, %v6679_v8 }
  0x22   : > { %v794_v61 = vcombine.low %v786_v44, %v793_v53  ;;  %v811_v62 = vcombine.low %v803_v46, %v810_v54  ;;  %v846_v0 = vcombine.low %v442_v55, %v6537_v42  ;;  %v464_v2 = vrot.slane %v450_v58, %v6679_v8  ;;  %v321_v46 = vld [vmem:[%s6681_s18 + $0x68] sm:$0xff] }
  0x23   : > { %v845_v1 = vcombine.low %v837_v57, %v844_v51  ;;  %v465_v3 = vcombine.high %v457_v59, %v457_v59  ;;  %v467_v9 = vcombine.high %v315_v52, %v315_v52  ;;  %v482_v15 = vcombine.high %v474_v63, %v474_v63  ;;  %v6540_v51 = vld.sshfl [vmem:[%s6681_s18 + $0x70] sm:$0x3 pattern:$0x76325410] }
  0x24   : > { %v1183_v10 = vpack.c.bf16 %v811_v62, %v794_v61  ;;  %v854_v16 = vrot.slane %v846_v0, %v6679_v8  ;;  %v466_v18 = vcombine.high %v464_v2, %v464_v2  ;;  %v491_v22 = vcombine.high %v317_v4, %v317_v4 }
  0x25   : > { %v1184_v17 = vpack.c.bf16 %v845_v1, %v828_v56  ;;  %v847_v19 = vcombine.low %v457_v59, %v465_v3  ;;  %v481_v20 = vrot.slane %v467_v9, %v6679_v8  ;;  %v864_v21 = vcombine.low %v474_v63, %v482_v15  ;;  %v323_v59 = vld [vmem:[%s6681_s18 + $0x78] sm:$0xff]  ;;  %v324_v15 = vld [vmem:[%s6681_s18 + $0x80] sm:$0xff] }
  0x26   : > { %6394 = vmatprep.mubr.msk.bf16.mxu0 %vm1203_vm1, %v1183_v10  ;;  %v498_v23 = vrot.slane %v317_v4, %v6679_v8  ;;  %v515_v24 = vrot.slane %v318_v6, %v6679_v8  ;;  %v863_v26 = vcombine.low %v464_v2, %v466_v18  ;;  %v508_v28 = vcombine.high %v318_v6, %v318_v6 }
  0x27   : > { %6395 = vmatmul.mubr.msk.bf16.vlgmr.msra.gmra.mrb[0].mxu0 %vm1203_vm1, %v1184_v17  ;;  %v861_v25 = vrot.slane %v847_v19, %v6679_v8  ;;  %v483_v27 = vcombine.high %v481_v20, %v481_v20  ;;  %v878_v29 = vrot.slane %v864_v21, %v6679_v8  ;;  %v505_v30 = vrot.slane %v491_v22, %v6679_v8 }
  0x28   : > { %v506_v31 = vcombine.high %v498_v23, %v498_v23  ;;  %v881_v32 = vcombine.low %v6538_v60, %v498_v23  ;;  %v871_v35 = vrot.slane %v863_v26, %v6679_v8  ;;  %v522_v38 = vrot.slane %v508_v28, %v6679_v8  ;;  %v6541_v26 = vld.sshfl [vmem:[%s6681_s18 + $0x88] sm:$0x3 pattern:$0x76325410] }
  0x29   : > { %v862_v34 = vcombine.low %v854_v16, %v861_v25  ;;  %v880_v36 = vcombine.low %v481_v20, %v483_v27  ;;  %v507_v39 = vcombine.high %v505_v30, %v505_v30  ;;  %v523_v42 = vcombine.high %v515_v24, %v515_v24  ;;  %v326_v27 = vld [vmem:[%s6681_s18 + $0x90] sm:$0xff] }
  0x2a   : > { %v895_v40 = vrot.slane %v881_v32, %v6679_v8  ;;  %v897_v41 = vcombine.low %v506_v31, %v505_v30  ;;  %v879_v43 = vcombine.low %v871_v35, %v878_v29  ;;  %v524_v45 = vcombine.high %v522_v38, %v522_v38 }
  0x2b   : > { %v888_v44 = vrot.slane %v880_v36, %v6679_v8  ;;  %v898_v47 = vcombine.low %v507_v39, %v515_v24  ;;  %v532_v49 = vcombine.high %v320_v37, %v320_v37  ;;  %v539_v50 = vrot.slane %v320_v37, %v6679_v8 }
  0x2c   : > { %v905_v48 = vrot.slane %v897_v41, %v6679_v8  ;;  %v1185_v52 = vpack.c.bf16 %v879_v43, %v862_v34  ;;  %v914_v54 = vcombine.low %v523_v42, %v522_v38  ;;  %v915_v55 = vcombine.low %v524_v45, %v6539_v33  ;;  %v327_v41 = vld [vmem:[%s6681_s18 + $0x98] sm:$0xff] }
  0x2d   : > { %v896_v53 = vcombine.low %v888_v44, %v895_v40  ;;  %v912_v56 = vrot.slane %v898_v47, %v6679_v8  ;;  %v546_v57 = vrot.slane %v532_v49, %v6679_v8  ;;  %v547_v58 = vcombine.high %v539_v50, %v539_v50 }
  0x2e   : > { %v549_v60 = vcombine.high %v321_v46, %v321_v46  ;;  %6398 = vmatprep.mubr.msk.bf16.mxu0 %vm1203_vm1, %v1185_v52  ;;  %v922_v61 = vrot.slane %v914_v54, %v6679_v8  ;;  %v929_v62 = vrot.slane %v915_v55, %v6679_v8  ;;  %v556_v63 = vrot.slane %v321_v46, %v6679_v8  ;;  %v6542_v46 = vld.sshfl [vmem:[%s6681_s18 + $0xa0] sm:$0x3 pattern:$0x76325410] }
  0x2f   : > { %v913_v0 = vcombine.low %v905_v48, %v912_v56  ;;  %v548_v1 = vcombine.high %v546_v57, %v546_v57  ;;  %v931_v2 = vcombine.low %v539_v50, %v547_v58  ;;  %v573_v9 = vcombine.high %v323_v59, %v323_v59  ;;  %v6543_v56 = vld.sshfl [vmem:[%s6681_s18 + $0xd0] sm:$0x3 pattern:$0x76325410] }
  0x30   : > { %v563_v3 = vrot.slane %v549_v60, %v6679_v8  ;;  %v930_v4 = vcombine.low %v922_v61, %v929_v62  ;;  %v564_v6 = vcombine.high %v556_v63, %v556_v63  ;;  %v580_v10 = vrot.slane %v323_v59, %v6679_v8  ;;  %v335_v60 = vld [vmem:[%s6681_s18 + $0xd8] sm:$0xff] }
  0x31   : > { %v1186_v16 = vpack.c.bf16 %v913_v0, %v896_v53  ;;  %v932_v17 = vcombine.low %v546_v57, %v548_v1  ;;  %v939_v18 = vrot.slane %v931_v2, %v6679_v8  ;;  %v587_v20 = vrot.slane %v573_v9, %v6679_v8  ;;  %v329_v53 = vld [vmem:[%s6681_s18 + $0xa8] sm:$0xff]  ;;  %v336_v1 = vld [vmem:[%s6681_s18 + $0xe0] sm:$0xff] }
  0x32   : > { %v565_v19 = vcombine.high %v563_v3, %v563_v3  ;;  %v588_v21 = vcombine.high %v580_v10, %v580_v10  ;;  %v948_v22 = vcombine.low %v556_v63, %v564_v6  ;;  %v965_v23 = vcombine.low %v6540_v51, %v580_v10 }
  0x33   : > { %6399 = vmatmul.mubr.msk.bf16.gmra.mrb[4].mxu0 %vm1203_vm1, %v1186_v16  ;;  %v946_v24 = vrot.slane %v932_v17, %v6679_v8  ;;  %v590_v28 = vcombine.high %v324_v15, %v324_v15  ;;  %v597_v29 = vrot.slane %v324_v15, %v6679_v8  ;;  %v589_v33 = vcombine.high %v587_v20, %v587_v20 }
  0x34   : > { %v949_v25 = vcombine.low %v563_v3, %v565_v19  ;;  %v956_v30 = vrot.slane %v948_v22, %v6679_v8  ;;  %v966_v31 = vcombine.low %v588_v21, %v587_v20  ;;  %v973_v32 = vrot.slane %v965_v23, %v6679_v8 }
  0x35   : > { %v947_v34 = vcombine.low %v939_v18, %v946_v24  ;;  %v604_v36 = vrot.slane %v590_v28, %v6679_v8  ;;  %v605_v37 = vcombine.high %v597_v29, %v597_v29  ;;  %v621_v39 = vrot.slane %v326_v27, %v6679_v8 }
  0x36   : > { %v963_v35 = vrot.slane %v949_v25, %v6679_v8  ;;  %v980_v38 = vrot.slane %v966_v31, %v6679_v8  ;;  %v982_v40 = vcombine.low %v589_v33, %v597_v29  ;;  %v614_v50 = vcombine.high %v326_v27, %v326_v27 }
  0x37   : > { %v1187_v42 = vpack.c.bf16 %v947_v34, %v930_v4  ;;  %v606_v44 = vcombine.high %v604_v36, %v604_v36  ;;  %v983_v45 = vcombine.low %v605_v37, %v604_v36  ;;  %v629_v48 = vcombine.high %v621_v39, %v621_v39  ;;  %v330_v36 = vld [vmem:[%s6681_s18 + $0xb0] sm:$0xff] }
  0x38   : > { %v964_v43 = vcombine.low %v956_v30, %v963_v35  ;;  %v981_v47 = vcombine.low %v973_v32, %v980_v38  ;;  %v990_v49 = vrot.slane %v982_v40, %v6679_v8  ;;  %v631_v54 = vcombine.high %v327_v41, %v327_v41  ;;  %v6314_v35 = vld.sshfl [vmem:[%s6681_s18 + $0xe8] sm:$0x3 pattern:$0x76325410] }
  0x39   : > { %6402 = vmatprep.mubr.msk.bf16.mxu0 %vm1203_vm1, %v1187_v42  ;;  %v997_v51 = vrot.slane %v983_v45, %v6679_v8  ;;  %v999_v52 = vcombine.low %v606_v44, %v6541_v26  ;;  %v638_v55 = vrot.slane %v327_v41, %v6679_v8  ;;  %v1000_v58 = vcombine.low %v621_v39, %v629_v48  ;;  %v6544_v45 = vld.sshfl [vmem:[%s6681_s18 + $0xb8] sm:$0x3 pattern:$0x76325410] }
  0x3a   : > { %v1188_v57 = vpack.c.bf16 %v981_v47, %v964_v43  ;;  %v628_v59 = vrot.slane %v614_v50, %v6679_v8  ;;  %v645_v63 = vrot.slane %v631_v54, %v6679_v8  ;;  %v662_v4 = vrot.slane %v329_v53, %v6679_v8 }
  0x3b   : > { %v998_v61 = vcombine.low %v990_v49, %v997_v51  ;;  %v1007_v62 = vrot.slane %v999_v52, %v6679_v8  ;;  %v646_v0 = vcombine.high %v638_v55, %v638_v55  ;;  %v1014_v2 = vrot.slane %v1000_v58, %v6679_v8  ;;  %v332_v52 = vld [vmem:[%s6681_s18 + $0xc0] sm:$0xff] }
  0x3c   : > { %6403 = vmatmul.mubr.msk.bf16.gmra.mrb[8].mxu0 %vm1203_vm1, %v1188_v57  ;;  %v630_v3 = vcombine.high %v628_v59, %v628_v59  ;;  %v647_v6 = vcombine.high %v645_v63, %v645_v63  ;;  %v737_v10 = vcombine.high %v335_v60, %v335_v60  ;;  %v744_v15 = vrot.slane %v335_v60, %v6679_v8 }
  0x3d   : > { %v1017_v9 = vcombine.low %v638_v55, %v646_v0  ;;  %v1015_v16 = vcombine.low %v1007_v62, %v1014_v2  ;;  %v1034_v18 = vcombine.low %v6542_v46, %v662_v4  ;;  %v754_v19 = vcombine.high %v336_v1, %v336_v1  ;;  %v333_v62 = vld [vmem:[%s6681_s18 + $0xc8] sm:$0xff] }
  0x3e   : > { %v1016_v17 = vcombine.low %v628_v59, %v630_v3  ;;  %v1033_v21 = vcombine.low %v645_v63, %v647_v6  ;;  %v751_v22 = vrot.slane %v737_v10, %v6679_v8  ;;  %v752_v23 = vcombine.high %v744_v15, %v744_v15 }
  0x3f   : > { %v1031_v20 = vrot.slane %v1017_v9, %v6679_v8  ;;  %v1189_v24 = vpack.c.bf16 %v1015_v16, %v998_v61  ;;  %v1048_v26 = vrot.slane %v1034_v18, %v6679_v8  ;;  %v761_v27 = vrot.slane %v336_v1, %v6679_v8 }
  0x40   : > { %v1024_v25 = vrot.slane %v1016_v17, %v6679_v8  ;;  %v1041_v28 = vrot.slane %v1033_v21, %v6679_v8  ;;  %v753_v29 = vcombine.high %v751_v22, %v751_v22  ;;  %v768_v30 = vrot.slane %v754_v19, %v6679_v8 }
  0x41   : > { %v1118_v31 = vcombine.low %v6543_v56, %v744_v15  ;;  %6406 = vmatprep.mubr.msk.bf16.mxu0 %vm1203_vm1, %v1189_v24  ;;  %v769_v33 = vcombine.high %v761_v27, %v761_v27  ;;  %v1119_v34 = vcombine.low %v752_v23, %v751_v22  ;;  %v655_v37 = vcombine.high %v329_v53, %v329_v53 }
  0x42   : > { %v1032_v32 = vcombine.low %v1024_v25, %v1031_v20  ;;  %v1049_v38 = vcombine.low %v1041_v28, %v1048_v26  ;;  %v770_v39 = vcombine.high %v768_v30, %v768_v30  ;;  %v1135_v41 = vcombine.low %v753_v29, %v761_v27 }
  0x43   : > { %v1126_v40 = vrot.slane %v1118_v31, %v6679_v8  ;;  %v1133_v43 = vrot.slane %v1119_v34, %v6679_v8  ;;  %v1136_v44 = vcombine.low %v769_v33, %v768_v30  ;;  %v669_v46 = vrot.slane %v655_v37, %v6679_v8 }
  0x44   : > { %v670_v47 = vcombine.high %v662_v4, %v662_v4  ;;  %v1190_v48 = vpack.c.bf16 %v1049_v38, %v1032_v32  ;;  %v1143_v49 = vrot.slane %v1135_v41, %v6679_v8  ;;  %v1152_v50 = vcombine.low %v770_v39, %v6314_v35 }
  0x45   : > { %v672_v51 = vcombine.high %v330_v36, %v330_v36  ;;  %v1134_v53 = vcombine.low %v1126_v40, %v1133_v43  ;;  %v1150_v11 = vrot.slane %v1136_v44, %v6679_v8  ;;  %v671_v54 = vcombine.high %v669_v46, %v669_v46 }
  0x46   : > { %v679_v55 = vrot.slane %v330_v36, %v6679_v8  ;;  %6407 = vmatmul.mubr.msk.bf16.gmra.mrb[12].mxu0 %vm1203_vm1, %v1190_v48  ;;  %v1159_v56 = vrot.slane %v1152_v50, %v6679_v8  ;;  %v1050_v58 = vcombine.low %v670_v47, %v669_v46  ;;  %v696_v63 = vcombine.high %v332_v52, %v332_v52 }
  0x47   : > { %v686_v57 = vrot.slane %v672_v51, %v6679_v8  ;;  %v1151_v59 = vcombine.low %v1143_v49, %v1150_v11  ;;  %v703_v3 = vrot.slane %v332_v52, %v6679_v8  ;;  %v713_v17 = vcombine.high %v333_v62, %v333_v62 }
  0x48   : > { %v687_v60 = vcombine.high %v679_v55, %v679_v55  ;;  %v1051_v61 = vcombine.low %v671_v54, %v679_v55  ;;  %v1194_v0 = vpack.c.bf16 %v1159_v56, %v1159_v56  ;;  %v1058_v2 = vrot.slane %v1050_v58, %v6679_v8 }
  0x49   : > { %v688_v1 = vcombine.high %v686_v57, %v686_v57  ;;  %v1193_v4 = vpack.c.bf16 %v1151_v59, %v1134_v53  ;;  %v710_v10 = vrot.slane %v696_v63, %v6679_v8  ;;  %v711_v16 = vcombine.high %v703_v3, %v703_v3 }
  0x4a   : > { %v1065_v6 = vrot.slane %v1051_v61, %v6679_v8  ;;  %v1067_v9 = vcombine.low %v687_v60, %v686_v57  ;;  %v720_v18 = vrot.slane %v333_v62, %v6679_v8  ;;  %v6586_v22 = vmov 0.0  }
  0x4b   : > { %v1068_v15 = vcombine.low %v688_v1, %v6544_v45  ;;  %6414 = vmatprep.mubr.msk.bf16.mxu1 %vm1203_vm1, %v1193_v4  ;;  %v712_v21 = vcombine.high %v710_v10, %v710_v10  ;;  %v6328_v23 = vsel %vm1931_vm8, 1.0, %v6586_v22  ;;  %v727_v25 = vrot.slane %v713_v17, %v6679_v8 }
  0x4c   : > { %v1066_v19 = vcombine.low %v1058_v2, %v1065_v6  ;;  %v1075_v20 = vrot.slane %v1067_v9, %v6679_v8  ;;  %6415 = vmatmul.mubr.msk.bf16.vlgmr.msra.gmra.mrb[0].mxu1 %vm1203_vm1, %v1194_v0  ;;  %v728_v26 = vcombine.high %v720_v18, %v720_v18  ;;  %v1084_v27 = vcombine.low %v703_v3, %v711_v16 }
  0x4d   : > { %v1082_v24 = vrot.slane %v1068_v15, %v6679_v8  ;;  %v1085_v28 = vcombine.low %v710_v10, %v712_v21  ;;  %v1940_v29 = vrot.slane %v6328_v23, %v6693_v13  ;;  %v729_v31 = vcombine.high %v727_v25, %v727_v25 }
  0x4e   : > { %v1092_v32 = vrot.slane %v1084_v27, %v6679_v8  ;;  %v1101_v33 = vcombine.low %v720_v18, %v728_v26  ;;  %v1955_v35 = vrot.slane %v6328_v23, %v6698_v14  ;;  %v1969_v39 = vsub.s32 2, %v6669_v5 }
  0x4f   : > { %v1083_v30 = vcombine.low %v1075_v20, %v1082_v24  ;;  %v1099_v34 = vrot.slane %v1085_v28, %v6679_v8  ;;  %1942 = vbcast.lane.b32.xlu0 %v1940_v29, 256  ;;  %v1102_v37 = vcombine.low %v727_v25, %v729_v31  ;;  %v1984_v45 = vsub.s32 3, %v6669_v5 }
  0x50   : > { %v1109_v38 = vrot.slane %v1101_v33, %v6679_v8  ;;  %1957 = vbcast.lane.b32.xlu1 %v1955_v35, 256  ;;  %v1970_v43 = vrot.slane %v6328_v23, %v1969_v39  ;;  %v1999_v47 = vsub.s32 4, %v6669_v5  ;;  %v2014_v49 = vsub.s32 5, %v6669_v5 }
  0x51   : > { %v1191_v36 = vpack.c.bf16 %v1083_v30, %v1066_v19  ;;  %v1100_v40 = vcombine.low %v1092_v32, %v1099_v34  ;;  %v1116_v41 = vrot.slane %v1102_v37, %v6679_v8  ;;  %v1985_v46 = vrot.slane %v6328_v23, %v1984_v45 }
  0x52   : > { %v2000_v48 = vrot.slane %v6328_v23, %v1999_v47  ;;  %v1915_v50 = vadd.s32 8, %v6669_v5  ;;  %v2015_v51 = vrot.slane %v6328_v23, %v2014_v49  ;;  %v2029_v53 = vsub.s32 6, %v6669_v5 }
  0x53   : > { %6410 = vmatprep.mubr.msk.bf16.mxu0 %vm1203_vm1, %v1191_v36  ;;  %1946 = vbcast.lane.b32.xlu0 %v1940_v29, 264  ;;  %v1117_v42 = vcombine.low %v1109_v38, %v1116_v41  ;;  %v2044_v54 = vsub.s32 7, %v6669_v5  ;;  %v3394_v61 = vrot.slane %v6875_v12, %v6698_v14  ;;  %v2932_v4 = vrot.slane %v6875_v12, %v6693_v13 }
  0x54   : > { %1961 = vbcast.lane.b32.xlu1 %v1955_v35, 264  ;;  %v1918_v52 = vadd.s32 %v1916_v7, %v1915_v50  ;;  %v2030_v11 = vrot.slane %v6328_v23, %v2029_v53  ;;  %vm3416_vm2 = vcmask 1044484   ;;  %v3913_v9 = vrot.slane %v6875_v12, %v1999_v47 }
  0x55   : > { %v1192_v44 = vpack.c.bf16 %v1117_v42, %v1100_v40  ;;  %v2045_v7 = vrot.slane %v6328_v23, %v2044_v54  ;;  %v3396_v0 = vcombine.high %v3394_v61, %v3394_v61  ;;  %v3403_v2 = vrot.slane %v3394_v61, %v6679_v8 }
  0x56   : > { %vm1922_vm9 = vcmp.ge.s32.totalorder %v1918_v52, 1  ;;  %vm1924_vm10 = vcmp.le.s32.totalorder %v1918_v52, 16  ;;  %vm3418_vm3 = vcmask 1046534   ;;  %v2934_v19 = vcombine.high %v2932_v4, %v2932_v4 }
  0x57   : > { %1950 = vbcast.lane.b32.xlu0 %v1940_v29, 272  ;;  %6411 = vmatmul.mubr.msk.bf16.gmra.mrb[16].mxu0 %vm1203_vm1, %v1192_v44  ;;  %vm1926_vm11 = vmand %vm1922_vm9, %vm1924_vm10  ;;  %v6895_v6 = vrot.slane %v3396_v0, %v6679_v8  ;;  %v3411_v15 = vcombine.high %v3403_v2, %v3403_v2  ;;  %v6903_v16 = vrot.slane %v3403_v2, 7  ;;  %v3086_v23 = vrot.slane %v6875_v12, %v1984_v45 }
  0x58   : > { %1972 = vbcast.lane.b32.xlu1 %v1970_v43, 256  ;;  %vm1929_vm12 = vmand %vm1926_vm11, %vm1927_vm4  ;;  %v3915_v24 = vcombine.high %v3913_v9, %v3913_v9  ;;  %v3922_v25 = vrot.slane %v3913_v9, %v6679_v8  ;;  %v6922_v30 = vrot.slane %v2932_v4, %v6679_v8  ;;  %v5091_v52 = vrot.slane %v6875_v12, %v2014_v49 }
  0x59   : > { %vm1932_vm13 = vmand %vm1929_vm12, %vm1930_vm5  ;;  %10712 = vst [vmem:[#allocation5_spill] sm:$0xff] %v6903_v16  ;;  %v3425_v17 = vrot.slane %v6895_v6, 7  ;;  %v3412_v20 = vcombine.high %v6895_v6, %v6895_v6  ;;  %v3421_v26 = vrot.slane %v6903_v16, 2  ;;  %v3422_v27 = vrot.slane %v3411_v15, 7 }
  0x5a   : > { %v6329_v55 = vsel %vm1932_vm13, 1.0, %v6586_v22  ;;  %vm3417_vm4 = vmor %vm3415_vm0, %vm3416_vm2  ;;  %10716 = vst [vmem:[#allocation9_spill] sm:$0xff] %v6922_v30  ;;  %v6943_v40 = vrot.slane %v3086_v23, %v6679_v8  ;;  %v3929_v41 = vrot.slane %v3915_v24, %v6679_v8  ;;  %v3930_v42 = vcombine.high %v3922_v25, %v3922_v25 }
  0x5b   : > { %1976 = vbcast.lane.b32.xlu0 %v1970_v43, 264  ;;  %v2060_v56 = vrot.slane %v6329_v55, %v6693_v13  ;;  %v2075_v57 = vrot.slane %v6329_v55, %v6698_v14  ;;  %v4937_v14 = vrot.slane %v6875_v12, %v1969_v39  ;;  %v4425_v13 = vrot.slane %v6875_v12, %v2044_v54  ;;  %vm6925_vm5 = vmor %vm3417_vm4, %vm3418_vm3 }
  0x5c   : > { %1965 = vbcast.lane.b32.xlu1 %v1955_v35, 272  ;;  %v3427_v28 = vrot.slane %v3425_v17, 2  ;;  %v6933_v35 = vrot.slane %v2934_v19, %v6679_v8  ;;  %v3428_v36 = vrot.slane %v3412_v20, 7  ;;  %v3088_v39 = vcombine.high %v3086_v23, %v3086_v23  ;;  %10723 = vst [vmem:[#allocation14_spill] sm:$0xff] %v6943_v40 }
  0x5d   : > { %v4939_v21 = vcombine.high %v4937_v14, %v4937_v14  ;;  %v6912_v22 = vrot.slane %v4937_v14, %v6679_v8  ;;  %v4427_v32 = vcombine.high %v4425_v13, %v4425_v13  ;;  %v4434_v33 = vrot.slane %v4425_v13, %v6679_v8 }
  0x5e   : > { %10720 = vst [vmem:[#allocation11_spill] sm:$0xff] %v6933_v35  ;;  %v3424_v44 = vrot.slane %v3422_v27, 2  ;;  %v6952_v45 = vsel %vm6925_vm5, %v3427_v28, %v3428_v36  ;;  %v6957_v50 = vrot.slane %v3428_v36, 2  ;;  %v3931_v54 = vcombine.high %v3929_v41, %v3929_v41 }
  0x5f   : > { %1987 = vbcast.lane.b32.xlu0 %v1985_v46, 256  ;;  %10714 = vst [vmem:[#allocation7_spill] sm:$0xff] %v6912_v22  ;;  %v6936_v37 = vrot.slane %v4939_v21, %v6679_v8  ;;  %v6940_v38 = vcombine.high %v6912_v22, %v6912_v22  ;;  %10725 = vst [vmem:[#allocation16_spill] sm:$0xff] %v6952_v45  ;;  %v4442_v47 = vcombine.high %v4434_v33, %v4434_v33  ;;  %v6587_v61 = vmov 269488144  }
  0x60   : > { %1991 = vbcast.lane.b32.xlu1 %v1985_v46, 264  ;;  %10727 = vst [vmem:[#allocation18_spill] sm:$0xff] %v6957_v50  ;;  %v3937_v55 = vrot.slane %v3929_v41, 7  ;;  %v2118_v0 = vunpack.c.l.s4 %v6587_v61  ;;  %v6588_v2 = vmov 842150450   ;;  %v6975_v21 = vsel %vm6925_vm5, %v3424_v44, %v3425_v17 }
  0x61   : > { %10721 = vst [vmem:[#allocation12_spill] sm:$0xff] %v6936_v37  ;;  %10722 = vst [vmem:[#allocation13_spill] sm:$0xff] %v6940_v38  ;;  %v2125_v4 = vunpack.c.l.s4 %v6588_v2  ;;  %v6589_v6 = vmov 1414812756   ;;  %v4446_v15 = vrot.slane %v4442_v47, 7  ;;  %v5093_v23 = vcombine.high %v5091_v52, %v5091_v52 }
  0x62   : > { %v2132_v14 = vunpack.c.l.s4 %v6589_v6  ;;  %v6590_v13 = vmov 1987475062   ;;  %10732 = vst [vmem:[#allocation23_spill] sm:$0xff] %v6975_v21  ;;  %v6989_v47 = vrot.slane %v5091_v52, %v6679_v8  ;;  %vm6019_vm6 = vcmask 1043456  }
  0x63   : > { %1980 = vbcast.lane.b32.xlu0 %v1970_v43, 272  ;;  %v6948_v43 = vsel %vm6925_vm5, %v3421_v26, %v3422_v27  ;;  %v2139_v19 = vunpack.c.l.s4 %v6590_v13  ;;  %v3940_v26 = vrot.slane %v3931_v54, 7  ;;  %v6992_v54 = vrot.slane %v5093_v23, %v6679_v8 }
  0x64   : > { %1995 = vbcast.lane.b32.xlu1 %v1985_v46, 272  ;;  %10724 = vst [vmem:[#allocation15_spill] sm:$0xff] %v6948_v43  ;;  %v4441_v46 = vrot.slane %v4427_v32, %v6679_v8  ;;  %v2119_v32 = vunpack.c.0.s8 %v2118_v0  ;;  %v2133_v36 = vunpack.c.0.s8 %v2132_v14  ;;  %10736 = vst [vmem:[#allocation27_spill] sm:$0xff] %v6989_v47  ;;  %v7044_v23 = vcombine.high %v6936_v37, %v6936_v37 }
  0x65   : > { %10737 = vst [vmem:[#allocation28_spill] sm:$0xff] %v6992_v54  ;;  %vm5994_vm7 = vcmask 195584   ;;  %vm6120_vm8 = vcmask 1046528  }
  0x66   : > { %v4443_v9 = vcombine.high %v4441_v46, %v4441_v46  ;;  %v4449_v49 = vrot.slane %v4441_v46, 7  ;;  %v2140_v46 = vunpack.c.0.s8 %v2139_v19  ;;  %v7023_v14 = vsub.s32 %v2133_v36, %v6669_v5  ;;  %10749 = vst [vmem:[#allocation40_spill] sm:$0xff] %v7044_v23  ;;  %v7203_v36 = vld [vmem:[%s10313_s2] ss:$0 sm:$0xff] }
  0x67   : > { %2002 = vbcast.lane.b32.xlu0 %v2000_v48, 256 }
  0x68   : > { %2006 = vbcast.lane.b32.xlu1 %v2000_v48, 264  ;;  %v4451_v17 = vrot.slane %v4449_v49, 2  ;;  %v4452_v44 = vrot.slane %v4443_v9, 7 }
  0x6a   : > { %v7031_v13 = vsel %vm6925_vm5, %v4451_v17, %v4452_v44  ;;  %v7033_v19 = vrot.slane %v4452_v44, 2 }
  0x6b   : > { %2017 = vbcast.lane.b32.xlu0 %v2015_v51, 256  ;;  %10746 = vst [vmem:[#allocation37_spill] sm:$0xff] %v7031_v13 }
  0x6c   : > { %2021 = vbcast.lane.b32.xlu1 %v2015_v51, 264  ;;  %10747 = vst [vmem:[#allocation38_spill] sm:$0xff] %v7033_v19 }
  0x6f   : > { %2010 = vbcast.lane.b32.xlu0 %v2000_v48, 272 }
  0x70   : > { %2025 = vbcast.lane.b32.xlu1 %v2015_v51, 272  ;;  %v6959_v51 = vrot.slane %v3922_v25, 7  ;;  %v3939_v25 = vrot.slane %v3937_v55, 2 }
  0x72   : > { %10728 = vst [vmem:[#allocation19_spill] sm:$0xff] %v6959_v51  ;;  %v7003_v2 = vsel %vm6925_vm5, %v3939_v25, %v3940_v26 }
  0x73   : > { %2032 = vbcast.lane.b32.xlu0 %v2030_v11, 256  ;;  %10740 = vst [vmem:[#allocation31_spill] sm:$0xff] %v7003_v2 }
  0x74   : > { %2036 = vbcast.lane.b32.xlu1 %v2030_v11, 264 }
  0x77   : > { %2047 = vbcast.lane.b32.xlu0 %v2045_v7, 256 }
  0x78   : > { %2051 = vbcast.lane.b32.xlu1 %v2045_v7, 264 }
  0x7b   : > { %2040 = vbcast.lane.b32.xlu0 %v2030_v11, 272 }
  0x7c   : > { %2055 = vbcast.lane.b32.xlu1 %v2045_v7, 272  ;;  %v3934_v7 = vrot.slane %v3930_v42, 7  ;;  %v4448_v42 = vrot.slane %v4446_v15, 2 }
  0x7e   : > { %v3936_v24 = vrot.slane %v3934_v7, 2  ;;  %v7027_v9 = vsel %vm6925_vm5, %v4448_v42, %v4449_v49  ;;  %v7048_v49 = vcombine.high %v6933_v35, %v6933_v35 }
  0x7f   : > { %2062 = vbcast.lane.b32.xlu0 %v2060_v56, 256  ;;  %10745 = vst [vmem:[#allocation36_spill] sm:$0xff] %v7027_v9 }
  0x80   : > { %2066 = vbcast.lane.b32.xlu1 %v2060_v56, 264  ;;  %v6999_v0 = vsel %vm6925_vm5, %v3936_v24, %v3937_v55  ;;  %10750 = vst [vmem:[#allocation41_spill] sm:$0xff] %v7048_v49  ;;  %v7052_v24 = vcombine.high %v6943_v40, %v6943_v40 }
  0x81   : > { %10739 = vst [vmem:[#allocation30_spill] sm:$0xff] %v6999_v0 }
  0x82   : > { %10751 = vst [vmem:[#allocation42_spill] sm:$0xff] %v7052_v24 }
  0x83   : > { %2077 = vbcast.lane.b32.xlu0 %v2075_v57, 256 }
  0x84   : > { %2081 = vbcast.lane.b32.xlu1 %v2075_v57, 264 }
  0x87   : > { %2070 = vbcast.lane.b32.xlu0 %v2060_v56, 272  ;;  %v3240_v56 = vrot.slane %v6875_v12, %v2029_v53  ;;  %v6978_v53 = vrot.slane %v3088_v39, %v6679_v8  ;;  %v3933_v12 = vrot.slane %v6959_v51, 2 }
  0x88   : > { %2085 = vbcast.lane.b32.xlu1 %v2075_v57, 272  ;;  %v6969_v57 = vrot.slane %v4434_v33, 7  ;;  %v2126_v33 = vunpack.c.0.s8 %v2125_v4  ;;  %v7005_v4 = vrot.slane %v3940_v26, 2  ;;  %v7064_v26 = vsel %vm6925_vm5, %v6957_v50, %v6903_v16 }
  0x89   : > { %10733 = vst [vmem:[#allocation24_spill] sm:$0xff] %v6978_v53  ;;  %v3242_v27 = vcombine.high %v3240_v56, %v3240_v56  ;;  %v6986_v39 = vsel %vm6925_vm5, %v3933_v12, %v3934_v7  ;;  %v6995_v61 = vrot.slane %v3240_v56, %v6679_v8  ;;  %v7017_v56 = vsub.s32 %v2119_v32, %v6669_v5 }
  0x8a   : > { %10730 = vst [vmem:[#allocation21_spill] sm:$0xff] %v6969_v57  ;;  %v4445_v28 = vrot.slane %v6969_v57, 2  ;;  %10735 = vst [vmem:[#allocation26_spill] sm:$0xff] %v6986_v39  ;;  %v7020_v55 = vsub.s32 %v2126_v33, %v6669_v5  ;;  %v7040_v12 = vcombine.high %v6922_v30, %v6922_v30 }
  0x8b   : > { %10738 = vst [vmem:[#allocation29_spill] sm:$0xff] %v6995_v61  ;;  %10741 = vst [vmem:[#allocation32_spill] sm:$0xff] %v7005_v4  ;;  %v7008_v7 = vrot.slane %v3242_v27, %v6679_v8  ;;  %v7070_v27 = vsel %vm6925_vm5, %v7005_v4, %v6959_v51  ;;  %v7213_v44 = vcombine.high %v6995_v61, %v6995_v61 }
  0x8c   : > { %v7014_v6 = vsel %vm6925_vm5, %v4445_v28, %v4446_v15  ;;  %v7036_v15 = vsub.s32 %v2140_v46, %v6669_v5  ;;  %10748 = vst [vmem:[#allocation39_spill] sm:$0xff] %v7040_v12  ;;  %v7058_v5 = vcombine.high %v6978_v53, %v6978_v53  ;;  %10754 = vst [vmem:[#allocation45_spill] sm:$0xff] %v7064_v26 }
  0x8d   : > { %10742 = vst [vmem:[#allocation33_spill] sm:$0xff] %v7008_v7  ;;  %10744 = vst [vmem:[#allocation35_spill] sm:$0xff] %v7014_v6  ;;  %v7074_v28 = vcombine.high %v6992_v54, %v6992_v54  ;;  %v7084_v42 = vcombine.high %v7008_v7, %v7008_v7 }
  0x8e   : > { %10753 = vst [vmem:[#allocation44_spill] sm:$0xff] %v7058_v5  ;;  %10755 = vst [vmem:[#allocation46_spill] sm:$0xff] %v7070_v27 }
  0x8f   : > { %10756 = vst [vmem:[#allocation47_spill] sm:$0xff] %v7074_v28  ;;  %10757 = vst [vmem:[#allocation48_spill] sm:$0xff] %v7084_v42 }
  0x90   : > { %10763 = vst [vmem:[#allocation54_spill] sm:$0xff] %v7213_v44  ;;  %v6354_v44 = vld [vmem:[%s10314_s3 + $0x8] ss:$0 sm:$0xff] }
  0xc1   : > { %v6870_v58 = vpop.permute.xlu0 %1942 }
  0xc2   : > { %v6877_v59 = vpop.permute.xlu1 %1957  ;;  %v10779_v42 = vrot.slane %v6870_v58, %v7023_v14 }
  0xc5   : > { %v6879_v60 = vpop.permute.xlu0 %1946 }
  0xc6   : > { %v6883_v62 = vpop.permute.xlu1 %1961 }
  0xc9   : > { %v6885_v63 = vpop.permute.xlu0 %1950 }
  0xca   : > { %v6887_v1 = vpop.permute.xlu1 %1972 }
  0xcb   : > { %10710 = vst [vmem:[#allocation3_spill] sm:$0xff] %v6887_v1 }
  0xcd   : > { %v6890_v3 = vpop.permute.xlu0 %1976 }
  0xce   : > { %v6901_v10 = vpop.permute.xlu1 %1965 }
  0xcf   : > { %10711 = vst [vmem:[#allocation4_spill] sm:$0xff] %v6901_v10 }
  0xd1   : > { %v6907_v18 = vpop.permute.xlu0 %1987 }
  0xd2   : > { %10713 = vst [vmem:[#allocation6_spill] sm:$0xff] %v6907_v18  ;;  %v6919_v29 = vpop.permute.xlu1 %1991 }
  0xd3   : > { %10715 = vst [vmem:[#allocation8_spill] sm:$0xff] %v6919_v29 }
  0xd5   : > { %v6930_v34 = vpop.permute.xlu0 %1980 }
  0xd6   : > { %10719 = vst [vmem:[#allocation10_spill] sm:$0xff] %v6930_v34  ;;  %v6964_v11 = vpop.permute.xlu1 %1995 }
  0xd7   : > { %10729 = vst [vmem:[#allocation20_spill] sm:$0xff] %v6964_v11 }
  0xd9   : > { %v6955_v48 = vpop.permute.xlu0 %2002 }
  0xda   : > { %10726 = vst [vmem:[#allocation17_spill] sm:$0xff] %v6955_v48  ;;  %v6982_v41 = vpop.permute.xlu1 %2006 }
  0xdb   : > { %10734 = vst [vmem:[#allocation25_spill] sm:$0xff] %v6982_v41 }
  0xdd   : > { %v6971_v20 = vpop.permute.xlu0 %2017 }
  0xde   : > { %10731 = vst [vmem:[#allocation22_spill] sm:$0xff] %v6971_v20  ;;  %v7054_v25 = vpop.permute.xlu1 %2021 }
  0xdf   : > { %10752 = vst [vmem:[#allocation43_spill] sm:$0xff] %v7054_v25 }
  0xe1   : > { %v7010_v52 = vpop.permute.xlu0 %2010 }
  0xe2   : > { %10743 = vst [vmem:[#allocation34_spill] sm:$0xff] %v7010_v52  ;;  %v7120_v6 = vpop.permute.xlu1 %2025  ;;  %v7247_v52 = vrot.slane %v6354_v44, %v6679_v8 }
  0xe3   : > { %10759 = vst [vmem:[#allocation50_spill] sm:$0xff] %v7120_v6 }
  0xe4   : > { %10765 = vst [vmem:[#allocation56_spill] sm:$0xff] %v7247_v52  ;;  %v7272_v29 = vcombine.high %v7247_v52, %v7247_v52 }
  0xe5   : > { %v7094_v33 = vpop.permute.xlu0 %2032 }
  0xe6   : > { %10758 = vst [vmem:[#allocation49_spill] sm:$0xff] %v7094_v33  ;;  %v7172_v11 = vpop.permute.xlu1 %2036  ;;  %10770 = vst [vmem:[#allocation61_spill] sm:$0xff] %v7272_v29 }
  0xe7   : > { %10761 = vst [vmem:[#allocation52_spill] sm:$0xff] %v7172_v11  ;;  %v5247_v11 = vcombine.high %v6354_v44, %v6354_v44 }
  0xe9   : > { %v7146_v7 = vpop.permute.xlu0 %2047 }
  0xea   : > { %10760 = vst [vmem:[#allocation51_spill] sm:$0xff] %v7146_v7  ;;  %v7231_v9 = vpop.permute.xlu1 %2051 }
  0xeb   : > { %10764 = vst [vmem:[#allocation55_spill] sm:$0xff] %v7231_v9 }
  0xed   : > { %v7198_v48 = vpop.permute.xlu0 %2040 }
  0xee   : > { %10762 = vst [vmem:[#allocation53_spill] sm:$0xff] %v7198_v48  ;;  %v7268_v48 = vrot.slane %v5247_v11, %v6679_v8  ;;  %v7274_v13 = vpop.permute.xlu1 %2055 }
  0xef   : > { %10771 = vst [vmem:[#allocation62_spill] sm:$0xff] %v7274_v13  ;;  %v10774_v13 = vrot.slane %v6877_v59, %v7017_v56 }
  0xf0   : > { %10769 = vst [vmem:[#allocation60_spill] sm:$0xff] %v7268_v48 }
  0xf1   : > { %v7252_v41 = vpop.permute.xlu0 %2062 }
  0xf2   : > { %10766 = vst [vmem:[#allocation57_spill] sm:$0xff] %v7252_v41 }
  0xfa   : > { %v6396_v17 = vpop.f32.mrb[0].mxu0 }
  0xfb   : > { %v1287_v6 = vadd.f32 %v6396_v17, %v7203_v36  ;;  %v1278_v33 = vpop.f32.mrb[1].mxu0 }
  0xfc   : > { %v1279_v54 = vadd.f32 %v7203_v36, %v1278_v33  ;;  %v6397_v7 = vpop.f32.mrb[2].mxu0  ;;  %v7258_v33 = vsel %vm6925_vm5, %v7033_v19, %v6969_v57 }
  0xfd   : > { %v1374_v46 = vmax.f32 %v1287_v6, 0.0  ;;  %v1290_v32 = vadd.f32 %v6397_v7, %v7203_v36  ;;  %v1281_v20 = vpop.f32.mrb[3].mxu0  ;;  %10767 = vst [vmem:[#allocation58_spill] sm:$0xff] %v7258_v33  ;;  %v7265_v7 = vcombine.high %v6989_v47, %v6989_v47  ;;  %v10772_v6 = vrot.slane %v6885_v63, %v7017_v56 }
  0xfe   : > { %v1372_v17 = vmax.f32 %v1279_v54, 0.0  ;;  %v1282_v9 = vadd.f32 %v7203_v36, %v1281_v20 }
  0xff   : > { %10768 = vst [vmem:[#allocation59_spill] sm:$0xff] %v7265_v7  ;;  %v1397_v44 = vmin.f32 %v1374_v46, 6.0  ;;  %v1375_v25 = vmax.f32 %v1290_v32, 0.0 }
 0x100   : > { %v1395_v33 = vmin.f32 %v1372_v17, 6.0  ;;  %v1373_v54 = vmax.f32 %v1282_v9, 0.0 }
 0x101   : > { %v1475_v7 = vcombine.high %v1397_v44, %v1397_v44  ;;  %v1482_v32 = vrot.slane %v1397_v44, %v6679_v8  ;;  %v7281_v46 = vmin.f32 %v1375_v25, 6.0 }
 0x102   : > { %v1441_v48 = vcombine.high %v1395_v33, %v1395_v33  ;;  %v1448_v17 = vrot.slane %v1395_v33, %v6679_v8  ;;  %v7286_v9 = vmin.f32 %v1373_v54, 6.0  ;;  %v10773_v33 = vrot.slane %v6870_v58, %v7017_v56 }
 0x103   : > { %v1489_v20 = vrot.slane %v1475_v7, %v6679_v8  ;;  %v1490_v52 = vcombine.high %v1482_v32, %v1482_v32  ;;  %v2845_v44 = vmul.f32 %v10772_v6, %v1482_v32  ;;  %v7302_v29 = vrot.slane %v7281_v46, %v6679_v8 }
 0x104   : > { %v1455_v11 = vrot.slane %v1441_v48, %v6679_v8  ;;  %v1456_v47 = vcombine.high %v1448_v17, %v1448_v17  ;;  %v2837_v54 = vmul.f32 %v10773_v33, %v1448_v17  ;;  %v10775_v6 = vrot.slane %v6877_v59, %v7020_v55 }
 0x105   : > { %v1491_v7 = vcombine.high %v1489_v20, %v1489_v20  ;;  %v2846_v63 = vmul.f32 %v10774_v13, %v1490_v52  ;;  %v7313_v48 = vmul.f32 %v6957_v50, %v2845_v44  ;;  %v7316_v25 = vmul.f32 %v7044_v23, %v2845_v44 }
 0x106   : > { %v7310_v32 = vmul.f32 %v10775_v6, %v1489_v20  ;;  %v1457_v17 = vcombine.high %v1455_v11, %v1455_v11  ;;  %v10778_v33 = vrot.slane %v6870_v58, %v7020_v55  ;;  %v2839_v52 = vmul.f32 %v10779_v42, %v1455_v11  ;;  %v7337_v1 = vpop.f32.mrb[4].mxu0 }
 0x107   : > { %10777 = vst [vmem:[#allocation64_spill] sm:$0xff] %v7316_v25  ;;  %v10780_v13 = vrot.slane %v6877_v59, %v7023_v14  ;;  %v7330_v6 = vmul.f32 %v6922_v30, %v2846_v63  ;;  %v3447_v25 = vmul.f32 %v6903_v16, %v2846_v63  ;;  %v3950_v11 = vmul.f32 %v6959_v51, %v2846_v63 }
 0x108   : > { %10776 = vst [vmem:[#allocation63_spill] sm:$0xff] %v7310_v32  ;;  %v2838_v41 = vmul.f32 %v10778_v33, %v1456_v47  ;;  %v7334_v44 = vmul.f32 %v7040_v12, %v7310_v32  ;;  %v3448_v47 = vmul.f32 %v6948_v43, %v7310_v32  ;;  %v7345_v33 = vpop.f32.mrb[5].mxu0  ;;  %v7361_v28 = vmul.f32 %v6912_v22, %v7310_v32 }
 0x109   : > { %v7327_v20 = vmul.f32 %v10780_v13, %v1491_v7  ;;  %10782 = vst [vmem:[#allocation66_spill] sm:$0xff] %v7330_v6  ;;  %v3951_v7 = vmul.f32 %v6986_v39, %v7310_v32  ;;  %v6331_v6 = vrot.slane %v3447_v25, 9  ;;  %v7357_v42 = vpop.f32.mrb[6].mxu0  ;;  %v6338_v61 = vrot.slane %v3950_v11, 9 }
 0x10a   : > { %10783 = vst [vmem:[#allocation67_spill] sm:$0xff] %v7334_v44  ;;  %v3609_v51 = vrot.slane %v3448_v47, 7  ;;  %10786 = vst [vmem:[#allocation70_spill] sm:$0xff] %v7361_v28  ;;  %v7363_v19 = vpop.f32.mrb[7].mxu0  ;;  %v10788_v50 = vrot.slane %v6870_v58, %v7036_v15  ;;  %v2956_v58 = vmul.f32 %v7040_v12, %v2838_v41 }
 0x10b   : > { %10781 = vst [vmem:[#allocation65_spill] sm:$0xff] %v7327_v20  ;;  %v7349_v13 = vmul.f32 %v6933_v35, %v7327_v20  ;;  %v3449_v44 = vmul.f32 %v6975_v21, %v7327_v20  ;;  %v7355_v57 = vmul.f32 %v6999_v0, %v7327_v20  ;;  %v4096_v10 = vrot.slane %v3951_v7, 7 }
 0x10c   : > { %v7368_v25 = vmul.f32 %v6940_v38, %v7327_v20  ;;  %v2840_v18 = vmul.f32 %v10788_v50, %v1457_v17  ;;  %v7375_v47 = vsel %vm6925_vm5, %v6331_v6, %v3609_v51  ;;  %v3611_v11 = vrot.slane %v3609_v51, 2 }
 0x10d   : > { %10784 = vst [vmem:[#allocation68_spill] sm:$0xff] %v7349_v13  ;;  %10785 = vst [vmem:[#allocation69_spill] sm:$0xff] %v7355_v57  ;;  %v3612_v13 = vrot.slane %v3449_v44, 7  ;;  %v7379_v7 = vsel %vm6925_vm5, %v6338_v61, %v4096_v10  ;;  %v7381_v44 = vrot.slane %v4096_v10, 2  ;;  %v10792_v28 = vrot.slane %v7355_v57, 7 }
 0x10e   : > { %10787 = vst [vmem:[#allocation71_spill] sm:$0xff] %v7368_v25  ;;  %10789 = vst [vmem:[#allocation72_spill] sm:$0xff] %v7375_v47  ;;  %v2955_v25 = vmul.f32 %v6922_v30, %v2837_v54  ;;  %v2957_v51 = vmul.f32 %v6933_v35, %v2839_v52  ;;  %v2958_v61 = vmul.f32 %v7048_v49, %v2840_v18 }
 0x10f   : > { %10790 = vst [vmem:[#allocation73_spill] sm:$0xff] %v7379_v7  ;;  %10791 = vst [vmem:[#allocation74_spill] sm:$0xff] %v7381_v44  ;;  %v3614_v4 = vrot.slane %v3612_v13, 2  ;;  %v7385_v34 = vrot.slane %v10792_v28, 2  ;;  %v7391_v50 = vsel %vm6925_vm5, %v3611_v11, %v3612_v13  ;;  %v3109_v10 = vmul.f32 %v6943_v40, %v2846_v63  ;;  %v7409_v63 = vpop.f32.mrb[8].mxu0 }
 0x110   : > { %10794 = vst [vmem:[#allocation76_spill] sm:$0xff] %v7391_v50  ;;  %v3110_v17 = vmul.f32 %v7052_v24, %v7310_v32  ;;  %v3111_v28 = vmul.f32 %v6978_v53, %v7327_v20  ;;  %v3438_v6 = vmul.f32 %v6903_v16, %v2837_v54  ;;  %v3439_v7 = vmul.f32 %v6948_v43, %v2838_v41  ;;  %v7415_v54 = vpop.f32.mrb[9].mxu0 }
 0x111   : > { %10793 = vst [vmem:[#allocation75_spill] sm:$0xff] %v7385_v34  ;;  %v7402_v34 = vadd.f32 %v3109_v10, %v2955_v25  ;;  %v3440_v13 = vmul.f32 %v6975_v21, %v2839_v52  ;;  %v3441_v11 = vmul.f32 %v6952_v45, %v2840_v18  ;;  %v7407_v50 = vmul.f32 %v6912_v22, %v2838_v41  ;;  %v7423_v41 = vpop.f32.mrb[10].mxu0 }
 0x112   : > { %v7411_v44 = vadd.f32 %v3110_v17, %v2956_v58  ;;  %v7413_v32 = vadd.f32 %v3111_v28, %v2957_v51  ;;  %v6330_v20 = vrot.slane %v3438_v6, 9  ;;  %v3584_v57 = vrot.slane %v3439_v7, 7 }
 0x113   : > { %10795 = vst [vmem:[#allocation77_spill] sm:$0xff] %v7402_v34  ;;  %10796 = vst [vmem:[#allocation78_spill] sm:$0xff] %v7407_v50  ;;  %v3587_v47 = vrot.slane %v3440_v13, 7  ;;  %v3590_v25 = vrot.slane %v3441_v11, 7  ;;  %v7418_v10 = vmul.f32 %v6940_v38, %v2839_v52  ;;  %v7421_v34 = vmul.f32 %v6936_v37, %v2840_v18  ;;  %v7435_v52 = vpop.f32.mrb[11].mxu0 }
 0x114   : > { %10797 = vst [vmem:[#allocation79_spill] sm:$0xff] %v7411_v44  ;;  %10798 = vst [vmem:[#allocation80_spill] sm:$0xff] %v7413_v32  ;;  %v7427_v58 = vsel %vm6925_vm5, %v6330_v20, %v3584_v57  ;;  %v3586_v51 = vrot.slane %v3584_v57, 2  ;;  %v10802_v7 = vcombine.high %v7281_v46, %v7281_v46  ;;  %v1507_v28 = vcombine.high %v7302_v29, %v7302_v29 }
 0x115   : > { %10799 = vst [vmem:[#allocation81_spill] sm:$0xff] %v7418_v10  ;;  %10800 = vst [vmem:[#allocation82_spill] sm:$0xff] %v7421_v34  ;;  %v3589_v6 = vrot.slane %v3587_v47, 2  ;;  %v7437_v18 = vrot.slane %v3590_v25, 2  ;;  %v10803_v13 = vrot.slane %v6877_v59, %v7036_v15  ;;  %v1458_v57 = vcombine.high %v7286_v9, %v7286_v9 }
 0x116   : > { %10801 = vst [vmem:[#allocation83_spill] sm:$0xff] %v7427_v58  ;;  %v1506_v17 = vrot.slane %v10802_v7, %v6679_v8  ;;  %v7449_v46 = vsel %vm6925_vm5, %v3586_v51, %v3587_v47  ;;  %v10806_v7 = vrot.slane %v6883_v62, %v7017_v56  ;;  %v10808_v10 = vrot.slane %v6883_v62, %v7020_v55 }
 0x117   : > { %v7443_v20 = vmul.f32 %v10803_v13, %v7302_v29  ;;  %10805 = vst [vmem:[#allocation85_spill] sm:$0xff] %v7449_v46  ;;  %v7463_v59 = vsel %vm6925_vm5, %v3589_v6, %v3590_v25 }
 0x118   : > { %v1508_v11 = vcombine.high %v1506_v17, %v1506_v17  ;;  %v7454_v34 = vmul.f32 %v10806_v7, %v1507_v28  ;;  %v7459_v50 = vmul.f32 %v10808_v10, %v1506_v17  ;;  %10810 = vst [vmem:[#allocation88_spill] sm:$0xff] %v7463_v59  ;;  %v10812_v28 = vrot.slane %v6883_v62, %v7023_v14 }
 0x119   : > { %10804 = vst [vmem:[#allocation84_spill] sm:$0xff] %v7443_v20  ;;  %v7467_v29 = vmul.f32 %v7048_v49, %v7443_v20  ;;  %v3112_v47 = vmul.f32 %v7058_v5, %v7443_v20  ;;  %v3450_v51 = vmul.f32 %v6952_v45, %v7443_v20  ;;  %v7519_v32 = vpop.f32.mrb[12].mxu0 }
 0x11a   : > { %10807 = vst [vmem:[#allocation86_spill] sm:$0xff] %v7454_v34  ;;  %10809 = vst [vmem:[#allocation87_spill] sm:$0xff] %v7459_v50  ;;  %v7476_v13 = vmul.f32 %v10812_v28, %v1508_v11  ;;  %v7480_v10 = vmul.f32 %v6922_v30, %v7454_v34  ;;  %v7484_v25 = vmul.f32 %v7040_v12, %v7459_v50  ;;  %v7527_v44 = vpop.f32.mrb[13].mxu0 }
 0x11b   : > { %10811 = vst [vmem:[#allocation89_spill] sm:$0xff] %v7467_v29  ;;  %v3451_v17 = vmul.f32 %v7064_v26, %v7454_v34  ;;  %v7488_v6 = vadd.f32 %v3112_v47, %v2958_v61  ;;  %v3452_v7 = vmul.f32 %v6948_v43, %v7459_v50  ;;  %v3615_v29 = vrot.slane %v3450_v51, 7  ;;  %10823 = vst [vmem:[#allocation100_spill] sm:$0xff] %v7519_v32 }
 0x11c   : > { %10813 = vst [vmem:[#allocation90_spill] sm:$0xff] %v7476_v13  ;;  %10814 = vst [vmem:[#allocation91_spill] sm:$0xff] %v7480_v10  ;;  %v7494_v11 = vmul.f32 %v7003_v2, %v7443_v20  ;;  %v7498_v28 = vmul.f32 %v6933_v35, %v7476_v13  ;;  %v7504_v61 = vmul.f32 %v7070_v27, %v7454_v34 }
 0x11d   : > { %10815 = vst [vmem:[#allocation92_spill] sm:$0xff] %v7484_v25  ;;  %10816 = vst [vmem:[#allocation93_spill] sm:$0xff] %v7488_v6  ;;  %v3453_v25 = vmul.f32 %v6975_v21, %v7476_v13  ;;  %v3618_v10 = vrot.slane %v3451_v17, 7  ;;  %v7508_v47 = vsel %vm6925_vm5, %v3614_v4, %v3615_v29  ;;  %v3617_v51 = vrot.slane %v3615_v29, 2 }
 0x11e   : > { %10817 = vst [vmem:[#allocation94_spill] sm:$0xff] %v7494_v11  ;;  %10818 = vst [vmem:[#allocation95_spill] sm:$0xff] %v7498_v28  ;;  %v3621_v59 = vrot.slane %v3452_v7, 7  ;;  %v7512_v46 = vmul.f32 %v6986_v39, %v7459_v50  ;;  %v7516_v6 = vmul.f32 %v6999_v0, %v7476_v13  ;;  %v10387_v17 = vrot.slane %v7494_v11, 7 }
 0x11f   : > { %10819 = vst [vmem:[#allocation96_spill] sm:$0xff] %v7504_v61  ;;  %10820 = vst [vmem:[#allocation97_spill] sm:$0xff] %v7508_v47  ;;  %v3620_v58 = vrot.slane %v3618_v10, 2  ;;  %v3624_v28 = vrot.slane %v3453_v25, 7  ;;  %v7523_v4 = vsel %vm6925_vm5, %v3617_v51, %v3618_v10  ;;  %v7540_v51 = vpop.f32.mrb[14].mxu0  ;;  %v10830_v47 = vrot.slane %v7504_v61, 7 }
 0x120   : > { %10821 = vst [vmem:[#allocation98_spill] sm:$0xff] %v7512_v46  ;;  %10822 = vst [vmem:[#allocation99_spill] sm:$0xff] %v7516_v6  ;;  %v3623_v29 = vrot.slane %v3621_v59, 2  ;;  %v7537_v0 = vrot.slane %v10387_v17, 2  ;;  %v10388_v10 = vrot.slane %v7516_v6, 7  ;;  %v7556_v17 = vmul.f32 %v6936_v37, %v7443_v20  ;;  %v7591_v20 = vpop.f32.mrb[0].mxu1 }
 0x121   : > { %10824 = vst [vmem:[#allocation101_spill] sm:$0xff] %v7523_v4  ;;  %10825 = vst [vmem:[#allocation102_spill] sm:$0xff] %v7527_v44  ;;  %v7531_v25 = vsel %vm6925_vm5, %v3620_v58, %v3621_v59  ;;  %v7533_v27 = vrot.slane %v3624_v28, 2  ;;  %v7548_v4 = vrot.slane %v10830_v47, 2  ;;  %v10832_v58 = vrot.slane %v7512_v46, 7  ;;  %v7599_v6 = vpop.f32.mrb[1].mxu1 }
 0x122   : > { %10826 = vst [vmem:[#allocation103_spill] sm:$0xff] %v7531_v25  ;;  %10827 = vst [vmem:[#allocation104_spill] sm:$0xff] %v7537_v0  ;;  %v7544_v7 = vsel %vm6925_vm5, %v3623_v29, %v3624_v28  ;;  %v7558_v25 = vpop.f32.mrb[15].mxu0  ;;  %v7562_v0 = vrot.slane %v10388_v10, 2  ;;  %v7566_v28 = vmul.f32 %v7044_v23, %v7454_v34  ;;  %v7570_v47 = vmul.f32 %v6912_v22, %v7459_v50  ;;  %v6417_v46 = vpop.f32.mrb[2].mxu1 }
 0x123   : > { %10828 = vst [vmem:[#allocation105_spill] sm:$0xff] %v7540_v51  ;;  %10829 = vst [vmem:[#allocation106_spill] sm:$0xff] %v7544_v7  ;;  %v7552_v59 = vrot.slane %v10832_v58, 2  ;;  %v7574_v29 = vmul.f32 %v6940_v38, %v7476_v13  ;;  %v1465_v58 = vrot.slane %v7286_v9, %v6679_v8  ;;  %v3113_v10 = vmul.f32 %v6943_v40, %v7454_v34  ;;  %v10897_v51 = vld [vmem:[#allocation77_spill] sm:$0xff] }
 0x124   : > { %10831 = vst [vmem:[#allocation107_spill] sm:$0xff] %v7548_v4  ;;  %10834 = vst [vmem:[#allocation109_spill] sm:$0xff] %v7556_v17  ;;  %v1472_v17 = vrot.slane %v1458_v57, %v6679_v8  ;;  %v3114_v7 = vmul.f32 %v7052_v24, %v7459_v50  ;;  %v1306_v9 = vadd.f32 %v7357_v42, %v7203_v36 }
 0x125   : > { %10833 = vst [vmem:[#allocation108_spill] sm:$0xff] %v7552_v59  ;;  %10835 = vst [vmem:[#allocation110_spill] sm:$0xff] %v7558_v25  ;;  %v1473_v57 = vcombine.high %v1465_v58, %v1465_v58  ;;  %v10841_v34 = vrot.slane %v6879_v60, %v7017_v56  ;;  %v7603_v42 = vadd.f32 %v7203_v36, %v7363_v19  ;;  %v10894_v25 = vld [vmem:[#allocation48_spill] sm:$0xff] }
 0x126   : > { %10836 = vst [vmem:[#allocation111_spill] sm:$0xff] %v7562_v0  ;;  %10837 = vst [vmem:[#allocation112_spill] sm:$0xff] %v7566_v28  ;;  %v3115_v28 = vmul.f32 %v6978_v53, %v7476_v13  ;;  %v1474_v0 = vcombine.high %v1472_v17, %v1472_v17  ;;  %v10842_v13 = vrot.slane %v6879_v60, %v7023_v14 }
 0x127   : > { %10838 = vst [vmem:[#allocation113_spill] sm:$0xff] %v7570_v47  ;;  %10839 = vst [vmem:[#allocation114_spill] sm:$0xff] %v7574_v29  ;;  %v1303_v47 = vadd.f32 %v7337_v1, %v7203_v36  ;;  %v1295_v29 = vadd.f32 %v7203_v36, %v7345_v33  ;;  %v2841_v50 = vmul.f32 %v10841_v34, %v1465_v58  ;;  %v1379_v33 = vmax.f32 %v1306_v9, 0.0 }
 0x128   : > { %10840 = vst [vmem:[#allocation115_spill] sm:$0xff] %v7591_v20  ;;  %v2843_v59 = vmul.f32 %v10842_v13, %v1472_v17  ;;  %10843 = vst [vmem:[#allocation116_spill] sm:$0xff] %v7599_v6  ;;  %v10844_v61 = vrot.slane %v6879_v60, %v7020_v55  ;;  %v10845_v34 = vrot.slane %v6879_v60, %v7036_v15 }
 0x129   : > { %v1378_v1 = vmax.f32 %v1303_v47, 0.0  ;;  %v1376_v4 = vmax.f32 %v1295_v29, 0.0  ;;  %v2959_v13 = vmul.f32 %v6922_v30, %v2841_v50  ;;  %v7613_v47 = vpop.f32.mrb[3].mxu1  ;;  %v3442_v29 = vmul.f32 %v7064_v26, %v2841_v50 }
 0x12a   : > { %v2842_v11 = vmul.f32 %v10844_v61, %v1473_v57  ;;  %v2844_v58 = vmul.f32 %v10845_v34, %v1474_v0  ;;  %v2961_v17 = vmul.f32 %v6933_v35, %v2843_v59  ;;  %10846 = vst [vmem:[#allocation117_spill] sm:$0xff] %v7613_v47  ;;  %v3444_v19 = vmul.f32 %v6975_v21, %v2843_v59  ;;  %v10889_v47 = vld [vmem:[#allocation3_spill] sm:$0xff] }
 0x12b   : > { %v7618_v46 = vmul.f32 %v7044_v23, %v2841_v50  ;;  %v7621_v9 = vmul.f32 %v6940_v38, %v2843_v59  ;;  %v7627_v0 = vadd.f32 %v3113_v10, %v2959_v13  ;;  %v3593_v21 = vrot.slane %v3442_v29, 7 }
 0x12c   : > { %v2960_v61 = vmul.f32 %v7040_v12, %v2842_v11  ;;  %v7625_v60 = vmul.f32 %v7048_v49, %v2844_v58  ;;  %v7629_v57 = vadd.f32 %v3115_v28, %v2961_v17  ;;  %v3443_v34 = vmul.f32 %v6948_v43, %v2842_v11 }
 0x12d   : > { %10847 = vst [vmem:[#allocation118_spill] sm:$0xff] %v7618_v46  ;;  %10848 = vst [vmem:[#allocation119_spill] sm:$0xff] %v7621_v9  ;;  %v3445_v26 = vmul.f32 %v6952_v45, %v2844_v58  ;;  %v3599_v53 = vrot.slane %v3444_v19, 7  ;;  %v7636_v59 = vmul.f32 %v6912_v22, %v2842_v11  ;;  %v7639_v9 = vmul.f32 %v6936_v37, %v2844_v58  ;;  %v10883_v22 = vld [vmem:[#allocation29_spill] sm:$0xff] }
 0x12e   : > { %10849 = vst [vmem:[#allocation120_spill] sm:$0xff] %v7627_v0  ;;  %10850 = vst [vmem:[#allocation121_spill] sm:$0xff] %v7629_v57  ;;  %v7633_v50 = vadd.f32 %v3114_v7, %v2960_v61  ;;  %v1401_v46 = vmin.f32 %v1378_v1, 6.0  ;;  %v7644_v10 = vsel %vm6925_vm5, %v7437_v18, %v3593_v21  ;;  %v3595_v28 = vrot.slane %v3593_v21, 2  ;;  %v7669_v1 = vpop.f32.mrb[16].mxu0 }
 0x12f   : > { %10852 = vst [vmem:[#allocation123_spill] sm:$0xff] %v7636_v59  ;;  %10853 = vst [vmem:[#allocation124_spill] sm:$0xff] %v7639_v9  ;;  %v3596_v13 = vrot.slane %v3443_v34, 7  ;;  %v3601_v17 = vrot.slane %v3599_v53, 2  ;;  %v3602_v57 = vrot.slane %v3445_v26, 7  ;;  %v1399_v19 = vmin.f32 %v1376_v4, 6.0 }
 0x130   : > { %10851 = vst [vmem:[#allocation122_spill] sm:$0xff] %v7633_v50  ;;  %10854 = vst [vmem:[#allocation125_spill] sm:$0xff] %v7644_v10  ;;  %v1543_v29 = vcombine.high %v1401_v46, %v1401_v46  ;;  %v1550_v7 = vrot.slane %v1401_v46, %v6679_v8  ;;  %v7651_v61 = vmin.f32 %v1379_v33, 6.0  ;;  %v10858_v46 = vrot.slane %v6890_v3, %v7023_v14  ;;  %v10864_v9 = vld [vmem:[#allocation10_spill] sm:$0xff]  ;;  %v7685_v59 = vpop.f32.mrb[17].mxu0  ;;  %v10881_v50 = vld [vmem:[#allocation4_spill] sm:$0xff] }
 0x131   : > { %v7649_v11 = vsel %vm6925_vm5, %v3595_v28, %v3596_v13  ;;  %v3598_v58 = vrot.slane %v3596_v13, 2  ;;  %v7656_v18 = vsel %vm6925_vm5, %v3601_v17, %v3602_v57  ;;  %v3604_v21 = vrot.slane %v3602_v57, 2  ;;  %10860 = vst [vmem:[#allocation130_spill] sm:$0xff] %v7669_v1  ;;  %10867 = vst [vmem:[#allocation132_spill] sm:$0xff] %v7685_v59 }
 0x132   : > { %10855 = vst [vmem:[#allocation126_spill] sm:$0xff] %v7649_v11  ;;  %10856 = vst [vmem:[#allocation127_spill] sm:$0xff] %v7656_v18  ;;  %v1557_v26 = vrot.slane %v1543_v29, %v6679_v8  ;;  %v1558_v34 = vcombine.high %v1550_v7, %v1550_v7  ;;  %v7666_v28 = vmul.f32 %v10858_v46, %v1550_v7  ;;  %v10861_v17 = vrot.slane %v7313_v48, 7 }
 0x133   : > { %v7661_v4 = vsel %vm6925_vm5, %v3598_v58, %v3599_v53  ;;  %v1509_v33 = vcombine.high %v1399_v19, %v1399_v19  ;;  %v1516_v13 = vrot.slane %v1399_v19, %v6679_v8  ;;  %v10862_v53 = vrot.slane %v6890_v3, %v7036_v15 }
 0x134   : > { %10857 = vst [vmem:[#allocation128_spill] sm:$0xff] %v7661_v4  ;;  %10859 = vst [vmem:[#allocation129_spill] sm:$0xff] %v7666_v28  ;;  %v3606_v57 = vsel %vm6925_vm5, %v3604_v21, %v10861_v17  ;;  %v1559_v29 = vcombine.high %v1557_v26, %v1557_v26  ;;  %v10865_v7 = vrot.slane %v10864_v9, %v7017_v56  ;;  %v10878_v17 = vld [vmem:[#allocation38_spill] sm:$0xff] }
 0x135   : > { %v7678_v58 = vmul.f32 %v10862_v53, %v1558_v34  ;;  %v1523_v19 = vrot.slane %v1509_v33, %v6679_v8  ;;  %v1524_v18 = vcombine.high %v1516_v13, %v1516_v13  ;;  %v10868_v48 = vrot.slane %v6883_v62, %v7036_v15  ;;  %v7695_v34 = vpop.f32.mrb[18].mxu0  ;;  %v10871_v53 = vld [vmem:[#allocation6_spill] sm:$0xff]  ;;  %v10876_v62 = vld [vmem:[#allocation32_spill] sm:$0xff] }
 0x136   : > { %v7683_v46 = vmul.f32 %v10865_v7, %v1557_v26  ;;  %10870 = vst [vmem:[#allocation134_spill] sm:$0xff] %v7695_v34  ;;  %v10872_v9 = vrot.slane %v10871_v53, %v7017_v56  ;;  %v10873_v7 = vld [vmem:[#allocation18_spill] sm:$0xff]  ;;  %v10882_v0 = vrot.slane %v10881_v50, %v7017_v56  ;;  %v10890_v1 = vrot.slane %v10889_v47, %v7017_v56 }
 0x137   : > { %10863 = vst [vmem:[#allocation131_spill] sm:$0xff] %v7678_v58  ;;  %v7691_v21 = vmul.f32 %v10868_v48, %v1516_v13  ;;  %v7708_v33 = vmul.f32 %v7003_v2, %v7678_v58  ;;  %v7712_v48 = vpop.f32.mrb[19].mxu0  ;;  %v1525_v10 = vcombine.high %v1523_v19, %v1523_v19  ;;  %v10891_v12 = vrot.slane %v10889_v47, %v7020_v55 }
 0x138   : > { %10866 = vst [vmem:[#allocation10_spill] sm:$0xff] %v7683_v46  ;;  %v7700_v26 = vmul.f32 %v10872_v9, %v1559_v29  ;;  %v7704_v4 = vmul.f32 %v10873_v7, %v7683_v46  ;;  %v3967_v13 = vmul.f32 %v10876_v62, %v7683_v46  ;;  %10877 = vst [vmem:[#allocation136_spill] sm:$0xff] %v7712_v48  ;;  %v10879_v29 = vld [vmem:[#allocation47_spill] sm:$0xff] }
 0x139   : > { %10869 = vst [vmem:[#allocation133_spill] sm:$0xff] %v7691_v21  ;;  %10875 = vst [vmem:[#allocation135_spill] sm:$0xff] %v7708_v33  ;;  %v7716_v11 = vmul.f32 %v10878_v17, %v7683_v46  ;;  %v7720_v9 = vmul.f32 %v10879_v29, %v7683_v46  ;;  %v2854_v28 = vmul.f32 %v10882_v0, %v1524_v18  ;;  %v10417_v50 = vrot.slane %v7708_v33, 7  ;;  %v10887_v18 = vld [vmem:[#allocation21_spill] sm:$0xff] }
 0x13a   : > { %10874 = vst [vmem:[#allocation6_spill] sm:$0xff] %v7704_v4  ;;  %v7727_v38 = vmul.f32 %v6943_v40, %v7700_v26  ;;  %v3271_v24 = vmul.f32 %v10883_v22, %v7700_v26  ;;  %v7733_v35 = vmul.f32 %v6903_v16, %v7700_v26  ;;  %v4142_v0 = vrot.slane %v3967_v13, 7 }
 0x13b   : > { %10880 = vst [vmem:[#allocation137_spill] sm:$0xff] %v7720_v9  ;;  %v10885_v9 = vld [vmem:[#allocation19_spill] sm:$0xff]  ;;  %v7743_v48 = vmul.f32 %v10887_v18, %v7700_v26  ;;  %v2855_v6 = vmul.f32 %v10890_v1, %v1523_v19  ;;  %v7753_v4 = vmul.f32 %v10891_v12, %v1525_v10  ;;  %v4141_v13 = vrot.slane %v10417_v50, 2 }
 0x13c   : > { %10884 = vst [vmem:[#allocation4_spill] sm:$0xff] %v7733_v35  ;;  %v7738_v46 = vmul.f32 %v10885_v9, %v7700_v26  ;;  %v2970_v34 = vmul.f32 %v7048_v49, %v7691_v21  ;;  %v3116_v1 = vmul.f32 %v7058_v5, %v7691_v21  ;;  %v3124_v12 = vmul.f32 %v7058_v5, %v7678_v58 }
 0x13d   : > { %10888 = vst [vmem:[#allocation21_spill] sm:$0xff] %v7743_v48  ;;  %10892 = vst [vmem:[#allocation3_spill] sm:$0xff] %v7753_v4  ;;  %v7762_v59 = vmul.f32 %v6922_v30, %v2855_v6  ;;  %v3117_v19 = vmul.f32 %v6943_v40, %v2855_v6  ;;  %v7771_v10 = vsel %vm6925_vm5, %v4141_v13, %v4142_v0  ;;  %v10895_v48 = vld [vmem:[#allocation66_spill] sm:$0xff] }
 0x13e   : > { %10886 = vst [vmem:[#allocation19_spill] sm:$0xff] %v7738_v46  ;;  %10893 = vst [vmem:[#allocation138_spill] sm:$0xff] %v7771_v10  ;;  %v3263_v20 = vmul.f32 %v10883_v22, %v2855_v6  ;;  %v3270_v50 = vmul.f32 %v10894_v25, %v7678_v58  ;;  %v3454_v35 = vmul.f32 %v6952_v45, %v7691_v21 }
 0x13f   : > { %v3180_v46 = vadd.f32 %v3116_v1, %v7625_v60  ;;  %v3181_v33 = vadd.f32 %v3117_v19, %v10895_v48  ;;  %v7780_v49 = vadd.f32 %v3124_v12, %v2970_v34  ;;  %v3455_v5 = vmul.f32 %v10873_v7, %v2854_v28  ;;  %v10901_v19 = vld [vmem:[#allocation72_spill] sm:$0xff] }
 0x140   : > { %v7784_v44 = vadd.f32 %v3263_v20, %v10897_v51  ;;  %v7787_v0 = vmul.f32 %v6903_v16, %v2855_v6  ;;  %v3627_v13 = vrot.slane %v3454_v35, 7  ;;  %v7791_v10 = vmul.f32 %v7003_v2, %v7691_v21 }
 0x141   : > { %10896 = vst [vmem:[#allocation66_spill] sm:$0xff] %v7780_v49  ;;  %v3334_v25 = vadd.f32 %v3270_v50, %v3180_v46  ;;  %v3335_v32 = vadd.f32 %v3271_v24, %v3181_v33  ;;  %v3630_v60 = vrot.slane %v3455_v5, 7  ;;  %v3958_v48 = vmul.f32 %v10876_v62, %v2854_v28 }
 0x142   : > { %10898 = vst [vmem:[#allocation77_spill] sm:$0xff] %v7784_v44  ;;  %10899 = vst [vmem:[#allocation139_spill] sm:$0xff] %v7791_v10  ;;  %v7797_v34 = vsel %vm6925_vm5, %v7533_v27, %v3627_v13  ;;  %v3629_v20 = vrot.slane %v3627_v13, 2  ;;  %v3959_v1 = vmul.f32 %v10885_v9, %v2855_v6  ;;  %v7806_v24 = vmul.f32 %v6986_v39, %v7753_v4 }
 0x143   : > { %10900 = vst [vmem:[#allocation140_spill] sm:$0xff] %v7797_v34  ;;  %v3853_v35 = vadd.f32 %v3606_v57, %v3334_v25  ;;  %v7802_v12 = vadd.f32 %v10901_v19, %v3335_v32  ;;  %v10426_v5 = vrot.slane %v7791_v10, 7  ;;  %v4117_v27 = vrot.slane %v3958_v48, 7  ;;  %v10906_v57 = vld [vmem:[#allocation37_spill] sm:$0xff] }
 0x144   : > { %10903 = vst [vmem:[#allocation141_spill] sm:$0xff] %v7806_v24  ;;  %v7811_v46 = vsel %vm6925_vm5, %v3629_v20, %v3630_v60  ;;  %v6339_v33 = vrot.slane %v3959_v1, 9  ;;  %v7814_v50 = vmul.f32 %v10887_v18, %v2855_v6  ;;  %v10427_v32 = vrot.slane %v7806_v24, 7 }
 0x145   : > { %10902 = vst [vmem:[#allocation72_spill] sm:$0xff] %v7802_v12  ;;  %10904 = vst [vmem:[#allocation142_spill] sm:$0xff] %v7811_v46  ;;  %v4116_v25 = vrot.slane %v10426_v5, 2  ;;  %v7821_v13 = vmul.f32 %v10906_v57, %v7678_v58  ;;  %v7825_v19 = vmul.f32 %v6936_v37, %v7691_v21  ;;  %v7829_v48 = vmul.f32 %v7044_v23, %v2854_v28 }
 0x146   : > { %10905 = vst [vmem:[#allocation143_spill] sm:$0xff] %v7814_v50  ;;  %v5121_v6 = vmul.f32 %v10879_v29, %v2854_v28  ;;  %v1567_v20 = vrot.slane %v7651_v61, %v6679_v8  ;;  %v7840_v5 = vsel %vm6925_vm5, %v6339_v33, %v10427_v32  ;;  %v10911_v60 = vcombine.high %v7651_v61, %v7651_v61  ;;  %v11048_v50 = vld [vmem:[#allocation134_spill] sm:$0xff] }
 0x147   : > { %10907 = vst [vmem:[#allocation144_spill] sm:$0xff] %v7821_v13  ;;  %10908 = vst [vmem:[#allocation145_spill] sm:$0xff] %v7825_v19  ;;  %v4118_v1 = vsel %vm6925_vm5, %v4116_v25, %v4117_v27  ;;  %v10429_v51 = vrot.slane %v7821_v13, 7  ;;  %v10912_v12 = vrot.slane %v10871_v53, %v7020_v55  ;;  %v10914_v27 = vmax.f32 %v7603_v42, 0.0 }
 0x148   : > { %10909 = vst [vmem:[#allocation146_spill] sm:$0xff] %v7829_v48  ;;  %10910 = vst [vmem:[#allocation147_spill] sm:$0xff] %v7840_v5  ;;  %v1574_v48 = vrot.slane %v10911_v60, %v6679_v8  ;;  %v4365_v28 = vadd.f32 %v4118_v1, %v3853_v35  ;;  %v1575_v19 = vcombine.high %v1567_v20, %v1567_v20  ;;  %v10919_v1 = vrot.slane %v7716_v11, 7 }
 0x149   : > { %v7850_v46 = vmul.f32 %v10912_v12, %v1567_v20  ;;  %v1400_v25 = vmin.f32 %v10914_v27, 6.0  ;;  %v4628_v33 = vrot.slane %v10429_v51, 2  ;;  %v10915_v5 = vrot.slane %v10871_v53, %v7036_v15 }
 0x14a   : > { %v1576_v32 = vcombine.high %v1574_v48, %v1574_v48  ;;  %v1319_v61 = vadd.f32 %v7409_v63, %v7203_v36  ;;  %v10917_v35 = vrot.slane %v10871_v53, %v7023_v14  ;;  %v1311_v20 = vadd.f32 %v7203_v36, %v7415_v54 }
 0x14b   : > { %10913 = vst [vmem:[#allocation148_spill] sm:$0xff] %v7850_v46  ;;  %v7859_v24 = vmul.f32 %v10915_v5, %v1574_v48  ;;  %v1526_v60 = vcombine.high %v1400_v25, %v1400_v25  ;;  %v1533_v42 = vrot.slane %v1400_v25, %v6679_v8  ;;  %v4630_v5 = vsel %vm6925_vm5, %v4628_v33, %v10919_v1  ;;  %v10920_v48 = vld [vmem:[#allocation8_spill] sm:$0xff] }
 0x14c   : > { %v7866_v12 = vmul.f32 %v10917_v35, %v1575_v19  ;;  %v10921_v27 = vrot.slane %v10920_v48, %v7017_v56  ;;  %v1382_v51 = vmax.f32 %v1319_v61, 0.0  ;;  %v1322_v53 = vadd.f32 %v7423_v41, %v7203_v36 }
 0x14d   : > { %10916 = vst [vmem:[#allocation149_spill] sm:$0xff] %v7859_v24  ;;  %v4877_v19 = vadd.f32 %v4630_v5, %v4365_v28  ;;  %v1540_v25 = vrot.slane %v1526_v60, %v6679_v8  ;;  %v1541_v35 = vcombine.high %v1533_v42, %v1533_v42  ;;  %v10923_v54 = vrot.slane %v10889_v47, %v7023_v14 }
 0x14e   : > { %10918 = vst [vmem:[#allocation150_spill] sm:$0xff] %v7866_v12  ;;  %v7878_v63 = vmul.f32 %v10921_v27, %v1576_v32  ;;  %v1405_v34 = vmin.f32 %v1382_v51, 6.0  ;;  %v1380_v33 = vmax.f32 %v1311_v20, 0.0  ;;  %v1383_v1 = vmax.f32 %v1322_v53, 0.0  ;;  %v10925_v27 = vld [vmem:[#allocation64_spill] sm:$0xff]  ;;  %v10963_v12 = vld [vmem:[#allocation17_spill] sm:$0xff] }
 0x14f   : > { %v7886_v11 = vmul.f32 %v10923_v54, %v1533_v42  ;;  %v1314_v32 = vadd.f32 %v7203_v36, %v7435_v52  ;;  %v5031_v61 = vadd.f32 %v10925_v27, %v4877_v19  ;;  %v1542_v49 = vcombine.high %v1540_v25, %v1540_v25 }
 0x150   : > { %10922 = vst [vmem:[#allocation8_spill] sm:$0xff] %v7878_v63  ;;  %v10926_v41 = vrot.slane %v10889_v47, %v7036_v15  ;;  %v10928_v60 = vrot.slane %v6890_v3, %v7017_v56  ;;  %v1611_v42 = vcombine.high %v1405_v34, %v1405_v34  ;;  %v1618_v51 = vrot.slane %v1405_v34, %v6679_v8 }
 0x151   : > { %10924 = vst [vmem:[#allocation151_spill] sm:$0xff] %v7886_v11  ;;  %v1403_v20 = vmin.f32 %v1380_v33, 6.0  ;;  %v1406_v53 = vmin.f32 %v1383_v1, 6.0  ;;  %v7902_v54 = vadd.f32 %v5121_v6, %v5031_v61  ;;  %v10931_v52 = vrot.slane %v6890_v3, %v7020_v55 }
 0x152   : > { %v7894_v28 = vmul.f32 %v10926_v41, %v1541_v35  ;;  %v7899_v5 = vmul.f32 %v10928_v60, %v1540_v25  ;;  %v1381_v47 = vmax.f32 %v1314_v32, 0.0  ;;  %v2979_v35 = vmul.f32 %v6922_v30, %v7700_v26  ;;  %v10933_v41 = vld [vmem:[#allocation25_spill] sm:$0xff] }
 0x153   : > { %10930 = vst [vmem:[#allocation153_spill] sm:$0xff] %v7902_v54  ;;  %v7907_v19 = vmul.f32 %v10931_v52, %v1542_v49  ;;  %v1625_v27 = vrot.slane %v1611_v42, %v6679_v8  ;;  %v1626_v25 = vcombine.high %v1618_v51, %v1618_v51  ;;  %v10934_v60 = vrot.slane %v10933_v41, %v7017_v56 }
 0x154   : > { %10927 = vst [vmem:[#allocation64_spill] sm:$0xff] %v7894_v28  ;;  %10929 = vst [vmem:[#allocation152_spill] sm:$0xff] %v7899_v5  ;;  %v1577_v33 = vcombine.high %v1403_v20, %v1403_v20  ;;  %v1584_v6 = vrot.slane %v1403_v20, %v6679_v8  ;;  %v1628_v1 = vcombine.high %v1406_v53, %v1406_v53  ;;  %v1404_v49 = vmin.f32 %v1381_v47, 6.0 }
 0x155   : > { %10932 = vst [vmem:[#allocation154_spill] sm:$0xff] %v7907_v19  ;;  %v7915_v34 = vmul.f32 %v10934_v60, %v1618_v51  ;;  %v1635_v3 = vrot.slane %v1406_v53, %v6679_v8  ;;  %v1627_v61 = vcombine.high %v1625_v27, %v1625_v27  ;;  %v10936_v32 = vrot.slane %v10933_v41, %v7020_v55 }
 0x156   : > { %v10938_v42 = vrot.slane %v10933_v41, %v7023_v14  ;;  %v1591_v51 = vrot.slane %v1577_v33, %v6679_v8  ;;  %v1592_v60 = vcombine.high %v1584_v6, %v1584_v6  ;;  %v10940_v20 = vrot.slane %v10920_v48, %v7020_v55 }
 0x157   : > { %10935 = vst [vmem:[#allocation25_spill] sm:$0xff] %v7915_v34  ;;  %v7922_v26 = vmul.f32 %v10936_v32, %v1626_v25  ;;  %v1642_v53 = vrot.slane %v1628_v1, %v6679_v8  ;;  %v1643_v47 = vcombine.high %v1635_v3, %v1635_v3  ;;  %v10942_v25 = vrot.slane %v10933_v41, %v7036_v15  ;;  %v10948_v1 = vld [vmem:[#allocation22_spill] sm:$0xff] }
 0x158   : > { %v7927_v52 = vmul.f32 %v10938_v42, %v1625_v27  ;;  %v7933_v34 = vmul.f32 %v10940_v20, %v1584_v6  ;;  %v10944_v27 = vrot.slane %v10920_v48, %v7036_v15  ;;  %v1594_v33 = vcombine.high %v1404_v49, %v1404_v49 }
 0x159   : > { %10937 = vst [vmem:[#allocation155_spill] sm:$0xff] %v7922_v26  ;;  %v7939_v32 = vmul.f32 %v10942_v25, %v1627_v61  ;;  %v1593_v26 = vcombine.high %v1591_v51, %v1591_v51  ;;  %v1644_v20 = vcombine.high %v1642_v53, %v1642_v53  ;;  %v10950_v41 = vrot.slane %v10948_v1, %v7020_v55  ;;  %v10952_v25 = vld [vmem:[#allocation20_spill] sm:$0xff] }
 0x15a   : > { %10939 = vst [vmem:[#allocation156_spill] sm:$0xff] %v7927_v52  ;;  %10941 = vst [vmem:[#allocation157_spill] sm:$0xff] %v7933_v34  ;;  %v7944_v42 = vmul.f32 %v10944_v27, %v1591_v51  ;;  %v10946_v52 = vrot.slane %v10920_v48, %v7023_v14  ;;  %v10949_v34 = vrot.slane %v10948_v1, %v7017_v56 }
 0x15b   : > { %10943 = vst [vmem:[#allocation158_spill] sm:$0xff] %v7939_v32  ;;  %v7957_v61 = vmul.f32 %v10950_v41, %v1642_v53  ;;  %v10953_v51 = vrot.slane %v10952_v25, %v7017_v56  ;;  %v1608_v48 = vrot.slane %v1594_v33, %v6679_v8  ;;  %v10964_v46 = vrot.slane %v10963_v12, %v7017_v56 }
 0x15c   : > { %10945 = vst [vmem:[#allocation159_spill] sm:$0xff] %v7944_v42  ;;  %v7949_v6 = vmul.f32 %v10946_v52, %v1592_v60  ;;  %v2882_v63 = vmul.f32 %v10949_v34, %v1643_v47  ;;  %v1601_v42 = vrot.slane %v1404_v49, %v6679_v8  ;;  %v3189_v52 = vadd.f32 %v7727_v38, %v7762_v59 }
 0x15d   : > { %10951 = vst [vmem:[#allocation22_spill] sm:$0xff] %v7957_v61  ;;  %v7962_v27 = vmul.f32 %v10953_v51, %v1593_v26  ;;  %v10955_v34 = vrot.slane %v10948_v1, %v7023_v14  ;;  %v1610_v51 = vcombine.high %v1608_v48, %v1608_v48  ;;  %v8025_v24 = vmul.f32 %v6948_v43, %v7753_v4 }
 0x15e   : > { %10947 = vst [vmem:[#allocation160_spill] sm:$0xff] %v7949_v6  ;;  %v7974_v53 = vmul.f32 %v6922_v30, %v2882_v63  ;;  %v3141_v47 = vmul.f32 %v6943_v40, %v2882_v63  ;;  %v3287_v26 = vmul.f32 %v10883_v22, %v2882_v63  ;;  %v7991_v59 = vmul.f32 %v6903_v16, %v2882_v63 }
 0x15f   : > { %10954 = vst [vmem:[#allocation20_spill] sm:$0xff] %v7962_v27  ;;  %v7971_v60 = vmul.f32 %v10955_v34, %v1644_v20  ;;  %v7980_v49 = vmul.f32 %v10873_v7, %v7962_v27  ;;  %v7984_v33 = vmul.f32 %v10876_v62, %v7962_v27  ;;  %v7988_v38 = vmul.f32 %v10878_v17, %v7962_v27 }
 0x160   : > { %10960 = vst [vmem:[#allocation165_spill] sm:$0xff] %v7991_v59  ;;  %v7994_v20 = vmul.f32 %v10885_v9, %v2882_v63  ;;  %v7997_v41 = vmul.f32 %v10887_v18, %v2882_v63  ;;  %v1609_v25 = vcombine.high %v1601_v42, %v1601_v42  ;;  %v2873_v54 = vmul.f32 %v10964_v46, %v1601_v42  ;;  %v10972_v46 = vld [vmem:[#allocation34_spill] sm:$0xff] }
 0x161   : > { %10956 = vst [vmem:[#allocation161_spill] sm:$0xff] %v7971_v60  ;;  %10957 = vst [vmem:[#allocation162_spill] sm:$0xff] %v7980_v49  ;;  %v10965_v63 = vrot.slane %v10963_v12, %v7020_v55  ;;  %v10967_v34 = vrot.slane %v10963_v12, %v7023_v14  ;;  %v10969_v27 = vrot.slane %v10963_v12, %v7036_v15 }
 0x162   : > { %10958 = vst [vmem:[#allocation163_spill] sm:$0xff] %v7984_v33  ;;  %10959 = vst [vmem:[#allocation164_spill] sm:$0xff] %v7988_v38  ;;  %v10973_v42 = vrot.slane %v10972_v46, %v7017_v56 }
 0x163   : > { %10961 = vst [vmem:[#allocation166_spill] sm:$0xff] %v7994_v20  ;;  %10962 = vst [vmem:[#allocation167_spill] sm:$0xff] %v7997_v41  ;;  %v8011_v58 = vmul.f32 %v10965_v63, %v1609_v25  ;;  %v8016_v60 = vmul.f32 %v10967_v34, %v1608_v48  ;;  %v8021_v6 = vmul.f32 %v10969_v27, %v1610_v51  ;;  %v10454_v27 = vrot.slane %v8025_v24, 7 }
 0x164   : > { %10971 = vst [vmem:[#allocation170_spill] sm:$0xff] %v8025_v24  ;;  %v8030_v61 = vmul.f32 %v10973_v42, %v1635_v3  ;;  %v2987_v25 = vmul.f32 %v6922_v30, %v2873_v54  ;;  %v3133_v63 = vmul.f32 %v6943_v40, %v2873_v54  ;;  %v3279_v48 = vmul.f32 %v10883_v22, %v2873_v54 }
 0x165   : > { %10966 = vst [vmem:[#allocation17_spill] sm:$0xff] %v8011_v58  ;;  %10968 = vst [vmem:[#allocation168_spill] sm:$0xff] %v8016_v60  ;;  %v3474_v34 = vmul.f32 %v6903_v16, %v2873_v54  ;;  %v8038_v12 = vmul.f32 %v6948_v43, %v8011_v58  ;;  %v8042_v51 = vmul.f32 %v10885_v9, %v2873_v54  ;;  %v10978_v41 = vrot.slane %v7787_v0, 9  ;;  %v11027_v58 = vld [vmem:[#allocation50_spill] sm:$0xff] }
 0x166   : > { %10970 = vst [vmem:[#allocation169_spill] sm:$0xff] %v8021_v6  ;;  %10974 = vst [vmem:[#allocation34_spill] sm:$0xff] %v8030_v61  ;;  %v8045_v3 = vmul.f32 %v10887_v18, %v2873_v54  ;;  %v3197_v46 = vadd.f32 %v3133_v63, %v2979_v35  ;;  %v8047_v42 = vadd.f32 %v3141_v47, %v2987_v25  ;;  %v10987_v6 = vld [vmem:[#allocation100_spill] sm:$0xff] }
 0x167   : > { %10975 = vst [vmem:[#allocation171_spill] sm:$0xff] %v8038_v12  ;;  %10976 = vst [vmem:[#allocation172_spill] sm:$0xff] %v8042_v51  ;;  %v3343_v59 = vadd.f32 %v3279_v48, %v3189_v52  ;;  %v6334_v20 = vrot.slane %v3474_v34, 9  ;;  %v3635_v49 = vsel %vm6925_vm5, %v10978_v41, %v10454_v27  ;;  %v10453_v33 = vrot.slane %v8038_v12, 7  ;;  %v6510_v48 = vld [vmem:[%s10316_s5] sm:$0xff]  }
 0x168   : > { %10977 = vst [vmem:[#allocation173_spill] sm:$0xff] %v8045_v3  ;;  %v8058_v54 = vadd.f32 %v3287_v26, %v3197_v46  ;;  %v8064_v52 = vmul.f32 %v6952_v45, %v7939_v32  ;;  %v3482_v0 = vmul.f32 %v10873_v7, %v8030_v61  ;;  %v8076_v41 = vmul.f32 %v7003_v2, %v7939_v32  ;;  %v10988_v27 = vld [vmem:[#allocation102_spill] sm:$0xff] }
 0x169   : > { %v8060_v35 = vadd.f32 %v3635_v49, %v3343_v59  ;;  %v8072_v47 = vsel %vm6925_vm5, %v6334_v20, %v10453_v33  ;;  %v3985_v26 = vmul.f32 %v10876_v62, %v8030_v61  ;;  %v8082_v49 = vmul.f32 %v10878_v17, %v8030_v61  ;;  %6418 = vmatprep.subr.bf16.mxu1 %v6510_v48 }
 0x16a   : > { %10979 = vst [vmem:[#allocation174_spill] sm:$0xff] %v8058_v54  ;;  %10981 = vst [vmem:[#allocation176_spill] sm:$0xff] %v8064_v52  ;;  %v10458_v59 = vrot.slane %v8064_v52, 7  ;;  %v3705_v25 = vrot.slane %v3482_v0, 7  ;;  %v8087_v63 = vmul.f32 %v7044_v23, %v8030_v61  ;;  %v8091_v20 = vmul.f32 %v10879_v29, %v8030_v61  ;;  %v10991_v54 = vld [vmem:[#allocation115_spill] sm:$0xff]  ;;  %v10992_v61 = vld [vmem:[#allocation116_spill] sm:$0xff]  ;;  %6419 = vmatpush3.bf16.msra.mxu1 %v6510_v48 }
 0x16b   : > { %10980 = vst [vmem:[#allocation175_spill] sm:$0xff] %v8060_v35  ;;  %10982 = vst [vmem:[#allocation177_spill] sm:$0xff] %v8072_v47  ;;  %v10461_v34 = vrot.slane %v8076_v41, 7  ;;  %v4192_v46 = vrot.slane %v3985_v26, 7  ;;  %v1335_v0 = vadd.f32 %v10987_v6, %v7203_v36  ;;  %v10989_v47 = vld [vmem:[#allocation105_spill] sm:$0xff]  ;;  %v1367_v6 = vadd.f32 %v10991_v54, %v7203_v36  ;;  %v11078_v23 = vld [vmem:[#allocation42_spill] sm:$0xff] }
 0x16c   : > { %10983 = vst [vmem:[#allocation178_spill] sm:$0xff] %v8076_v41  ;;  %10984 = vst [vmem:[#allocation179_spill] sm:$0xff] %v8082_v49  ;;  %v3704_v60 = vrot.slane %v10458_v59, 2  ;;  %v1338_v12 = vadd.f32 %v10989_v47, %v7203_v36  ;;  %v1359_v59 = vadd.f32 %v7203_v36, %v10992_v61  ;;  %v10995_v61 = vld [vmem:[#allocation130_spill] sm:$0xff] }
 0x16d   : > { %10985 = vst [vmem:[#allocation180_spill] sm:$0xff] %v8087_v63  ;;  %10986 = vst [vmem:[#allocation181_spill] sm:$0xff] %v8091_v20  ;;  %v1327_v63 = vadd.f32 %v7203_v36, %v10988_v27  ;;  %v10990_v20 = vld [vmem:[#allocation110_spill] sm:$0xff]  ;;  %v4191_v26 = vrot.slane %v10461_v34, 2  ;;  %v1386_v33 = vmax.f32 %v1335_v0, 0.0  ;;  %v1394_v0 = vmax.f32 %v1367_v6, 0.0 }
 0x16e   : > { %v1330_v51 = vadd.f32 %v7203_v36, %v10990_v20  ;;  %v8116_v27 = vsel %vm6925_vm5, %v3704_v60, %v3705_v25  ;;  %v1387_v52 = vmax.f32 %v1338_v12, 0.0  ;;  %v1392_v41 = vmax.f32 %v1359_v59, 0.0 }
 0x16f   : > { %10993 = vst [vmem:[#allocation100_spill] sm:$0xff] %v8116_v27  ;;  %v1384_v47 = vmax.f32 %v1327_v63, 0.0  ;;  %v8120_v20 = vsel %vm6925_vm5, %v4191_v26, %v4192_v46  ;;  %v1409_v34 = vmin.f32 %v1386_v33, 6.0  ;;  %v8124_v48 = vadd.f32 %v10995_v61, %v7203_v36  ;;  %v11003_v27 = vld [vmem:[#allocation52_spill] sm:$0xff] }
 0x170   : > { %v1385_v49 = vmax.f32 %v1330_v51, 0.0  ;;  %10994 = vst [vmem:[#allocation102_spill] sm:$0xff] %v8120_v20  ;;  %v1410_v54 = vmin.f32 %v1387_v52, 6.0  ;;  %v1417_v25 = vmin.f32 %v1394_v0, 6.0  ;;  %v1415_v12 = vmin.f32 %v1392_v41, 6.0  ;;  %v10996_v52 = vld [vmem:[#allocation49_spill] sm:$0xff] }
 0x171   : > { %v1407_v3 = vmin.f32 %v1384_v47, 6.0  ;;  %v1679_v24 = vcombine.high %v1409_v34, %v1409_v34  ;;  %v1686_v60 = vrot.slane %v1409_v34, %v6679_v8  ;;  %v10999_v41 = vrot.slane %v10948_v1, %v7036_v15 }
 0x172   : > { %v1408_v35 = vmin.f32 %v1385_v49, 6.0  ;;  %v1696_v46 = vcombine.high %v1410_v54, %v1410_v54  ;;  %v1703_v33 = vrot.slane %v1410_v54, %v6679_v8  ;;  %v10997_v49 = vrot.slane %v10996_v52, %v7023_v14 }
 0x173   : > { %v1645_v51 = vcombine.high %v1407_v3, %v1407_v3  ;;  %v1652_v63 = vrot.slane %v1407_v3, %v6679_v8  ;;  %v1693_v59 = vrot.slane %v1679_v24, %v6679_v8  ;;  %v1694_v26 = vcombine.high %v1686_v60, %v1686_v60 }
 0x174   : > { %v8133_v6 = vmul.f32 %v10997_v49, %v1686_v60  ;;  %v1662_v36 = vcombine.high %v1408_v35, %v1408_v35  ;;  %v1711_v3 = vcombine.high %v1703_v33, %v1703_v33  ;;  %v11001_v24 = vrot.slane %v10996_v52, %v7036_v15 }
 0x175   : > { %v1659_v47 = vrot.slane %v1645_v51, %v6679_v8  ;;  %v1660_v34 = vcombine.high %v1652_v63, %v1652_v63  ;;  %v8139_v0 = vmul.f32 %v10999_v41, %v1652_v63  ;;  %v1695_v61 = vcombine.high %v1693_v59, %v1693_v59  ;;  %v11008_v63 = vld [vmem:[#allocation43_spill] sm:$0xff] }
 0x176   : > { %10998 = vst [vmem:[#allocation105_spill] sm:$0xff] %v8133_v6  ;;  %v8144_v54 = vmul.f32 %v11001_v24, %v1694_v26  ;;  %v11004_v60 = vrot.slane %v11003_v27, %v7017_v56  ;;  %v11006_v51 = vrot.slane %v11003_v27, %v7023_v14  ;;  %v11009_v41 = vrot.slane %v11008_v63, %v7017_v56 }
 0x177   : > { %11000 = vst [vmem:[#allocation110_spill] sm:$0xff] %v8139_v0  ;;  %v1661_v1 = vcombine.high %v1659_v47, %v1659_v47  ;;  %v11011_v26 = vrot.slane %v11008_v63, %v7020_v55  ;;  %v1669_v32 = vrot.slane %v1408_v35, %v6679_v8  ;;  %v11021_v35 = vrot.slane %v11008_v63, %v7036_v15 }
 0x178   : > { %11002 = vst [vmem:[#allocation115_spill] sm:$0xff] %v8144_v54  ;;  %v8149_v49 = vmul.f32 %v11004_v60, %v1693_v59  ;;  %v8154_v20 = vmul.f32 %v11006_v51, %v1703_v33  ;;  %v8159_v0 = vmul.f32 %v11009_v41, %v1660_v34  ;;  %v11013_v59 = vrot.slane %v11003_v27, %v7036_v15 }
 0x179   : > { %v8164_v24 = vmul.f32 %v11011_v26, %v1659_v47  ;;  %v11015_v33 = vrot.slane %v11003_v27, %v7020_v55  ;;  %v1676_v34 = vrot.slane %v1662_v36, %v6679_v8  ;;  %v8179_v41 = vrot.slane %v1417_v25, %v6679_v8 }
 0x17a   : > { %11005 = vst [vmem:[#allocation116_spill] sm:$0xff] %v8149_v49  ;;  %11007 = vst [vmem:[#allocation130_spill] sm:$0xff] %v8154_v20  ;;  %v8169_v60 = vmul.f32 %v11013_v59, %v1711_v3  ;;  %v11018_v47 = vrot.slane %v11008_v63, %v7023_v14  ;;  %v8187_v3 = vrot.slane %v1415_v12, %v6679_v8  ;;  %v1390_v13 = vmax.f32 %v8124_v48, 0.0  ;;  %v11051_v48 = vld [vmem:[#allocation39_spill] sm:$0xff] }
 0x17b   : > { %11010 = vst [vmem:[#allocation49_spill] sm:$0xff] %v8159_v0  ;;  %11012 = vst [vmem:[#allocation52_spill] sm:$0xff] %v8164_v24  ;;  %v8174_v51 = vmul.f32 %v11015_v33, %v1695_v61  ;;  %v1781_v24 = vcombine.high %v1415_v12, %v1415_v12  ;;  %v1710_v27 = vrot.slane %v1696_v46, %v6679_v8 }
 0x17c   : > { %11014 = vst [vmem:[#allocation43_spill] sm:$0xff] %v8169_v60  ;;  %11017 = vst [vmem:[#allocation183_spill] sm:$0xff] %v8179_v41  ;;  %v8184_v26 = vmul.f32 %v11018_v47, %v1661_v1  ;;  %v1677_v61 = vcombine.high %v1669_v32, %v1669_v32  ;;  %v1678_v59 = vcombine.high %v1676_v34, %v1676_v34  ;;  %v1413_v38 = vmin.f32 %v1390_v13, 6.0 }
 0x17d   : > { %11016 = vst [vmem:[#allocation182_spill] sm:$0xff] %v8174_v51  ;;  %11020 = vst [vmem:[#allocation185_spill] sm:$0xff] %v8187_v3  ;;  %v8193_v36 = vmul.f32 %v11021_v35, %v1669_v32  ;;  %v11023_v25 = vrot.slane %v10996_v52, %v7017_v56  ;;  %v8199_v1 = vrot.slane %v1781_v24, %v6679_v8 }
 0x17e   : > { %11019 = vst [vmem:[#allocation184_spill] sm:$0xff] %v8184_v26  ;;  %v1712_v47 = vcombine.high %v1710_v27, %v1710_v27  ;;  %v11024_v26 = vld [vmem:[#allocation53_spill] sm:$0xff]  ;;  %v11028_v32 = vrot.slane %v11027_v58, %v7017_v56  ;;  %v1747_v5 = vcombine.high %v1413_v38, %v1413_v38 }
 0x17f   : > { %11022 = vst [vmem:[#allocation186_spill] sm:$0xff] %v8193_v36  ;;  %v2891_v33 = vmul.f32 %v11023_v25, %v1676_v34  ;;  %v11025_v46 = vrot.slane %v11024_v26, %v7017_v56  ;;  %v11030_v34 = vrot.slane %v10996_v52, %v7020_v55 }
 0x180   : > { %v8211_v63 = vmul.f32 %v11028_v32, %v1677_v61  ;;  %v8262_v32 = vmul.f32 %v7003_v2, %v8169_v60  ;;  %v1761_v28 = vrot.slane %v1747_v5, %v6679_v8  ;;  %v11063_v60 = vld [vmem:[#allocation55_spill] sm:$0xff] }
 0x181   : > { %v8206_v0 = vmul.f32 %v11025_v46, %v1710_v27  ;;  %v8216_v35 = vmul.f32 %v11030_v34, %v1678_v59  ;;  %v3149_v24 = vmul.f32 %v6943_v40, %v2891_v33  ;;  %v3295_v25 = vmul.f32 %v10883_v22, %v2891_v33 }
 0x182   : > { %11029 = vst [vmem:[#allocation50_spill] sm:$0xff] %v8211_v63  ;;  %v8221_v12 = vmul.f32 %v6903_v16, %v2891_v33  ;;  %v8224_v26 = vmul.f32 %v10885_v9, %v2891_v33  ;;  %v8227_v27 = vmul.f32 %v10887_v18, %v2891_v33  ;;  %v8237_v59 = vmul.f32 %v10873_v7, %v8211_v63 }
 0x183   : > { %11026 = vst [vmem:[#allocation53_spill] sm:$0xff] %v8206_v0  ;;  %11031 = vst [vmem:[#allocation187_spill] sm:$0xff] %v8216_v35  ;;  %v3213_v52 = vadd.f32 %v3149_v24, %v7974_v53  ;;  %v8233_v61 = vadd.f32 %v3295_v25, %v8047_v42  ;;  %v8241_v46 = vmul.f32 %v10876_v62, %v8211_v63  ;;  %v11038_v53 = vld [vmem:[#allocation51_spill] sm:$0xff] }
 0x184   : > { %11032 = vst [vmem:[#allocation188_spill] sm:$0xff] %v8224_v26  ;;  %11033 = vst [vmem:[#allocation189_spill] sm:$0xff] %v8227_v27  ;;  %v8246_v34 = vmul.f32 %v10878_v17, %v8211_v63  ;;  %v11039_v42 = vrot.slane %v11038_v53, %v7017_v56  ;;  %v8258_v36 = vmul.f32 %v10873_v7, %v8206_v0  ;;  %v11047_v63 = vld [vmem:[#allocation132_spill] sm:$0xff] }
 0x185   : > { %11034 = vst [vmem:[#allocation190_spill] sm:$0xff] %v8233_v61  ;;  %11035 = vst [vmem:[#allocation191_spill] sm:$0xff] %v8237_v59  ;;  %v10486_v61 = vrot.slane %v8262_v32, 7  ;;  %v8277_v59 = vmul.f32 %v10878_v17, %v8206_v0  ;;  %v3003_v21 = vmul.f32 %v6922_v30, %v2891_v33 }
 0x186   : > { %11036 = vst [vmem:[#allocation192_spill] sm:$0xff] %v8241_v46  ;;  %11037 = vst [vmem:[#allocation193_spill] sm:$0xff] %v8246_v34  ;;  %v8252_v24 = vmul.f32 %v11039_v42, %v1712_v47  ;;  %v4003_v47 = vmul.f32 %v10876_v62, %v8206_v0  ;;  %v8288_v34 = vmul.f32 %v10879_v29, %v8206_v0 }
 0x187   : > { %11040 = vst [vmem:[#allocation51_spill] sm:$0xff] %v8258_v36  ;;  %11041 = vst [vmem:[#allocation194_spill] sm:$0xff] %v8262_v32  ;;  %v4241_v25 = vrot.slane %v10486_v61, 2  ;;  %v11064_v0 = vrot.slane %v11063_v60, %v7020_v55 }
 0x188   : > { %v3303_v58 = vmul.f32 %v10883_v22, %v8252_v24  ;;  %v8271_v42 = vmul.f32 %v10885_v9, %v8252_v24  ;;  %11042 = vst [vmem:[#allocation195_spill] sm:$0xff] %v8277_v59  ;;  %v8281_v26 = vmul.f32 %v10887_v18, %v8252_v24  ;;  %v4242_v46 = vrot.slane %v4003_v47, 7  ;;  %11045 = vst [vmem:[#allocation198_spill] sm:$0xff] %v8288_v34  ;;  %v11049_v34 = vld [vmem:[#allocation136_spill] sm:$0xff] }
 0x18a   : > { %11043 = vst [vmem:[#allocation196_spill] sm:$0xff] %v8281_v26  ;;  %v8283_v27 = vadd.f32 %v3303_v58, %v3213_v52  ;;  %v6512_v58 = vld [vmem:[%s10313_s2] ss:$0 sm:$0xff]  ;;  %v11046_v52 = vld [vmem:[#allocation117_spill] sm:$0xff]  ;;  %v8304_v61 = vsel %vm6925_vm5, %v4241_v25, %v4242_v46  ;;  %v3004_v26 = vmul.f32 %v11051_v48, %v8216_v35 }
 0x18b   : > { %v1362_v47 = vadd.f32 %v6512_v58, %v11046_v52  ;;  %v1354_v10 = vadd.f32 %v6512_v58, %v11048_v50  ;;  %v1346_v44 = vadd.f32 %v6512_v58, %v11049_v34  ;;  %11050 = vst [vmem:[#allocation117_spill] sm:$0xff] %v8304_v61  ;;  %v11052_v50 = vld [vmem:[#allocation11_spill] sm:$0xff] }
 0x18c   : > { %11044 = vst [vmem:[#allocation197_spill] sm:$0xff] %v8283_v27  ;;  %v1343_v27 = vadd.f32 %v6512_v58, %v11047_v63  ;;  %v1754_v63 = vrot.slane %v1413_v38, %v6679_v8  ;;  %v3005_v34 = vmul.f32 %v11052_v50, %v8133_v6  ;;  %v11053_v58 = vld [vmem:[#allocation41_spill] sm:$0xff]  ;;  %v3157_v38 = vmul.f32 %v6943_v40, %v8252_v24 }
 0x18d   : > { %v1393_v32 = vmax.f32 %v1362_v47, 0.0  ;;  %v1391_v19 = vmax.f32 %v1354_v10, 0.0  ;;  %v1389_v52 = vmax.f32 %v1346_v44, 0.0  ;;  %v3006_v46 = vmul.f32 %v11053_v58, %v8144_v54  ;;  %v11054_v47 = vld [vmem:[#allocation57_spill] sm:$0xff] }
 0x18e   : > { %v1388_v59 = vmax.f32 %v1343_v27, 0.0  ;;  %v1762_v11 = vcombine.high %v1754_v63, %v1754_v63  ;;  %v11055_v10 = vrot.slane %v11054_v47, %v7017_v56 }
 0x18f   : > { %v1416_v25 = vmin.f32 %v1393_v32, 6.0  ;;  %v1414_v61 = vmin.f32 %v1391_v19, 6.0  ;;  %v1412_v33 = vmin.f32 %v1389_v52, 6.0  ;;  %v1763_v19 = vcombine.high %v1761_v28, %v1761_v28 }
 0x190   : > { %v1411_v13 = vmin.f32 %v1388_v59, 6.0  ;;  %v8318_v44 = vmul.f32 %v11055_v10, %v1754_v63 }
 0x191   : > { %v1798_v27 = vcombine.high %v1416_v25, %v1416_v25  ;;  %v8323_v6 = vrot.slane %v1416_v25, %v6679_v8  ;;  %v1764_v32 = vcombine.high %v1414_v61, %v1414_v61  ;;  %v8327_v5 = vrot.slane %v1414_v61, %v6679_v8 }
 0x192   : > { %v1713_v54 = vcombine.high %v1411_v13, %v1411_v13  ;;  %v1720_v59 = vrot.slane %v1411_v13, %v6679_v8  ;;  %v1730_v52 = vcombine.high %v1412_v33, %v1412_v33  ;;  %v11057_v25 = vrot.slane %v11038_v53, %v7020_v55 }
 0x193   : > { %v8330_v4 = vrot.slane %v1798_v27, %v6679_v8  ;;  %v8341_v13 = vrot.slane %v1764_v32, %v6679_v8  ;;  %v1737_v27 = vrot.slane %v1412_v33, %v6679_v8  ;;  %v11072_v32 = vrot.slane %v11054_v47, %v7036_v15 }
 0x194   : > { %v1727_v10 = vrot.slane %v1713_v54, %v6679_v8  ;;  %v1728_v7 = vcombine.high %v1720_v59, %v1720_v59  ;;  %v8338_v36 = vmul.f32 %v11057_v25, %v1720_v59  ;;  %v11059_v54 = vrot.slane %v11038_v53, %v7023_v14 }
 0x195   : > { %11056 = vst [vmem:[#allocation132_spill] sm:$0xff] %v8330_v4  ;;  %v11061_v59 = vrot.slane %v11038_v53, %v7036_v15  ;;  %v1744_v61 = vrot.slane %v1730_v52, %v6679_v8  ;;  %v1745_v33 = vcombine.high %v1737_v27, %v1737_v27  ;;  %v8364_v29 = vmul.f32 %v11064_v0, %v1737_v27 }
 0x196   : > { %11058 = vst [vmem:[#allocation134_spill] sm:$0xff] %v8338_v36  ;;  %v1729_v63 = vcombine.high %v1727_v10, %v1727_v10  ;;  %v8351_v62 = vmul.f32 %v11059_v54, %v1728_v7  ;;  %v11066_v7 = vrot.slane %v11063_v60, %v7017_v56  ;;  %v11068_v53 = vrot.slane %v11054_v47, %v7020_v55 }
 0x197   : > { %v8356_v25 = vmul.f32 %v11061_v59, %v1727_v10  ;;  %11065 = vst [vmem:[#allocation55_spill] sm:$0xff] %v8364_v29  ;;  %v11070_v59 = vrot.slane %v11054_v47, %v7023_v14  ;;  %v8384_v0 = vmul.f32 %v11072_v32, %v1763_v19  ;;  %v1746_v27 = vcombine.high %v1744_v61, %v1744_v61  ;;  %v11080_v47 = vld [vmem:[#allocation44_spill] sm:$0xff] }
 0x198   : > { %11060 = vst [vmem:[#allocation136_spill] sm:$0xff] %v8351_v62  ;;  %v8369_v54 = vmul.f32 %v11066_v7, %v1729_v63  ;;  %v8374_v10 = vmul.f32 %v11068_v53, %v1762_v11  ;;  %v11074_v63 = vrot.slane %v11063_v60, %v7023_v14  ;;  %v11076_v11 = vrot.slane %v11063_v60, %v7036_v15 }
 0x199   : > { %11062 = vst [vmem:[#allocation57_spill] sm:$0xff] %v8356_v25  ;;  %v8379_v52 = vmul.f32 %v11070_v59, %v1761_v28  ;;  %11073 = vst [vmem:[#allocation202_spill] sm:$0xff] %v8384_v0  ;;  %v3158_v28 = vmul.f32 %v11078_v23, %v8338_v36  ;;  %v11079_v59 = vld [vmem:[#allocation24_spill] sm:$0xff]  ;;  %v3160_v19 = vmul.f32 %v11080_v47, %v8356_v25 }
 0x19a   : > { %11067 = vst [vmem:[#allocation199_spill] sm:$0xff] %v8369_v54  ;;  %11069 = vst [vmem:[#allocation200_spill] sm:$0xff] %v8374_v10  ;;  %v8389_v7 = vmul.f32 %v11074_v63, %v1745_v33  ;;  %v8394_v53 = vmul.f32 %v11076_v11, %v1744_v61  ;;  %v3159_v41 = vmul.f32 %v11079_v59, %v8351_v62  ;;  %v11081_v33 = vld [vmem:[#allocation62_spill] sm:$0xff]  ;;  %v11086_v47 = vld [vmem:[#allocation48_spill] sm:$0xff] }
 0x19b   : > { %11071 = vst [vmem:[#allocation201_spill] sm:$0xff] %v8379_v52  ;;  %v3221_v32 = vadd.f32 %v3157_v38, %v3003_v21  ;;  %v3311_v4 = vmul.f32 %v10883_v22, %v8318_v44  ;;  %v11082_v63 = vrot.slane %v11081_v33, %v7017_v56  ;;  %v3222_v60 = vadd.f32 %v3158_v28, %v3004_v26  ;;  %v11084_v61 = vld [vmem:[#allocation54_spill] sm:$0xff] }
 0x19c   : > { %11075 = vst [vmem:[#allocation203_spill] sm:$0xff] %v8389_v7  ;;  %11077 = vst [vmem:[#allocation204_spill] sm:$0xff] %v8394_v53  ;;  %v3312_v11 = vmul.f32 %v11084_v61, %v8374_v10  ;;  %v11085_v53 = vld [vmem:[#allocation33_spill] sm:$0xff]  ;;  %v3223_v45 = vadd.f32 %v3159_v41, %v3005_v34  ;;  %v3224_v16 = vadd.f32 %v3160_v19, %v3006_v46 }
 0x19d   : > { %v8407_v37 = vmul.f32 %v11082_v63, %v1746_v27  ;;  %v3313_v2 = vmul.f32 %v11085_v53, %v8379_v52  ;;  %v3314_v21 = vmul.f32 %v11086_v47, %v8384_v0  ;;  %v3375_v38 = vadd.f32 %v3311_v4, %v3221_v32  ;;  %v11091_v32 = vld [vmem:[#allocation35_spill] sm:$0xff] }
 0x19e   : > { %v8419_v33 = vadd.f32 %v3312_v11, %v3222_v60  ;;  %v3493_v26 = vmul.f32 %v6948_v43, %v8216_v35  ;;  %v6336_v27 = vrot.slane %v8221_v12, 9  ;;  %v4005_v41 = vmul.f32 %v6986_v39, %v8338_v36 }
 0x19f   : > { %11083 = vst [vmem:[#allocation62_spill] sm:$0xff] %v8407_v37  ;;  %v8417_v58 = vmul.f32 %v10878_v17, %v8407_v37  ;;  %v8424_v28 = vadd.f32 %v3313_v2, %v3223_v45  ;;  %v8426_v63 = vadd.f32 %v3314_v21, %v3224_v16  ;;  %v8432_v4 = vmul.f32 %v10885_v9, %v8318_v44  ;;  %v11092_v2 = vld [vmem:[#allocation36_spill] sm:$0xff] }
 0x1a0   : > { %11088 = vst [vmem:[#allocation206_spill] sm:$0xff] %v8419_v33  ;;  %v3734_v46 = vrot.slane %v3493_v26, 7  ;;  %v4516_v19 = vmul.f32 %v10887_v18, %v8318_v44  ;;  %v4517_v12 = vmul.f32 %v11091_v32, %v8374_v10  ;;  %v4246_v45 = vrot.slane %v4005_v41, 7 }
 0x1a1   : > { %11087 = vst [vmem:[#allocation205_spill] sm:$0xff] %v8417_v58  ;;  %11089 = vst [vmem:[#allocation207_spill] sm:$0xff] %v8424_v28  ;;  %v8442_v60 = vmul.f32 %v11092_v2, %v8379_v52  ;;  %v8446_v9 = vmul.f32 %v10906_v57, %v8384_v0  ;;  %v11096_v41 = vrot.slane %v8271_v42, 9  ;;  %v2067_v58 = vpop.permute.xlu1 %2066 }
 0x1a2   : > { %11090 = vst [vmem:[#allocation208_spill] sm:$0xff] %v8426_v63  ;;  %v3735_v11 = vsel %vm6925_vm5, %v6336_v27, %v3734_v46  ;;  %v8450_v21 = vrot.slane %v3734_v46, 2  ;;  %v6352_v26 = vrot.slane %v4516_v19, 9  ;;  %v4758_v34 = vrot.slane %v4517_v12, 7 }
 0x1a3   : > { %11093 = vst [vmem:[#allocation35_spill] sm:$0xff] %v8442_v60  ;;  %11094 = vst [vmem:[#allocation209_spill] sm:$0xff] %v8446_v9  ;;  %v3894_v63 = vadd.f32 %v3735_v11, %v3375_v38  ;;  %v4247_v16 = vsel %vm6925_vm5, %v11096_v41, %v4246_v45  ;;  %v8456_v28 = vrot.slane %v4246_v45, 2  ;;  %v10525_v33 = vrot.slane %v8442_v60, 7 }
 0x1a4   : > { %11095 = vst [vmem:[#allocation210_spill] sm:$0xff] %v8450_v21  ;;  %v4759_v35 = vsel %vm6925_vm5, %v6352_v26, %v4758_v34  ;;  %v8461_v17 = vrot.slane %v4758_v34, 2  ;;  %v10526_v27 = vrot.slane %v8446_v9, 7  ;;  %v2655_v46 = vrot.slane %v2067_v58, %v7017_v56 }
 0x1a5   : > { %11097 = vst [vmem:[#allocation211_spill] sm:$0xff] %v8456_v28  ;;  %v4406_v38 = vadd.f32 %v4247_v16, %v3894_v63  ;;  %v8467_v42 = vrot.slane %v10525_v33, 2  ;;  %v2662_v19 = vrot.slane %v2067_v58, %v7020_v55  ;;  %v2669_v12 = vrot.slane %v2067_v58, %v7023_v14 }
 0x1a6   : > { %11098 = vst [vmem:[#allocation212_spill] sm:$0xff] %v8461_v17  ;;  %v8473_v45 = vrot.slane %v10526_v27, 2  ;;  %v2676_v34 = vrot.slane %v2067_v58, %v7036_v15  ;;  %v8477_v11 = vmul.f32 %v2655_v46, %v8327_v5  ;;  %v3007_v63 = vmul.f32 %v6922_v30, %v8149_v49 }
 0x1a7   : > { %11099 = vst [vmem:[#allocation213_spill] sm:$0xff] %v8467_v42  ;;  %v8481_v16 = vadd.f32 %v4759_v35, %v4406_v38  ;;  %v11103_v26 = vcombine.high %v8327_v5, %v8327_v5  ;;  %v8489_v33 = vmul.f32 %v2669_v12, %v8341_v13  ;;  %v3008_v27 = vmul.f32 %v11051_v48, %v8174_v51 }
 0x1a8   : > { %11100 = vst [vmem:[#allocation214_spill] sm:$0xff] %v8473_v45  ;;  %11101 = vst [vmem:[#allocation215_spill] sm:$0xff] %v8477_v11  ;;  %v11106_v58 = vcombine.high %v8341_v13, %v8341_v13  ;;  %v3009_v35 = vmul.f32 %v11052_v50, %v8154_v20  ;;  %v3161_v38 = vmul.f32 %v6943_v40, %v8369_v54  ;;  %v11108_v45 = vld [vmem:[#allocation58_spill] sm:$0xff]  ;;  %v2078_v20 = vpop.permute.xlu0 %2077 }
 0x1a9   : > { %11102 = vst [vmem:[#allocation216_spill] sm:$0xff] %v8481_v16  ;;  %v8486_v41 = vmul.f32 %v2662_v19, %v11103_v26  ;;  %11105 = vst [vmem:[#allocation218_spill] sm:$0xff] %v8489_v33  ;;  %v3162_v5 = vmul.f32 %v11078_v23, %v8364_v29  ;;  %v6355_v19 = vld [vmem:[%s10315_s4] ss:$0 sm:$0xff]  ;;  %v3163_v12 = vmul.f32 %v11079_v59, %v8389_v7 }
 0x1aa   : > { %v8496_v46 = vmul.f32 %v2676_v34, %v11106_v58  ;;  %v3315_v13 = vmul.f32 %v10883_v22, %v8477_v11  ;;  %v3317_v26 = vmul.f32 %v11085_v53, %v8489_v33  ;;  %v3225_v58 = vadd.f32 %v3161_v38, %v3007_v63 }
 0x1ab   : > { %11104 = vst [vmem:[#allocation217_spill] sm:$0xff] %v8486_v41  ;;  %v3316_v34 = vmul.f32 %v11084_v61, %v8486_v41  ;;  %v3226_v16 = vadd.f32 %v3162_v5, %v3008_v27  ;;  %v8517_v28 = vmul.f32 %v11108_v45, %v8477_v11  ;;  %v8521_v42 = vmul.f32 %v11091_v32, %v8486_v41 }
 0x1ac   : > { %11107 = vst [vmem:[#allocation219_spill] sm:$0xff] %v8496_v46  ;;  %v3227_v9 = vadd.f32 %v3163_v12, %v3009_v35  ;;  %v8525_v17 = vmul.f32 %v11092_v2, %v8489_v33  ;;  %v5402_v60 = vcombine.high %v6355_v19, %v6355_v19  ;;  %v8528_v21 = vrot.slane %v6355_v19, %v6679_v8 }
 0x1ad   : > { %11109 = vst [vmem:[#allocation220_spill] sm:$0xff] %v8517_v28  ;;  %11110 = vst [vmem:[#allocation221_spill] sm:$0xff] %v8521_v42  ;;  %v8530_v63 = vadd.f32 %v3315_v13, %v3225_v58  ;;  %v8532_v27 = vadd.f32 %v3316_v34, %v3226_v16  ;;  %v10533_v38 = vrot.slane %v8517_v28, 7  ;;  %v10534_v5 = vrot.slane %v8521_v42, 7  ;;  %v11123_v28 = vld [vmem:[#allocation41_spill] sm:$0xff] }
 0x1ae   : > { %11111 = vst [vmem:[#allocation222_spill] sm:$0xff] %v8525_v17  ;;  %11112 = vst [vmem:[#allocation223_spill] sm:$0xff] %v8528_v21  ;;  %v8536_v51 = vadd.f32 %v3317_v26, %v3227_v9  ;;  %v10536_v35 = vrot.slane %v8525_v17, 7  ;;  %v8540_v12 = vrot.slane %v5402_v60, %v6679_v8  ;;  %v8544_v19 = vcombine.high %v8528_v21, %v8528_v21 }
 0x1af   : > { %11113 = vst [vmem:[#allocation224_spill] sm:$0xff] %v8530_v63  ;;  %11114 = vst [vmem:[#allocation225_spill] sm:$0xff] %v8532_v27  ;;  %v8548_v13 = vrot.slane %v10533_v38, 2  ;;  %v8552_v16 = vrot.slane %v10534_v5, 2  ;;  %v2690_v9 = vrot.slane %v2078_v20, %v7017_v56  ;;  %v2697_v34 = vrot.slane %v2078_v20, %v7020_v55  ;;  %v11124_v27 = vld [vmem:[#allocation44_spill] sm:$0xff] }
 0x1b0   : > { %11115 = vst [vmem:[#allocation226_spill] sm:$0xff] %v8536_v51  ;;  %11116 = vst [vmem:[#allocation227_spill] sm:$0xff] %v8540_v12  ;;  %v8558_v60 = vrot.slane %v10536_v35, 2  ;;  %v2704_v26 = vrot.slane %v2078_v20, %v7023_v14  ;;  %v2711_v58 = vrot.slane %v2078_v20, %v7036_v15  ;;  %v3011_v38 = vmul.f32 %v6922_v30, %v8252_v24 }
 0x1b1   : > { %11117 = vst [vmem:[#allocation228_spill] sm:$0xff] %v8544_v19  ;;  %11118 = vst [vmem:[#allocation229_spill] sm:$0xff] %v8548_v13  ;;  %v11121_v13 = vcombine.high %v8187_v3, %v8187_v3  ;;  %v3012_v42 = vmul.f32 %v11051_v48, %v8338_v36  ;;  %v3013_v35 = vmul.f32 %v11052_v50, %v8351_v62  ;;  %v11125_v3 = vld [vmem:[#allocation5_spill] sm:$0xff] }
 0x1b2   : > { %11119 = vst [vmem:[#allocation230_spill] sm:$0xff] %v8552_v16  ;;  %11120 = vst [vmem:[#allocation231_spill] sm:$0xff] %v8558_v60  ;;  %v8568_v16 = vmul.f32 %v2697_v34, %v8199_v1  ;;  %v11122_v60 = vcombine.high %v8199_v1, %v8199_v1  ;;  %v8580_v17 = vmul.f32 %v2711_v58, %v8323_v6 }
 0x1b3   : > { %v2918_v5 = vmul.f32 %v2690_v9, %v11121_v13  ;;  %v3014_v13 = vmul.f32 %v11123_v28, %v8356_v25  ;;  %v3165_v9 = vmul.f32 %v6943_v40, %v8318_v44  ;;  %v3166_v34 = vmul.f32 %v11078_v23, %v8374_v10 }
 0x1b4   : > { %v8577_v20 = vmul.f32 %v2704_v26, %v11122_v60  ;;  %v3167_v51 = vmul.f32 %v11079_v59, %v8379_v52  ;;  %v3168_v1 = vmul.f32 %v11124_v27, %v8384_v0  ;;  %v3320_v58 = vmul.f32 %v11084_v61, %v8568_v16  ;;  %v11127_v61 = vld [vmem:[#allocation16_spill] sm:$0xff] }
 0x1b5   : > { %v3319_v60 = vmul.f32 %v10883_v22, %v2918_v5  ;;  %v3229_v26 = vadd.f32 %v3165_v9, %v3011_v38  ;;  %v3322_v44 = vmul.f32 %v11086_v47, %v8580_v17  ;;  %v3230_v49 = vadd.f32 %v3166_v34, %v3012_v42  ;;  %v11126_v38 = vld [vmem:[#allocation23_spill] sm:$0xff]  ;;  %v11128_v42 = vld [vmem:[#allocation45_spill] sm:$0xff] }
 0x1b6   : > { %v3321_v63 = vmul.f32 %v11085_v53, %v8577_v20  ;;  %v3231_v8 = vadd.f32 %v3167_v51, %v3013_v35  ;;  %v3232_v37 = vadd.f32 %v3168_v1, %v3014_v13  ;;  %v3501_v45 = vmul.f32 %v11125_v3, %v8252_v24 }
 0x1b7   : > { %v3383_v19 = vadd.f32 %v3319_v60, %v3229_v26  ;;  %v3502_v22 = vmul.f32 %v6948_v43, %v8338_v36  ;;  %v3503_v9 = vmul.f32 %v11126_v38, %v8351_v62  ;;  %v3504_v27 = vmul.f32 %v11127_v61, %v8356_v25  ;;  %v11129_v60 = vld [vmem:[#allocation30_spill] sm:$0xff] }
 0x1b8   : > { %v3384_v53 = vadd.f32 %v3320_v58, %v3230_v49  ;;  %v3385_v46 = vadd.f32 %v3321_v63, %v3231_v8  ;;  %v3386_v59 = vadd.f32 %v3322_v44, %v3232_v37  ;;  %v8609_v51 = vmul.f32 %v11128_v42, %v8369_v54  ;;  %v11130_v49 = vld [vmem:[#allocation31_spill] sm:$0xff] }
 0x1b9   : > { %v6337_v35 = vrot.slane %v3501_v45, 9  ;;  %v3759_v13 = vrot.slane %v3502_v22, 7  ;;  %v3762_v3 = vrot.slane %v3503_v9, 7  ;;  %v3765_v24 = vrot.slane %v3504_v27, 7  ;;  %v11131_v27 = vld [vmem:[#allocation46_spill] sm:$0xff] }
 0x1ba   : > { %v4014_v1 = vmul.f32 %v6986_v39, %v8374_v10  ;;  %v4015_v26 = vmul.f32 %v11129_v60, %v8379_v52  ;;  %v4016_v8 = vmul.f32 %v11130_v49, %v8384_v0  ;;  %v8622_v44 = vmul.f32 %v11131_v27, %v8477_v11 }
 0x1bb   : > { %v3760_v37 = vsel %vm6925_vm5, %v6337_v35, %v3759_v13  ;;  %v3761_v63 = vrot.slane %v3759_v13, 2  ;;  %v3764_v58 = vrot.slane %v3762_v3, 2  ;;  %v3767_v45 = vrot.slane %v3765_v24, 2 }
 0x1bc   : > { %v3902_v22 = vadd.f32 %v3760_v37, %v3383_v19  ;;  %v4271_v9 = vrot.slane %v4014_v1, 7  ;;  %v4274_v34 = vrot.slane %v4015_v26, 7  ;;  %v11132_v49 = vrot.slane %v8609_v51, 7 }
 0x1bd   : > { %v3763_v42 = vsel %vm6925_vm5, %v3761_v63, %v3762_v3  ;;  %v3766_v60 = vsel %vm6925_vm5, %v3764_v58, %v3765_v24  ;;  %v4277_v13 = vrot.slane %v4016_v8, 7  ;;  %v11133_v27 = vrot.slane %v8432_v4, 9 }
 0x1be   : > { %v3769_v35 = vsel %vm6925_vm5, %v3767_v45, %v11132_v49  ;;  %v3903_v39 = vadd.f32 %v3763_v42, %v3384_v53  ;;  %v3904_v19 = vadd.f32 %v3766_v60, %v3385_v46  ;;  %v4273_v26 = vrot.slane %v4271_v9, 2 }
 0x1bf   : > { %v3905_v37 = vadd.f32 %v3769_v35, %v3386_v59  ;;  %v4272_v1 = vsel %vm6925_vm5, %v11133_v27, %v4271_v9  ;;  %v4276_v61 = vrot.slane %v4274_v34, 2  ;;  %v4279_v3 = vrot.slane %v4277_v13, 2 }
 0x1c0   : > { %v10554_v63 = vrot.slane %v8622_v44, 7  ;;  %v4414_v24 = vadd.f32 %v4272_v1, %v3902_v22  ;;  %v4525_v58 = vmul.f32 %v10887_v18, %v2918_v5  ;;  %v4526_v49 = vmul.f32 %v11091_v32, %v8568_v16 }
 0x1c1   : > { %v4527_v53 = vmul.f32 %v11092_v2, %v8577_v20  ;;  %v4275_v59 = vsel %vm6925_vm5, %v4273_v26, %v4274_v34  ;;  %v4278_v4 = vsel %vm6925_vm5, %v4276_v61, %v4277_v13  ;;  %v4528_v18 = vmul.f32 %v10906_v57, %v8580_v17  ;;  %v11134_v34 = vld [vmem:[#allocation7_spill] sm:$0xff]  ;;  %v11135_v61 = vld [vmem:[#allocation13_spill] sm:$0xff]  ;;  %v11136_v13 = vld [vmem:[#allocation12_spill] sm:$0xff] }
 0x1c2   : > { %v4281_v46 = vsel %vm6925_vm5, %v4279_v3, %v10554_v63  ;;  %v4415_v5 = vadd.f32 %v4275_v59, %v3903_v39  ;;  %v4416_v42 = vadd.f32 %v4278_v4, %v3904_v19  ;;  %v6353_v8 = vrot.slane %v4525_v58, 9  ;;  %v11137_v26 = vld [vmem:[#allocation27_spill] sm:$0xff]  ;;  %v11139_v4 = vld [vmem:[#allocation28_spill] sm:$0xff] }
 0x1c3   : > { %v8652_v60 = vadd.f32 %v4281_v46, %v3905_v37  ;;  %v4783_v45 = vrot.slane %v4526_v49, 7  ;;  %v4786_v22 = vrot.slane %v4527_v53, 7  ;;  %v4789_v27 = vrot.slane %v4528_v18, 7  ;;  %v11138_v39 = vld [vmem:[#allocation59_spill] sm:$0xff]  ;;  %v11140_v18 = vld [vmem:[#allocation56_spill] sm:$0xff] }
 0x1c4   : > { %v5016_v9 = vmul.f32 %v11134_v34, %v8338_v36  ;;  %v5017_v35 = vmul.f32 %v11135_v61, %v8351_v62  ;;  %v5018_v1 = vmul.f32 %v11136_v13, %v8356_v25  ;;  %v5170_v3 = vmul.f32 %v11137_v26, %v8374_v10  ;;  %v11141_v25 = vld [vmem:[#allocation61_spill] sm:$0xff]  ;;  %v2082_v62 = vpop.permute.xlu1 %2081 }
 0x1c5   : > { %v5171_v19 = vmul.f32 %v11138_v39, %v8379_v52  ;;  %v4784_v37 = vsel %vm6925_vm5, %v6353_v8, %v4783_v45  ;;  %v4785_v58 = vrot.slane %v4783_v45, 2  ;;  %v4788_v49 = vrot.slane %v4786_v22, 2  ;;  %v11142_v45 = vld [vmem:[#allocation60_spill] sm:$0xff] }
 0x1c6   : > { %v8666_v53 = vrot.slane %v4789_v27, 2  ;;  %v4926_v59 = vadd.f32 %v4784_v37, %v4414_v24  ;;  %v5172_v46 = vmul.f32 %v11139_v4, %v8384_v0  ;;  %v5324_v63 = vmul.f32 %v11140_v18, %v8568_v16 }
 0x1c7   : > { %v5325_v10 = vmul.f32 %v11141_v25, %v8577_v20  ;;  %v4787_v52 = vsel %vm6925_vm5, %v4785_v58, %v4786_v22  ;;  %v4790_v8 = vsel %vm6925_vm5, %v4788_v49, %v4789_v27  ;;  %v5326_v36 = vmul.f32 %v11142_v45, %v8580_v17 }
 0x1c8   : > { %v8682_v24 = vcombine.high %v11142_v45, %v11142_v45  ;;  %v4927_v37 = vadd.f32 %v4787_v52, %v4415_v5  ;;  %v4928_v0 = vadd.f32 %v4790_v8, %v4416_v42  ;;  %v5080_v16 = vadd.f32 %v5016_v9, %v4926_v59  ;;  %v11146_v9 = vld [vmem:[#allocation132_spill] sm:$0xff] }
 0x1c9   : > { %v8686_v20 = vcombine.high %v8540_v12, %v8540_v12  ;;  %v2718_v25 = vrot.slane %v2082_v62, %v7017_v56  ;;  %v2725_v22 = vrot.slane %v2082_v62, %v7020_v55  ;;  %v2732_v27 = vrot.slane %v2082_v62, %v7023_v14 }
 0x1ca   : > { %11143 = vst [vmem:[#allocation5_spill] sm:$0xff] %v8682_v24  ;;  %v2739_v58 = vrot.slane %v2082_v62, %v7036_v15  ;;  %v5081_v17 = vadd.f32 %v5017_v35, %v4927_v37  ;;  %v5082_v49 = vadd.f32 %v5018_v1, %v4928_v0  ;;  %v5234_v18 = vadd.f32 %v5170_v3, %v5080_v16  ;;  %v11148_v15 = vld [vmem:[#allocation183_spill] sm:$0xff] }
 0x1cb   : > { %11144 = vst [vmem:[#allocation27_spill] sm:$0xff] %v8686_v20  ;;  %v3015_v52 = vmul.f32 %v6922_v30, %v8369_v54  ;;  %v11145_v5 = vcombine.high %v8323_v6, %v8323_v6  ;;  %v8700_v59 = vmul.f32 %v2725_v22, %v11146_v9  ;;  %v11147_v55 = vcombine.high %v11146_v9, %v11146_v9  ;;  %v11154_v9 = vld [vmem:[#allocation29_spill] sm:$0xff]  ;;  %v11155_v30 = vld [vmem:[#allocation228_spill] sm:$0xff] }
 0x1cc   : > { %v8708_v62 = vmul.f32 %v2739_v58, %v11148_v15  ;;  %v5235_v0 = vadd.f32 %v5171_v19, %v5081_v17  ;;  %v5236_v35 = vadd.f32 %v5172_v46, %v5082_v49  ;;  %v5388_v1 = vadd.f32 %v5324_v63, %v5234_v18  ;;  %v11151_v63 = vld [vmem:[#allocation24_spill] sm:$0xff]  ;;  %v11152_v18 = vld [vmem:[#allocation219_spill] sm:$0xff] }
 0x1cd   : > { %v8697_v42 = vmul.f32 %v2718_v25, %v11145_v5  ;;  %v8705_v14 = vmul.f32 %v2732_v27, %v11147_v55  ;;  %v3016_v3 = vmul.f32 %v11051_v48, %v8364_v29  ;;  %v3017_v6 = vmul.f32 %v11052_v50, %v8389_v7  ;;  %v11149_v25 = vld [vmem:[#allocation204_spill] sm:$0xff] }
 0x1ce   : > { %v3018_v8 = vmul.f32 %v11123_v28, %v11149_v25  ;;  %v3169_v37 = vmul.f32 %v6943_v40, %v8477_v11  ;;  %v3170_v16 = vmul.f32 %v11078_v23, %v8486_v41  ;;  %v5389_v22 = vadd.f32 %v5325_v10, %v5235_v0  ;;  %v11153_v58 = vld [vmem:[#allocation44_spill] sm:$0xff]  ;;  %v11158_v0 = vld [vmem:[#allocation54_spill] sm:$0xff]  ;;  %v11164_v40 = vld [vmem:[#allocation31_spill] sm:$0xff] }
 0x1cf   : > { %v5390_v27 = vadd.f32 %v5326_v36, %v5236_v35  ;;  %v8721_v19 = vadd.f32 %v8528_v21, %v5388_v1  ;;  %v3171_v46 = vmul.f32 %v11151_v63, %v8489_v33  ;;  %v3172_v17 = vmul.f32 %v11153_v58, %v11152_v18 }
 0x1d0   : > { %v3233_v49 = vadd.f32 %v3169_v37, %v3015_v52  ;;  %v3234_v5 = vadd.f32 %v3170_v16, %v3016_v3  ;;  %v3323_v55 = vmul.f32 %v11154_v9, %v8697_v42  ;;  %v8730_v50 = vadd.f32 %v11155_v30, %v5389_v22 }
 0x1d1   : > { %11150 = vst [vmem:[#allocation132_spill] sm:$0xff] %v8721_v19  ;;  %v8733_v10 = vadd.f32 %v8540_v12, %v5390_v27  ;;  %v3235_v36 = vadd.f32 %v3171_v46, %v3017_v6  ;;  %v3324_v35 = vmul.f32 %v11158_v0, %v8700_v59  ;;  %v3236_v1 = vadd.f32 %v3172_v17, %v3018_v8  ;;  %v11159_v19 = vld [vmem:[#allocation33_spill] sm:$0xff]  ;;  %v11160_v6 = vld [vmem:[#allocation16_spill] sm:$0xff] }
 0x1d2   : > { %11156 = vst [vmem:[#allocation183_spill] sm:$0xff] %v8730_v50  ;;  %v3325_v48 = vmul.f32 %v11159_v19, %v8705_v14  ;;  %v3326_v52 = vmul.f32 %v11086_v47, %v8708_v62  ;;  %v3387_v3 = vadd.f32 %v3323_v55, %v3233_v49  ;;  %v3506_v16 = vmul.f32 %v6948_v43, %v8364_v29  ;;  %v11162_v50 = vld [vmem:[#allocation26_spill] sm:$0xff] }
 0x1d3   : > { %11157 = vst [vmem:[#allocation232_spill] sm:$0xff] %v8733_v10  ;;  %v3388_v37 = vadd.f32 %v3324_v35, %v3234_v5  ;;  %v3507_v22 = vmul.f32 %v11126_v38, %v8389_v7  ;;  %v8747_v27 = vmul.f32 %v11160_v6, %v11149_v25  ;;  %v11161_v17 = vrot.slane %v8609_v51, 7  ;;  %v11163_v43 = vld [vmem:[#allocation30_spill] sm:$0xff] }
 0x1d4   : > { %v3389_v46 = vadd.f32 %v3325_v48, %v3235_v36  ;;  %v8749_v8 = vadd.f32 %v3326_v52, %v3236_v1  ;;  %v4018_v49 = vmul.f32 %v11162_v50, %v8486_v41  ;;  %v3771_v5 = vrot.slane %v3506_v16, 7  ;;  %v11166_v51 = vld [vmem:[#allocation58_spill] sm:$0xff] }
 0x1d5   : > { %v3770_v10 = vrot.slane %v11161_v17, 2  ;;  %v3774_v55 = vrot.slane %v3507_v22, 7  ;;  %v4019_v38 = vmul.f32 %v11163_v43, %v8489_v33  ;;  %v8760_v63 = vmul.f32 %v11164_v40, %v11152_v18 }
 0x1d6   : > { %v11165_v48 = vrot.slane %v8622_v44, 7  ;;  %v4283_v1 = vrot.slane %v4018_v49, 7  ;;  %v4529_v52 = vmul.f32 %v11166_v51, %v8697_v42  ;;  %v3773_v22 = vrot.slane %v3771_v5, 2 }
 0x1d7   : > { %v3772_v16 = vsel %vm6925_vm5, %v3770_v10, %v3771_v5  ;;  %v3776_v17 = vrot.slane %v3774_v55, 2  ;;  %v4286_v35 = vrot.slane %v4019_v38, 7  ;;  %v10574_v9 = vrot.slane %v8760_v63, 7 }
 0x1d8   : > { %v4282_v36 = vrot.slane %v11165_v48, 2  ;;  %v3906_v50 = vadd.f32 %v3772_v16, %v3387_v3  ;;  %v4285_v23 = vrot.slane %v4283_v1, 2  ;;  %v3775_v44 = vsel %vm6925_vm5, %v3773_v22, %v3774_v55 }
 0x1d9   : > { %v11167_v49 = vrot.slane %v8747_v27, 7  ;;  %v4288_v51 = vrot.slane %v4286_v35, 2  ;;  %v4530_v10 = vmul.f32 %v11091_v32, %v8700_v59  ;;  %v3907_v38 = vadd.f32 %v3775_v44, %v3388_v37  ;;  %v11168_v44 = vld [vmem:[#allocation40_spill] sm:$0xff] }
 0x1da   : > { %v4284_v43 = vsel %vm6925_vm5, %v4282_v36, %v4283_v1  ;;  %v4287_v5 = vsel %vm6925_vm5, %v4285_v23, %v4286_v35  ;;  %v4531_v1 = vmul.f32 %v11092_v2, %v8705_v14  ;;  %v8789_v16 = vmul.f32 %v10906_v57, %v8708_v62 }
 0x1db   : > { %v3778_v48 = vsel %vm6925_vm5, %v3776_v17, %v11167_v49  ;;  %v4418_v36 = vadd.f32 %v4284_v43, %v3906_v50  ;;  %v4290_v55 = vsel %vm6925_vm5, %v4288_v51, %v10574_v9  ;;  %v4792_v22 = vrot.slane %v4529_v52, 7 }
 0x1dc   : > { %v3908_v3 = vadd.f32 %v3778_v48, %v3389_v46  ;;  %v4419_v17 = vadd.f32 %v4287_v5, %v3907_v38  ;;  %v4795_v46 = vrot.slane %v4530_v10, 7  ;;  %v5019_v23 = vmul.f32 %v11168_v44, %v8369_v54  ;;  %v11169_v5 = vld [vmem:[#allocation47_spill] sm:$0xff] }
 0x1dd   : > { %v4793_v43 = vsel %vm6925_vm5, %v8666_v53, %v4792_v22  ;;  %v4794_v50 = vrot.slane %v4792_v22, 2  ;;  %v4798_v35 = vrot.slane %v4531_v1, 7  ;;  %v10580_v51 = vrot.slane %v8789_v16, 7 }
 0x1de   : > { %v4420_v37 = vadd.f32 %v4290_v55, %v3908_v3  ;;  %v4797_v49 = vrot.slane %v4795_v46, 2  ;;  %v4929_v48 = vadd.f32 %v4793_v43, %v8652_v60  ;;  %v5020_v52 = vmul.f32 %v11134_v34, %v8364_v29 }
 0x1df   : > { %v5021_v10 = vmul.f32 %v11135_v61, %v8389_v7  ;;  %v4796_v38 = vsel %vm6925_vm5, %v4794_v50, %v4795_v46  ;;  %v4800_v3 = vrot.slane %v4798_v35, 2  ;;  %v5022_v53 = vmul.f32 %v11136_v13, %v11149_v25  ;;  %v2071_v7 = vpop.permute.xlu0 %2070  ;;  %v11204_v13 = vld [vmem:[#allocation121_spill] sm:$0xff] }
 0x1e0   : > { %v5173_v55 = vmul.f32 %v11169_v5, %v8477_v11  ;;  %v4799_v1 = vsel %vm6925_vm5, %v4797_v49, %v4798_v35  ;;  %v4930_v60 = vadd.f32 %v4796_v38, %v4418_v36  ;;  %v5083_v22 = vadd.f32 %v5019_v23, %v4929_v48  ;;  %v11170_v48 = vld [vmem:[#allocation56_spill] sm:$0xff] }
 0x1e1   : > { %v5174_v43 = vmul.f32 %v11137_v26, %v8486_v41  ;;  %v4802_v46 = vsel %vm6925_vm5, %v4800_v3, %v10580_v51  ;;  %v4931_v50 = vadd.f32 %v4799_v1, %v4419_v17  ;;  %v5175_v9 = vmul.f32 %v11138_v39, %v8489_v33  ;;  %v11171_v3 = vld [vmem:[#allocation61_spill] sm:$0xff] }
 0x1e2   : > { %v5176_v11 = vmul.f32 %v11139_v4, %v11152_v18  ;;  %v4932_v29 = vadd.f32 %v4802_v46, %v4420_v37  ;;  %v5084_v35 = vadd.f32 %v5020_v52, %v4930_v60  ;;  %v5237_v36 = vadd.f32 %v5173_v55, %v5083_v22  ;;  %v11172_v55 = vld [vmem:[#allocation43_spill] sm:$0xff] }
 0x1e3   : > { %v5327_v23 = vmul.f32 %v8682_v24, %v8697_v42  ;;  %v5085_v49 = vadd.f32 %v5021_v10, %v4931_v50  ;;  %v5328_v38 = vmul.f32 %v11170_v48, %v8700_v59  ;;  %v5329_v17 = vmul.f32 %v11171_v3, %v8705_v14 }
 0x1e4   : > { %v5330_v1 = vmul.f32 %v11142_v45, %v8708_v62  ;;  %v5086_v51 = vadd.f32 %v5022_v53, %v4932_v29  ;;  %v5238_v33 = vadd.f32 %v5174_v43, %v5084_v35  ;;  %v2683_v37 = vrot.slane %v2071_v7, %v7017_v56  ;;  %v11174_v29 = vld [vmem:[#allocation185_spill] sm:$0xff] }
 0x1e5   : > { %v5391_v41 = vadd.f32 %v5327_v23, %v5237_v36  ;;  %v5239_v52 = vadd.f32 %v5175_v9, %v5085_v49  ;;  %v3010_v60 = vmul.f32 %v11123_v28, %v11172_v55  ;;  %v3164_v42 = vmul.f32 %v11153_v58, %v11149_v25  ;;  %v11207_v28 = vld [vmem:[#allocation85_spill] sm:$0xff] }
 0x1e6   : > { %v3318_v59 = vmul.f32 %v11086_v47, %v11152_v18  ;;  %v5240_v10 = vadd.f32 %v5176_v11, %v5086_v51  ;;  %v5392_v14 = vadd.f32 %v5328_v38, %v5238_v33  ;;  %v2917_v62 = vmul.f32 %v2683_v37, %v11174_v29  ;;  %v11178_v33 = vld [vmem:[#allocation62_spill] sm:$0xff]  ;;  %v11179_v11 = vld [vmem:[#allocation32_spill] sm:$0xff] }
 0x1e7   : > { %v8836_v22 = vadd.f32 %v8686_v20, %v5391_v41  ;;  %v5393_v53 = vadd.f32 %v5329_v17, %v5239_v52  ;;  %v3228_v43 = vadd.f32 %v3164_v42, %v3010_v60  ;;  %v8841_v7 = vmul.f32 %v11160_v6, %v11172_v55  ;;  %v11182_v37 = vld [vmem:[#allocation38_spill] sm:$0xff]  ;;  %v2086_v60 = vpop.permute.xlu1 %2085 }
 0x1e8   : > { %v8845_v9 = vmul.f32 %v11164_v40, %v11149_v25  ;;  %v5394_v46 = vadd.f32 %v5330_v1, %v5240_v10  ;;  %v8848_v50 = vadd.f32 %v8528_v21, %v5392_v14  ;;  %v4012_v41 = vmul.f32 %v11179_v11, %v11178_v33  ;;  %v11203_v55 = vld [vmem:[#allocation122_spill] sm:$0xff] }
 0x1e9   : > { %11173 = vst [vmem:[#allocation233_spill] sm:$0xff] %v8836_v22  ;;  %11175 = vst [vmem:[#allocation185_spill] sm:$0xff] %v8841_v7  ;;  %v4021_v51 = vmul.f32 %v11179_v11, %v2917_v62  ;;  %v8854_v35 = vadd.f32 %v11155_v30, %v5393_v53  ;;  %v3382_v36 = vadd.f32 %v3318_v59, %v3228_v43  ;;  %v10583_v23 = vrot.slane %v8841_v7, 7  ;;  %v11183_v59 = vld [vmem:[#allocation53_spill] sm:$0xff]  ;;  %v11186_v22 = vld [vmem:[#allocation18_spill] sm:$0xff] }
 0x1ea   : > { %11176 = vst [vmem:[#allocation234_spill] sm:$0xff] %v8845_v9  ;;  %11177 = vst [vmem:[#allocation235_spill] sm:$0xff] %v8848_v50  ;;  %v10584_v49 = vrot.slane %v8845_v9, 7  ;;  %v4267_v38 = vrot.slane %v4012_v41, 7  ;;  %v8860_v1 = vmul.f32 %v10906_v57, %v11152_v18  ;;  %v4524_v52 = vmul.f32 %v11182_v37, %v2917_v62 }
 0x1eb   : > { %11180 = vst [vmem:[#allocation32_spill] sm:$0xff] %v8854_v35  ;;  %v4292_v17 = vrot.slane %v4021_v51, 7  ;;  %v3754_v42 = vrot.slane %v10583_v23, 2  ;;  %v5015_v14 = vmul.f32 %v11168_v44, %v11183_v59  ;;  %v5169_v29 = vmul.f32 %v11169_v5, %v11178_v33  ;;  %v11184_v51 = vld [vmem:[#allocation51_spill] sm:$0xff] }
 0x1ec   : > { %11181 = vst [vmem:[#allocation236_spill] sm:$0xff] %v8860_v1  ;;  %v4266_v10 = vrot.slane %v10584_v49, 2  ;;  %v4779_v43 = vrot.slane %v4524_v52, 7  ;;  %v5323_v11 = vmul.f32 %v8682_v24, %v2917_v62  ;;  %v1822_v41 = vcombine.high %v11148_v15, %v11148_v15 }
 0x1ed   : > { %v11185_v35 = vrot.slane %v11184_v51, 7  ;;  %v2746_v50 = vrot.slane %v2086_v60, %v7017_v56  ;;  %v3509_v18 = vmul.f32 %v11186_v22, %v11178_v33  ;;  %v11187_v52 = vrot.slane %v8860_v1, 7  ;;  %v8897_v22 = vld [vmem:[%s10316_s5 + $0x8] ss:$0 sps:$4 sm:$0xff]  }
 0x1ee   : > { %v4268_v49 = vsel %vm6925_vm5, %v4266_v10, %v4267_v38  ;;  %v11188_v7 = vrot.slane %v8747_v27, 7  ;;  %v11189_v51 = vrot.slane %v8760_v63, 7  ;;  %v5023_v56 = vmul.f32 %v11168_v44, %v11178_v33  ;;  %v11191_v10 = vld [vmem:[#allocation3_spill] sm:$0xff]  ;;  %6442 = vmatprep.subr.msk.bf16.mxu1 %vm6019_vm6, %v8897_v22  ;;  %v11202_v33 = vld [vmem:[#allocation120_spill] sm:$0xff] }
 0x1ef   : > { %v3756_v23 = vsel %vm6925_vm5, %v3754_v42, %v11185_v35  ;;  %v4778_v9 = vrot.slane %v11187_v52, 2  ;;  %v2926_v54 = vmul.f32 %v2746_v50, %v1822_v41  ;;  %v3780_v35 = vrot.slane %v3509_v18, 7  ;;  %v11194_v41 = vld [vmem:[#allocation152_spill] sm:$0xff]  ;;  %v11195_v52 = vld [vmem:[#allocation29_spill] sm:$0xff] }
 0x1f0   : > { %v3901_v53 = vadd.f32 %v3756_v23, %v3382_v36  ;;  %v3779_v15 = vrot.slane %v11188_v7, 2  ;;  %v4291_v25 = vrot.slane %v11189_v51, 2  ;;  %v11190_v42 = vrot.slane %v8789_v16, 7 }
 0x1f1   : > { %v4780_v27 = vsel %vm6925_vm5, %v4778_v9, %v4779_v43  ;;  %v5177_v18 = vmul.f32 %v11169_v5, %v2917_v62  ;;  %v4533_v7 = vmul.f32 %v11182_v37, %v2926_v54  ;;  %v5331_v50 = vmul.f32 %v8682_v24, %v2926_v54  ;;  %v11192_v62 = vld [vmem:[#allocation151_spill] sm:$0xff]  ;;  %v11193_v37 = vld [vmem:[#allocation64_spill] sm:$0xff] }
 0x1f2   : > { %v4803_v38 = vrot.slane %v11190_v42, 2  ;;  %v4413_v36 = vadd.f32 %v4268_v49, %v3901_v53  ;;  %v4293_v63 = vsel %vm6925_vm5, %v4291_v25, %v4292_v17  ;;  %v3781_v16 = vsel %vm6925_vm5, %v3779_v15, %v3780_v35  ;;  %v11196_v15 = vld [vmem:[#allocation154_spill] sm:$0xff] }
 0x1f3   : > { %v5485_v23 = vadd.f32 %v8540_v12, %v5394_v46  ;;  %v3909_v49 = vadd.f32 %v3781_v16, %v8749_v8  ;;  %v3264_v9 = vmul.f32 %v11158_v0, %v11191_v10  ;;  %v4804_v53 = vrot.slane %v4533_v7, 7  ;;  %v11199_v16 = vld [vmem:[#allocation79_spill] sm:$0xff] }
 0x1f4   : > { %v4925_v60 = vadd.f32 %v4780_v27, %v4413_v36  ;;  %v3265_v17 = vmul.f32 %v11159_v19, %v11192_v62  ;;  %v3266_v54 = vmul.f32 %v11086_v47, %v11193_v37  ;;  %v3267_v8 = vmul.f32 %v11195_v52, %v11194_v41  ;;  %v11198_v36 = vld [vmem:[#allocation129_spill] sm:$0xff] }
 0x1f5   : > { %v5549_v25 = vmax.f32 %v5485_v23, 0.0  ;;  %v4421_v46 = vadd.f32 %v4293_v63, %v3909_v49  ;;  %v3268_v51 = vmul.f32 %v11158_v0, %v11196_v15  ;;  %v4805_v35 = vsel %vm6925_vm5, %v4803_v38, %v4804_v53  ;;  %v11205_v38 = vld [vmem:[#allocation77_spill] sm:$0xff]  ;;  %v11206_v53 = vld [vmem:[#allocation83_spill] sm:$0xff] }
 0x1f6   : > { %v5079_v43 = vadd.f32 %v5015_v14, %v4925_v60  ;;  %v3269_v27 = vmul.f32 %v11159_v19, %v11198_v36  ;;  %v3328_v7 = vadd.f32 %v3264_v9, %v11199_v16  ;;  %v11200_v14 = vld [vmem:[#allocation80_spill] sm:$0xff]  ;;  %v11201_v60 = vld [vmem:[#allocation93_spill] sm:$0xff]  ;;  %v3331_v59 = vadd.f32 %v3267_v8, %v11202_v33  ;;  %v11212_v33 = vld [vmem:[#allocation127_spill] sm:$0xff] }
 0x1f7   : > { %v8924_v42 = vmin.f32 %v5549_v25, 6.0  ;;  %v4933_v1 = vadd.f32 %v4805_v35, %v4421_v46  ;;  %v3329_v63 = vadd.f32 %v3265_v17, %v11200_v14  ;;  %v3330_v49 = vadd.f32 %v3266_v54, %v11201_v60  ;;  %v11208_v9 = vld [vmem:[#allocation88_spill] sm:$0xff]  ;;  %v11210_v17 = vld [vmem:[#allocation126_spill] sm:$0xff]  ;;  %v11226_v60 = vld [vmem:[#allocation99_spill] sm:$0xff] }
 0x1f8   : > { %v5233_v23 = vadd.f32 %v5169_v29, %v5079_v43  ;;  %v3332_v44 = vadd.f32 %v3268_v51, %v11203_v55  ;;  %v3333_v61 = vadd.f32 %v3269_v27, %v11204_v13  ;;  %v3846_v25 = vadd.f32 %v11206_v53, %v11205_v38  ;;  %v11209_v43 = vld [vmem:[#allocation125_spill] sm:$0xff]  ;;  %v11211_v54 = vld [vmem:[#allocation128_spill] sm:$0xff] }
 0x1f9   : > { %11197 = vst [vmem:[#allocation38_spill] sm:$0xff] %v8924_v42  ;;  %v5087_v6 = vadd.f32 %v5023_v56, %v4933_v1  ;;  %v3847_v40 = vadd.f32 %v11207_v28, %v3328_v7  ;;  %v3848_v29 = vadd.f32 %v11208_v9, %v3329_v63  ;;  %v3849_v46 = vadd.f32 %v11209_v43, %v3330_v49  ;;  %v11214_v51 = vld [vmem:[#allocation69_spill] sm:$0xff]  ;;  %v11217_v1 = vld [vmem:[#allocation94_spill] sm:$0xff]  ;;  %v11219_v7 = vld [vmem:[#allocation75_spill] sm:$0xff] }
 0x1fa   : > { %v5387_v34 = vadd.f32 %v5323_v11, %v5233_v23  ;;  %v3850_v35 = vadd.f32 %v11210_v17, %v3331_v59  ;;  %v3851_v16 = vadd.f32 %v11211_v54, %v3332_v44  ;;  %v3852_v8 = vadd.f32 %v11212_v33, %v3333_v61  ;;  %v11216_v11 = vld [vmem:[#allocation74_spill] sm:$0xff]  ;;  %v11220_v23 = vld [vmem:[#allocation96_spill] sm:$0xff]  ;;  %v11229_v9 = vld [vmem:[#allocation139_spill] sm:$0xff] }
 0x1fb   : > { %v5241_v13 = vadd.f32 %v5177_v18, %v5087_v6  ;;  %v11215_v27 = vrot.slane %v11214_v51, 7  ;;  %v11218_v56 = vrot.slane %v11217_v1, 7  ;;  %v11221_v44 = vrot.slane %v11220_v23, 7  ;;  %v11222_v14 = vld [vmem:[#allocation104_spill] sm:$0xff]  ;;  %v11223_v61 = vld [vmem:[#allocation98_spill] sm:$0xff]  ;;  %v11225_v18 = vld [vmem:[#allocation107_spill] sm:$0xff] }
 0x1fc   : > { %v8943_v55 = vadd.f32 %v8686_v20, %v5387_v34  ;;  %v11224_v6 = vrot.slane %v11223_v61, 7  ;;  %v11227_v49 = vrot.slane %v11226_v60, 7  ;;  %v11228_v38 = vld [vmem:[#allocation108_spill] sm:$0xff]  ;;  %v11230_v43 = vrot.slane %v11229_v9, 7  ;;  %v11231_v17 = vld [vmem:[#allocation111_spill] sm:$0xff]  ;;  %v11243_v33 = vld [vmem:[#allocation82_spill] sm:$0xff] }
 0x1fd   : > { %v4100_v28 = vsel %vm6925_vm5, %v11216_v11, %v11215_v27  ;;  %v4103_v59 = vsel %vm6925_vm5, %v11219_v7, %v11218_v56  ;;  %v4106_v34 = vsel %vm6925_vm5, %v11222_v14, %v11221_v44  ;;  %v5395_v51 = vadd.f32 %v5331_v50, %v5241_v13  ;;  %v11232_v27 = vld [vmem:[#allocation73_spill] sm:$0xff]  ;;  %v11233_v50 = vld [vmem:[#allocation58_spill] sm:$0xff] }
 0x1fe   : > { %11213 = vst [vmem:[#allocation51_spill] sm:$0xff] %v8943_v55  ;;  %v4109_v63 = vsel %vm6925_vm5, %v11225_v18, %v11224_v6  ;;  %v4112_v53 = vsel %vm6925_vm5, %v11228_v38, %v11227_v49  ;;  %v4115_v54 = vsel %vm6925_vm5, %v11231_v17, %v11230_v43  ;;  %v4358_v11 = vadd.f32 %v11232_v27, %v3846_v25  ;;  %v11236_v38 = vld [vmem:[#allocation143_spill] sm:$0xff]  ;;  %v11273_v55 = vld [vmem:[#allocation66_spill] sm:$0xff] }
 0x1ff   : > { %v4359_v1 = vadd.f32 %v4100_v28, %v3847_v40  ;;  %v4360_v56 = vadd.f32 %v4103_v59, %v3848_v29  ;;  %v4361_v7 = vadd.f32 %v4106_v34, %v3849_v46  ;;  %v4362_v23 = vadd.f32 %v4109_v63, %v3850_v35 }
 0x200   : > { %v4363_v44 = vadd.f32 %v4112_v53, %v3851_v16  ;;  %v5486_v14 = vadd.f32 %v8686_v20, %v5395_v51  ;;  %v4364_v61 = vadd.f32 %v4115_v54, %v3852_v8  ;;  %v4463_v6 = vmul.f32 %v11091_v32, %v11191_v10  ;;  %v11234_v8 = vld [vmem:[#allocation63_spill] sm:$0xff] }
 0x201   : > { %v4464_v18 = vmul.f32 %v11092_v2, %v11192_v62  ;;  %v4465_v60 = vmul.f32 %v10906_v57, %v11193_v37  ;;  %v4466_v25 = vmul.f32 %v11233_v50, %v11194_v41  ;;  %v4467_v40 = vmul.f32 %v11091_v32, %v11196_v15 }
 0x202   : > { %v4468_v29 = vmul.f32 %v11092_v2, %v11198_v36  ;;  %v5550_v46 = vmax.f32 %v5486_v14, 0.0  ;;  %v4608_v35 = vrot.slane %v4463_v6, 7  ;;  %v5114_v13 = vmul.f32 %v11137_v26, %v11234_v8 }
 0x203   : > { %v4611_v16 = vrot.slane %v4464_v18, 7  ;;  %v4614_v28 = vrot.slane %v4465_v60, 7  ;;  %v4617_v59 = vrot.slane %v4466_v25, 7  ;;  %v4620_v34 = vrot.slane %v4467_v40, 7 }
 0x204   : > { %v4623_v63 = vrot.slane %v4468_v29, 7  ;;  %v8992_v49 = vmin.f32 %v5550_v46, 6.0  ;;  %v11237_v53 = vrot.slane %v11236_v38, 9  ;;  %v4610_v43 = vrot.slane %v4608_v35, 2 }
 0x205   : > { %v4613_v17 = vrot.slane %v4611_v16, 2  ;;  %v4616_v54 = vrot.slane %v4614_v28, 2  ;;  %v4619_v51 = vrot.slane %v4617_v59, 2  ;;  %v4622_v27 = vrot.slane %v4620_v34, 2 }
 0x206   : > { %11235 = vst [vmem:[#allocation18_spill] sm:$0xff] %v8992_v49  ;;  %v4609_v9 = vsel %vm6925_vm5, %v11237_v53, %v4608_v35  ;;  %v4625_v14 = vrot.slane %v4623_v63, 2  ;;  %v4612_v18 = vsel %vm6925_vm5, %v4610_v43, %v4611_v16  ;;  %v11238_v35 = vld [vmem:[#allocation144_spill] sm:$0xff]  ;;  %v11245_v49 = vld [vmem:[#allocation123_spill] sm:$0xff] }
 0x207   : > { %v4615_v60 = vsel %vm6925_vm5, %v4613_v17, %v4614_v28  ;;  %v4870_v25 = vadd.f32 %v4609_v9, %v4358_v11  ;;  %v4618_v40 = vsel %vm6925_vm5, %v4616_v54, %v4617_v59  ;;  %v4621_v29 = vsel %vm6925_vm5, %v4619_v51, %v4620_v34  ;;  %v11240_v9 = vld [vmem:[#allocation78_spill] sm:$0xff]  ;;  %v11241_v59 = vld [vmem:[#allocation65_spill] sm:$0xff] }
 0x208   : > { %v4624_v46 = vsel %vm6925_vm5, %v4622_v27, %v4623_v63  ;;  %v11239_v8 = vrot.slane %v11238_v35, 7  ;;  %v4871_v53 = vadd.f32 %v4612_v18, %v4359_v1  ;;  %v4872_v16 = vadd.f32 %v4615_v60, %v4360_v56  ;;  %v11242_v34 = vld [vmem:[#allocation81_spill] sm:$0xff]  ;;  %v11244_v27 = vld [vmem:[#allocation118_spill] sm:$0xff]  ;;  %v11247_v56 = vld [vmem:[#allocation124_spill] sm:$0xff] }
 0x209   : > { %v4873_v43 = vadd.f32 %v4618_v40, %v4361_v7  ;;  %v4874_v6 = vadd.f32 %v4621_v29, %v4362_v23  ;;  %v4875_v28 = vadd.f32 %v4624_v46, %v4363_v44  ;;  %v5024_v17 = vadd.f32 %v11240_v9, %v4870_v25  ;;  %v11248_v23 = vld [vmem:[#allocation84_spill] sm:$0xff]  ;;  %v11250_v60 = vld [vmem:[#allocation87_spill] sm:$0xff]  ;;  %v11251_v40 = vld [vmem:[#allocation90_spill] sm:$0xff] }
 0x20a   : > { %v4627_v38 = vsel %vm6925_vm5, %v4625_v14, %v11239_v8  ;;  %v5115_v54 = vmul.f32 %v11138_v39, %v11241_v59  ;;  %v5025_v51 = vadd.f32 %v11242_v34, %v4871_v53  ;;  %v5026_v63 = vadd.f32 %v11243_v33, %v4872_v16  ;;  %v11246_v14 = vld [vmem:[#allocation119_spill] sm:$0xff]  ;;  %v11252_v29 = vld [vmem:[#allocation133_spill] sm:$0xff]  ;;  %v11254_v34 = vld [vmem:[#allocation10_spill] sm:$0xff] }
 0x20b   : > { %v4876_v11 = vadd.f32 %v4627_v38, %v4364_v61  ;;  %v5027_v35 = vadd.f32 %v11244_v27, %v4873_v43  ;;  %v5028_v42 = vadd.f32 %v11245_v49, %v4874_v6  ;;  %v5029_v1 = vadd.f32 %v11246_v14, %v4875_v28  ;;  %v11249_v61 = vld [vmem:[#allocation86_spill] sm:$0xff] }
 0x20c   : > { %v5116_v44 = vmul.f32 %v11139_v4, %v11248_v23  ;;  %v5117_v18 = vmul.f32 %v11169_v5, %v11249_v61  ;;  %v5118_v25 = vmul.f32 %v11137_v26, %v11250_v60  ;;  %v5119_v33 = vmul.f32 %v11138_v39, %v11251_v40  ;;  %v11255_v23 = vld [vmem:[#allocation153_spill] sm:$0xff] }
 0x20d   : > { %v5030_v7 = vadd.f32 %v11247_v56, %v4876_v11  ;;  %v5120_v46 = vmul.f32 %v11139_v4, %v11252_v29  ;;  %v5178_v49 = vadd.f32 %v5114_v13, %v5024_v17  ;;  %v5179_v6 = vadd.f32 %v5115_v54, %v5025_v51  ;;  %v11253_v54 = vld [vmem:[#allocation131_spill] sm:$0xff] }
 0x20e   : > { %v5180_v8 = vadd.f32 %v5116_v44, %v5026_v63  ;;  %v5181_v38 = vadd.f32 %v5117_v18, %v5027_v35  ;;  %v5268_v53 = vmul.f32 %v11170_v48, %v11191_v10  ;;  %v5182_v16 = vadd.f32 %v5118_v25, %v5028_v42 }
 0x20f   : > { %v5183_v43 = vadd.f32 %v5119_v33, %v5029_v1  ;;  %v5184_v28 = vadd.f32 %v5120_v46, %v5030_v7  ;;  %v5269_v11 = vmul.f32 %v11171_v3, %v11192_v62  ;;  %v5270_v9 = vmul.f32 %v11142_v45, %v11193_v37 }
 0x210   : > { %v5271_v59 = vmul.f32 %v8682_v24, %v11194_v41  ;;  %v5272_v13 = vmul.f32 %v11170_v48, %v11196_v15  ;;  %v5273_v17 = vmul.f32 %v11171_v3, %v11198_v36  ;;  %v5274_v42 = vmul.f32 %v11142_v45, %v11253_v54 }
 0x211   : > { %v5275_v51 = vmul.f32 %v8682_v24, %v11254_v34  ;;  %v5332_v63 = vadd.f32 %v5268_v53, %v5178_v49  ;;  %v5333_v27 = vadd.f32 %v5269_v11, %v5179_v6  ;;  %v5334_v35 = vadd.f32 %v5270_v9, %v5180_v8 }
 0x212   : > { %v5335_v14 = vadd.f32 %v5271_v59, %v5181_v38  ;;  %v5336_v1 = vadd.f32 %v5272_v13, %v5182_v16  ;;  %v5337_v56 = vadd.f32 %v5273_v17, %v5183_v43  ;;  %v5338_v7 = vadd.f32 %v5274_v42, %v5184_v28 }
 0x213   : > { %v5339_v44 = vadd.f32 %v5275_v51, %v11255_v23  ;;  %v5423_v61 = vadd.f32 %v8528_v21, %v5332_v63  ;;  %v5424_v18 = vadd.f32 %v11155_v30, %v5333_v27  ;;  %v5425_v60 = vadd.f32 %v8540_v12, %v5334_v35  ;;  %v11257_v23 = vld [vmem:[#allocation2_spill] sm:$0xff] }
 0x214   : > { %v5426_v25 = vadd.f32 %v8686_v20, %v5335_v14  ;;  %v5427_v40 = vadd.f32 %v8528_v21, %v5336_v1  ;;  %v5428_v33 = vadd.f32 %v11155_v30, %v5337_v56  ;;  %v5429_v29 = vadd.f32 %v8540_v12, %v5338_v7  ;;  %v11256_v56 = vld [vmem:[#allocation42_spill] sm:$0xff] }
 0x215   : > { %v5430_v46 = vadd.f32 %v8686_v20, %v5339_v44  ;;  %v5487_v49 = vmax.f32 %v5423_v61, 0.0  ;;  %v5488_v6 = vmax.f32 %v5424_v18, 0.0  ;;  %v5489_v8 = vmax.f32 %v5425_v60, 0.0  ;;  %v11258_v18 = vld [vmem:[#allocation24_spill] sm:$0xff] }
 0x216   : > { %v5490_v38 = vmax.f32 %v5426_v25, 0.0  ;;  %v5491_v53 = vmax.f32 %v5427_v40, 0.0  ;;  %v5492_v16 = vmax.f32 %v5428_v33, 0.0  ;;  %v5493_v43 = vmax.f32 %v5429_v29, 0.0  ;;  %v11259_v29 = vld [vmem:[#allocation14_spill] sm:$0xff] }
 0x217   : > { %v5494_v28 = vmax.f32 %v5430_v46, 0.0  ;;  %v5551_v11 = vmin.f32 %v5487_v49, 6.0  ;;  %v5552_v9 = vmin.f32 %v5488_v6, 6.0  ;;  %v5553_v59 = vmin.f32 %v5489_v8, 6.0  ;;  %v11260_v8 = vld [vmem:[#allocation67_spill] sm:$0xff] }
 0x218   : > { %v5554_v13 = vmin.f32 %v5490_v38, 6.0  ;;  %v5555_v17 = vmin.f32 %v5491_v53, 6.0  ;;  %v5556_v42 = vmin.f32 %v5492_v16, 6.0  ;;  %v5557_v51 = vmin.f32 %v5493_v43, 6.0  ;;  %v11261_v53 = vld [vmem:[#allocation68_spill] sm:$0xff] }
 0x219   : > { %v5558_v63 = vmin.f32 %v5494_v28, 6.0  ;;  %v5679_v27 = vcombine.low %v5551_v11, %v5552_v9  ;;  %v6021_v1 = vsel %vm6019_vm6, %v8897_v22, 0  ;;  %v3118_v7 = vmul.f32 %v11256_v56, %v11191_v10  ;;  %v11262_v28 = vld [vmem:[#allocation89_spill] sm:$0xff]  ;;  %v11263_v9 = vld [vmem:[#allocation91_spill] sm:$0xff] }
 0x21a   : > { %v5680_v35 = vcombine.low %v5553_v59, %v5554_v13  ;;  %v5696_v14 = vcombine.low %v5555_v17, %v5556_v42  ;;  %6421 = vmatpush3.bf16.msra.mxu1 %v6021_v1  ;;  %v3119_v60 = vmul.f32 %v11258_v18, %v11192_v62  ;;  %v3120_v25 = vmul.f32 %v11153_v58, %v11193_v37  ;;  %v11264_v13 = vld [vmem:[#allocation92_spill] sm:$0xff] }
 0x21b   : > { %v5687_v44 = vrot.slane %v5679_v27, %v11257_v23  ;;  %v5697_v61 = vcombine.low %v5557_v51, %v5558_v63  ;;  %v3121_v22 = vmul.f32 %v11259_v29, %v11194_v41  ;;  %v3122_v46 = vmul.f32 %v11256_v56, %v11196_v15  ;;  %v11265_v51 = vld [vmem:[#allocation95_spill] sm:$0xff]  ;;  %v11266_v27 = vld [vmem:[#allocation148_spill] sm:$0xff] }
 0x21c   : > { %v5694_v40 = vrot.slane %v5680_v35, %v11257_v23  ;;  %v5704_v33 = vrot.slane %v5696_v14, %v11257_v23  ;;  %v3123_v6 = vmul.f32 %v11258_v18, %v11198_v36  ;;  %v3182_v38 = vadd.f32 %v3118_v7, %v11260_v8  ;;  %v11267_v14 = vld [vmem:[#allocation150_spill] sm:$0xff] }
 0x21d   : > { %v5711_v49 = vrot.slane %v5697_v61, %v11257_v23  ;;  %v3183_v16 = vadd.f32 %v3119_v60, %v11261_v53  ;;  %v3184_v11 = vadd.f32 %v3120_v25, %v11262_v28  ;;  %v3185_v59 = vadd.f32 %v3121_v22, %v11263_v9  ;;  %v11268_v61 = vld [vmem:[#allocation149_spill] sm:$0xff]  ;;  %v11269_v60 = vld [vmem:[#allocation8_spill] sm:$0xff] }
 0x21e   : > { %v5695_v43 = vcombine.low %v5687_v44, %v5694_v40  ;;  %v3186_v17 = vadd.f32 %v3122_v46, %v11264_v13  ;;  %v3187_v63 = vadd.f32 %v3123_v6, %v11265_v51  ;;  %v3272_v35 = vmul.f32 %v11158_v0, %v11266_v27  ;;  %v11270_v25 = vld [vmem:[#allocation157_spill] sm:$0xff]  ;;  %v11271_v22 = vld [vmem:[#allocation160_spill] sm:$0xff] }
 0x21f   : > { %v5712_v42 = vcombine.low %v5704_v33, %v5711_v49  ;;  %v3273_v1 = vmul.f32 %v11159_v19, %v11267_v14  ;;  %v3274_v7 = vmul.f32 %v11086_v47, %v11268_v61  ;;  %v3275_v44 = vmul.f32 %v11195_v52, %v11269_v60  ;;  %v11272_v49 = vld [vmem:[#allocation159_spill] sm:$0xff]  ;;  %v11274_v52 = vld [vmem:[#allocation76_spill] sm:$0xff] }
 0x220   : > { %v3276_v40 = vmul.f32 %v11158_v0, %v11270_v25  ;;  %v3277_v33 = vmul.f32 %v11159_v19, %v11271_v22  ;;  %v3278_v6 = vmul.f32 %v11086_v47, %v11272_v49  ;;  %v3336_v8 = vadd.f32 %v3272_v35, %v3182_v38  ;;  %v11275_v0 = vld [vmem:[#allocation97_spill] sm:$0xff]  ;;  %v11276_v19 = vld [vmem:[#allocation30_spill] sm:$0xff]  ;;  %v11278_v47 = vld [vmem:[#allocation103_spill] sm:$0xff] }
 0x221   : > { %v5967_v46 = vpack.c.bf16 %v5712_v42, %v5695_v43  ;;  %v3337_v53 = vadd.f32 %v3273_v1, %v3183_v16  ;;  %v3338_v28 = vadd.f32 %v3274_v7, %v3184_v11  ;;  %v3339_v9 = vadd.f32 %v3275_v44, %v3185_v59  ;;  %v11277_v42 = vld [vmem:[#allocation101_spill] sm:$0xff]  ;;  %v11279_v16 = vld [vmem:[#allocation106_spill] sm:$0xff]  ;;  %v11280_v59 = vld [vmem:[#allocation140_spill] sm:$0xff] }
 0x222   : > { %v3340_v13 = vadd.f32 %v3276_v40, %v3186_v17  ;;  %v3341_v51 = vadd.f32 %v3277_v33, %v3187_v63  ;;  %v3342_v34 = vadd.f32 %v3278_v6, %v11273_v55  ;;  %v3855_v29 = vadd.f32 %v11274_v52, %v3336_v8  ;;  %v11281_v63 = vld [vmem:[#allocation142_spill] sm:$0xff]  ;;  %v11282_v1 = vld [vmem:[#allocation31_spill] sm:$0xff]  ;;  %v11285_v33 = vld [vmem:[#allocation141_spill] sm:$0xff] }
 0x223   : > { %6422 = vmatprep.mubr.msk.bf16.mxu1 %vm5994_vm7, %v5967_v46  ;;  %v3856_v58 = vadd.f32 %v11275_v0, %v3337_v53  ;;  %v3961_v43 = vmul.f32 %v11276_v19, %v11192_v62  ;;  %v3857_v18 = vadd.f32 %v11277_v42, %v3338_v28  ;;  %v3858_v38 = vadd.f32 %v11278_v47, %v3339_v9  ;;  %v11283_v52 = vld [vmem:[#allocation46_spill] sm:$0xff]  ;;  %v11287_v8 = vld [vmem:[#allocation72_spill] sm:$0xff]  ;;  %v11288_v53 = vld [vmem:[#allocation147_spill] sm:$0xff] }
 0x224   : > { %v3859_v11 = vadd.f32 %v11279_v16, %v3340_v13  ;;  %v3860_v17 = vadd.f32 %v11280_v59, %v3341_v51  ;;  %v3861_v35 = vadd.f32 %v11281_v63, %v3342_v34  ;;  %v3962_v55 = vmul.f32 %v11282_v1, %v11193_v37  ;;  %v11284_v0 = vld [vmem:[#allocation26_spill] sm:$0xff] }
 0x225   : > { %v3963_v7 = vmul.f32 %v11283_v52, %v11194_v41  ;;  %v3964_v44 = vmul.f32 %v11284_v0, %v11196_v15  ;;  %v3965_v40 = vmul.f32 %v11276_v19, %v11198_v36  ;;  %v11286_v47 = vrot.slane %v11285_v33, 7  ;;  %v11289_v51 = vld [vmem:[#allocation138_spill] sm:$0xff] }
 0x226   : > { %v4124_v6 = vrot.slane %v3961_v43, 7  ;;  %v4366_v28 = vadd.f32 %v11288_v53, %v11287_v8  ;;  %v4127_v34 = vrot.slane %v3962_v55, 7  ;;  %v4373_v42 = vadd.f32 %v11289_v51, %v3861_v35 }
 0x227   : > { %v4123_v46 = vrot.slane %v11286_v47, 2  ;;  %v4130_v9 = vrot.slane %v3963_v7, 7  ;;  %v4133_v13 = vrot.slane %v3964_v44, 7  ;;  %v4136_v63 = vrot.slane %v3965_v40, 7 }
 0x228   : > { %v4126_v59 = vrot.slane %v4124_v6, 2  ;;  %v4472_v52 = vmul.f32 %v11091_v32, %v11266_v27  ;;  %v4129_v1 = vrot.slane %v4127_v34, 2  ;;  %v4473_v7 = vmul.f32 %v11092_v2, %v11267_v14 }
 0x229   : > { %v4125_v16 = vsel %vm6925_vm5, %v4123_v46, %v4124_v6  ;;  %v4132_v33 = vrot.slane %v4130_v9, 2  ;;  %v4135_v47 = vrot.slane %v4133_v13, 2  ;;  %v4138_v55 = vrot.slane %v4136_v63, 2  ;;  %v11290_v6 = vld [vmem:[#allocation135_spill] sm:$0xff] }
 0x22a   : > { %v4367_v43 = vadd.f32 %v4125_v16, %v3855_v29  ;;  %v4128_v8 = vsel %vm6925_vm5, %v4126_v59, %v4127_v34  ;;  %v4474_v35 = vmul.f32 %v10906_v57, %v11268_v61  ;;  %v4131_v44 = vsel %vm6925_vm5, %v4129_v1, %v4130_v9 }
 0x22b   : > { %v4134_v40 = vsel %vm6925_vm5, %v4132_v33, %v4133_v13  ;;  %v4137_v46 = vsel %vm6925_vm5, %v4135_v47, %v4136_v63  ;;  %v4368_v29 = vadd.f32 %v4128_v8, %v3856_v58  ;;  %v11291_v53 = vrot.slane %v11290_v6, 7 }
 0x22c   : > { %v4369_v51 = vadd.f32 %v4131_v44, %v3857_v18  ;;  %v4370_v16 = vadd.f32 %v4134_v40, %v3858_v38  ;;  %v4371_v59 = vadd.f32 %v4137_v46, %v3859_v11  ;;  %v4475_v0 = vmul.f32 %v11233_v50, %v11269_v60 }
 0x22d   : > { %v4140_v34 = vsel %vm6925_vm5, %v4138_v55, %v11291_v53  ;;  %v4476_v1 = vmul.f32 %v11091_v32, %v11270_v25  ;;  %v4477_v9 = vmul.f32 %v11092_v2, %v11271_v22  ;;  %v4478_v58 = vmul.f32 %v10906_v57, %v11272_v49  ;;  %v11294_v57 = vld [vmem:[#allocation164_spill] sm:$0xff] }
 0x22e   : > { %v4372_v19 = vadd.f32 %v4140_v34, %v3860_v17  ;;  %v4633_v13 = vrot.slane %v4472_v52, 7  ;;  %v4636_v63 = vrot.slane %v4473_v7, 7  ;;  %v4639_v33 = vrot.slane %v4474_v35, 7  ;;  %v11292_v17 = vld [vmem:[#allocation21_spill] sm:$0xff] }
 0x22f   : > { %v4642_v47 = vrot.slane %v4475_v0, 7  ;;  %v4645_v18 = vrot.slane %v4476_v1, 7  ;;  %v4648_v38 = vrot.slane %v4477_v9, 7  ;;  %v5122_v11 = vmul.f32 %v11137_v26, %v11191_v10 }
 0x230   : > { %v11293_v8 = vrot.slane %v11292_v17, 9  ;;  %v4635_v44 = vrot.slane %v4633_v13, 2  ;;  %v4638_v40 = vrot.slane %v4636_v63, 2  ;;  %v4641_v46 = vrot.slane %v4639_v33, 2 }
 0x231   : > { %v4644_v6 = vrot.slane %v4642_v47, 2  ;;  %v4647_v53 = vrot.slane %v4645_v18, 2  ;;  %v4650_v34 = vrot.slane %v4648_v38, 2  ;;  %v4651_v52 = vrot.slane %v4478_v58, 7 }
 0x232   : > { %v4634_v55 = vsel %vm6925_vm5, %v11293_v8, %v4633_v13  ;;  %v4637_v0 = vsel %vm6925_vm5, %v4635_v44, %v4636_v63  ;;  %v4640_v7 = vsel %vm6925_vm5, %v4638_v40, %v4639_v33  ;;  %v4643_v35 = vsel %vm6925_vm5, %v4641_v46, %v4642_v47  ;;  %v11296_v40 = vld [vmem:[#allocation70_spill] sm:$0xff] }
 0x233   : > { %v4878_v1 = vadd.f32 %v4634_v55, %v4366_v28  ;;  %v4646_v9 = vsel %vm6925_vm5, %v4644_v6, %v4645_v18  ;;  %v4649_v13 = vsel %vm6925_vm5, %v4647_v53, %v4648_v38  ;;  %v4652_v17 = vsel %vm6925_vm5, %v4650_v34, %v4651_v52  ;;  %v11297_v6 = vld [vmem:[#allocation71_spill] sm:$0xff]  ;;  %v11298_v53 = vld [vmem:[#allocation109_spill] sm:$0xff]  ;;  %v11299_v34 = vld [vmem:[#allocation112_spill] sm:$0xff] }
 0x234   : > { %v4653_v58 = vrot.slane %v4651_v52, 2  ;;  %v4879_v8 = vadd.f32 %v4637_v0, %v4367_v43  ;;  %v4880_v50 = vadd.f32 %v4640_v7, %v4368_v29  ;;  %v4881_v63 = vadd.f32 %v4643_v35, %v4369_v51  ;;  %v11300_v43 = vld [vmem:[#allocation113_spill] sm:$0xff]  ;;  %v11301_v51 = vld [vmem:[#allocation114_spill] sm:$0xff] }
 0x235   : > { %v4882_v44 = vadd.f32 %v4646_v9, %v4370_v16  ;;  %v11295_v33 = vrot.slane %v11294_v57, 7  ;;  %v4883_v28 = vadd.f32 %v4649_v13, %v4371_v59  ;;  %v4884_v55 = vadd.f32 %v4652_v17, %v4372_v19  ;;  %v11302_v0 = vld [vmem:[#allocation145_spill] sm:$0xff]  ;;  %v11303_v59 = vld [vmem:[#allocation146_spill] sm:$0xff] }
 0x236   : > { %v5032_v18 = vadd.f32 %v11296_v40, %v4878_v1  ;;  %v5033_v38 = vadd.f32 %v11297_v6, %v4879_v8  ;;  %v5034_v2 = vadd.f32 %v11298_v53, %v4880_v50  ;;  %v5035_v52 = vadd.f32 %v11299_v34, %v4881_v63 }
 0x237   : > { %v4655_v47 = vsel %vm6925_vm5, %v4653_v58, %v11295_v33  ;;  %v5036_v29 = vadd.f32 %v11300_v43, %v4882_v44  ;;  %v5037_v16 = vadd.f32 %v11301_v51, %v4883_v28  ;;  %v5038_v57 = vadd.f32 %v11302_v0, %v4884_v55  ;;  %v11304_v44 = vld [vmem:[#allocation137_spill] sm:$0xff] }
 0x238   : > { %v4885_v46 = vadd.f32 %v4655_v47, %v4373_v42  ;;  %v5123_v7 = vmul.f32 %v11138_v39, %v11192_v62  ;;  %v5124_v42 = vmul.f32 %v11139_v4, %v11193_v37  ;;  %v5125_v35 = vmul.f32 %v11169_v5, %v11194_v41 }
 0x239   : > { %v5126_v50 = vmul.f32 %v11137_v26, %v11196_v15  ;;  %v5127_v1 = vmul.f32 %v11138_v39, %v11198_v36  ;;  %v5128_v9 = vmul.f32 %v11139_v4, %v11253_v54  ;;  %v5186_v13 = vadd.f32 %v5122_v11, %v5032_v18 }
 0x23a   : > { %v5039_v19 = vadd.f32 %v11303_v59, %v4885_v46  ;;  %v5187_v17 = vadd.f32 %v5123_v7, %v5033_v38  ;;  %v5188_v58 = vadd.f32 %v5124_v42, %v5034_v2  ;;  %v5189_v8 = vadd.f32 %v5125_v35, %v5035_v52  ;;  %v11305_v38 = vld [vmem:[#allocation20_spill] sm:$0xff] }
 0x23b   : > { %v5190_v63 = vadd.f32 %v5126_v50, %v5036_v29  ;;  %v5191_v47 = vadd.f32 %v5127_v1, %v5037_v16  ;;  %v5192_v28 = vadd.f32 %v5128_v9, %v5038_v57  ;;  %v5276_v55 = vmul.f32 %v11170_v48, %v11266_v27 }
 0x23c   : > { %v5193_v33 = vadd.f32 %v11304_v44, %v5039_v19  ;;  %v5277_v40 = vmul.f32 %v11171_v3, %v11267_v14  ;;  %v5278_v46 = vmul.f32 %v11142_v45, %v11268_v61  ;;  %v5279_v11 = vmul.f32 %v8682_v24, %v11269_v60 }
 0x23d   : > { %v5280_v2 = vmul.f32 %v11170_v48, %v11270_v25  ;;  %v5281_v18 = vmul.f32 %v11171_v3, %v11271_v22  ;;  %v5282_v6 = vmul.f32 %v11142_v45, %v11272_v49  ;;  %v5283_v53 = vmul.f32 %v8682_v24, %v11305_v38 }
 0x23e   : > { %v5340_v34 = vadd.f32 %v5276_v55, %v5186_v13  ;;  %v5341_v52 = vadd.f32 %v5277_v40, %v5187_v17  ;;  %v5342_v43 = vadd.f32 %v5278_v46, %v5188_v58  ;;  %v5343_v29 = vadd.f32 %v5279_v11, %v5189_v8 }
 0x23f   : > { %v5344_v51 = vadd.f32 %v5280_v2, %v5190_v63  ;;  %v5345_v16 = vadd.f32 %v5281_v18, %v5191_v47  ;;  %v5346_v0 = vadd.f32 %v5282_v6, %v5192_v28  ;;  %v5347_v57 = vadd.f32 %v5283_v53, %v5193_v33 }
 0x240   : > { %v5431_v7 = vadd.f32 %v8528_v21, %v5340_v34  ;;  %v5432_v59 = vadd.f32 %v11155_v30, %v5341_v52  ;;  %v5433_v19 = vadd.f32 %v8540_v12, %v5342_v43  ;;  %v5434_v42 = vadd.f32 %v8686_v20, %v5343_v29  ;;  %v11306_v34 = vld [vmem:[#allocation39_spill] sm:$0xff] }
 0x241   : > { %v5435_v35 = vadd.f32 %v8528_v21, %v5344_v51  ;;  %v5436_v50 = vadd.f32 %v11155_v30, %v5345_v16  ;;  %v5437_v1 = vadd.f32 %v8540_v12, %v5346_v0  ;;  %v5438_v9 = vadd.f32 %v8686_v20, %v5347_v57  ;;  %v11307_v51 = vld [vmem:[#allocation11_spill] sm:$0xff]  ;;  %v11308_v0 = vld [vmem:[#allocation41_spill] sm:$0xff] }
 0x242   : > { %v5495_v13 = vmax.f32 %v5431_v7, 0.0  ;;  %v5496_v17 = vmax.f32 %v5432_v59, 0.0  ;;  %v5497_v58 = vmax.f32 %v5433_v19, 0.0  ;;  %v5498_v8 = vmax.f32 %v5434_v42, 0.0  ;;  %v11309_v19 = vld [vmem:[#allocation9_spill] sm:$0xff] }
 0x243   : > { %v5499_v63 = vmax.f32 %v5435_v35, 0.0  ;;  %v5500_v44 = vmax.f32 %v5436_v50, 0.0  ;;  %v5501_v33 = vmax.f32 %v5437_v1, 0.0  ;;  %v5502_v47 = vmax.f32 %v5438_v9, 0.0  ;;  %v11320_v20 = vld [vmem:[#allocation29_spill] sm:$0xff] }
 0x244   : > { %v5559_v28 = vmin.f32 %v5495_v13, 6.0  ;;  %v5560_v55 = vmin.f32 %v5496_v17, 6.0  ;;  %v5561_v40 = vmin.f32 %v5497_v58, 6.0  ;;  %v5562_v46 = vmin.f32 %v5498_v8, 6.0  ;;  %v11310_v8 = vld [vmem:[#allocation24_spill] sm:$0xff] }
 0x245   : > { %v5563_v11 = vmin.f32 %v5499_v63, 6.0  ;;  %v5564_v2 = vmin.f32 %v5500_v44, 6.0  ;;  %v5565_v18 = vmin.f32 %v5501_v33, 6.0  ;;  %v5566_v6 = vmin.f32 %v5502_v47, 6.0  ;;  %v11311_v44 = vld [vmem:[#allocation44_spill] sm:$0xff] }
 0x246   : > { %v5713_v53 = vcombine.low %v5559_v28, %v5560_v55  ;;  %v2972_v52 = vmul.f32 %v11306_v34, %v11191_v10  ;;  %v5714_v43 = vcombine.low %v5561_v40, %v5562_v46  ;;  %v2973_v16 = vmul.f32 %v11307_v51, %v11192_v62  ;;  %v11312_v28 = vld [vmem:[#allocation14_spill] sm:$0xff] }
 0x247   : > { %v5730_v29 = vcombine.low %v5563_v11, %v5564_v2  ;;  %v2974_v57 = vmul.f32 %v11308_v0, %v11193_v37  ;;  %v5731_v59 = vcombine.low %v5565_v18, %v5566_v6  ;;  %v2975_v42 = vmul.f32 %v11309_v19, %v11194_v41 }
 0x248   : > { %v5721_v7 = vrot.slane %v5713_v53, %v11257_v23  ;;  %v2976_v35 = vmul.f32 %v11306_v34, %v11196_v15  ;;  %v5728_v50 = vrot.slane %v5714_v43, %v11257_v23  ;;  %v2977_v9 = vmul.f32 %v11307_v51, %v11198_v36  ;;  %v11317_v34 = vld [vmem:[#allocation169_spill] sm:$0xff] }
 0x249   : > { %v5738_v1 = vrot.slane %v5730_v29, %v11257_v23  ;;  %v2978_v13 = vmul.f32 %v11308_v0, %v11253_v54  ;;  %v5745_v17 = vrot.slane %v5731_v59, %v11257_v23  ;;  %v3126_v58 = vmul.f32 %v11256_v56, %v11266_v27  ;;  %v11313_v23 = vld [vmem:[#allocation17_spill] sm:$0xff]  ;;  %v11315_v0 = vld [vmem:[#allocation168_spill] sm:$0xff] }
 0x24a   : > { %v3127_v63 = vmul.f32 %v11310_v8, %v11267_v14  ;;  %v3128_v33 = vmul.f32 %v11311_v44, %v11268_v61  ;;  %v5729_v47 = vcombine.low %v5721_v7, %v5728_v50  ;;  %v3129_v55 = vmul.f32 %v11312_v28, %v11269_v60  ;;  %v11314_v28 = vld [vmem:[#allocation54_spill] sm:$0xff] }
 0x24b   : > { %v3130_v40 = vmul.f32 %v11256_v56, %v11270_v25  ;;  %v3131_v46 = vmul.f32 %v11310_v8, %v11271_v22  ;;  %v5746_v11 = vcombine.low %v5738_v1, %v5745_v17  ;;  %v3132_v2 = vmul.f32 %v11311_v44, %v11272_v49  ;;  %v11316_v56 = vld [vmem:[#allocation33_spill] sm:$0xff]  ;;  %v11318_v8 = vld [vmem:[#allocation48_spill] sm:$0xff] }
 0x24c   : > { %v3190_v18 = vadd.f32 %v3126_v58, %v2972_v52  ;;  %v3191_v6 = vadd.f32 %v3127_v63, %v2973_v16  ;;  %v3192_v53 = vadd.f32 %v3128_v33, %v2974_v57  ;;  %v3193_v43 = vadd.f32 %v3129_v55, %v2975_v42  ;;  %v11319_v17 = vld [vmem:[#allocation25_spill] sm:$0xff]  ;;  %v11321_v52 = vld [vmem:[#allocation155_spill] sm:$0xff]  ;;  %v11322_v57 = vld [vmem:[#allocation156_spill] sm:$0xff] }
 0x24d   : > { %v3194_v29 = vadd.f32 %v3130_v40, %v2976_v35  ;;  %v3195_v59 = vadd.f32 %v3131_v46, %v2977_v9  ;;  %v5968_v7 = vpack.c.bf16 %v5746_v11, %v5729_v47  ;;  %v3196_v50 = vadd.f32 %v3132_v2, %v2978_v13  ;;  %v11323_v35 = vld [vmem:[#allocation158_spill] sm:$0xff]  ;;  %v11324_v63 = vld [vmem:[#allocation23_spill] sm:$0xff]  ;;  %v11325_v2 = vld [vmem:[#allocation16_spill] sm:$0xff] }
 0x24e   : > { %v3280_v19 = vmul.f32 %v11314_v28, %v11313_v23  ;;  %v3281_v51 = vmul.f32 %v11316_v56, %v11315_v0  ;;  %v3282_v1 = vmul.f32 %v11318_v8, %v11317_v34  ;;  %v3283_v44 = vmul.f32 %v11320_v20, %v11319_v17 }
 0x24f   : > { %v3284_v16 = vmul.f32 %v11314_v28, %v11321_v52  ;;  %v3285_v42 = vmul.f32 %v11316_v56, %v11322_v57  ;;  %6423 = vmatmul.mubr.msk.bf16.vlgmr.msra.gmra.mrb[4].mxu1 %vm5994_vm7, %v5968_v7  ;;  %v3286_v9 = vmul.f32 %v11318_v8, %v11323_v35  ;;  %v3458_v33 = vmul.f32 %v11324_v63, %v11192_v62  ;;  %v11326_v56 = vld [vmem:[#allocation45_spill] sm:$0xff]  ;;  %v11327_v7 = vld [vmem:[#allocation15_spill] sm:$0xff] }
 0x250   : > { %v3344_v13 = vadd.f32 %v3280_v19, %v3190_v18  ;;  %v3345_v58 = vadd.f32 %v3281_v51, %v3191_v6  ;;  %v3346_v47 = vadd.f32 %v3282_v1, %v3192_v53  ;;  %v3347_v55 = vadd.f32 %v3283_v44, %v3193_v43  ;;  %v11328_v18 = vld [vmem:[#allocation170_spill] sm:$0xff] }
 0x251   : > { %v3348_v40 = vadd.f32 %v3284_v16, %v3194_v29  ;;  %v3349_v46 = vadd.f32 %v3285_v42, %v3195_v59  ;;  %v3350_v11 = vadd.f32 %v3286_v9, %v3196_v50  ;;  %v3459_v20 = vmul.f32 %v11325_v2, %v11193_v37  ;;  %v11330_v50 = vld [vmem:[#allocation26_spill] sm:$0xff] }
 0x252   : > { %v3460_v28 = vmul.f32 %v11326_v56, %v11194_v41  ;;  %v3461_v12 = vmul.f32 %v11327_v7, %v11196_v15  ;;  %v3462_v51 = vmul.f32 %v11324_v63, %v11198_v36  ;;  %v3463_v19 = vmul.f32 %v11325_v2, %v11253_v54 }
 0x253   : > { %v11329_v44 = vrot.slane %v11328_v18, 7  ;;  %v3637_v53 = vrot.slane %v3458_v33, 7  ;;  %v3640_v43 = vrot.slane %v3459_v20, 7  ;;  %v3969_v1 = vmul.f32 %v11330_v50, %v11266_v27 }
 0x254   : > { %v3643_v29 = vrot.slane %v3460_v28, 7  ;;  %v3646_v59 = vrot.slane %v3461_v12, 7  ;;  %v3649_v9 = vrot.slane %v3462_v51, 7  ;;  %v3652_v56 = vrot.slane %v3463_v19, 7  ;;  %v11331_v12 = vld [vmem:[#allocation30_spill] sm:$0xff] }
 0x255   : > { %v3636_v6 = vrot.slane %v11329_v44, 2  ;;  %v3639_v42 = vrot.slane %v3637_v53, 2  ;;  %v3642_v63 = vrot.slane %v3640_v43, 2  ;;  %v3970_v28 = vmul.f32 %v11331_v12, %v11267_v14 }
 0x256   : > { %v3645_v7 = vrot.slane %v3643_v29, 2  ;;  %v3648_v8 = vrot.slane %v3646_v59, 2  ;;  %v3651_v33 = vrot.slane %v3649_v9, 2  ;;  %v3654_v20 = vrot.slane %v3652_v56, 2 }
 0x257   : > { %v3638_v16 = vsel %vm6925_vm5, %v3636_v6, %v3637_v53  ;;  %v3641_v18 = vsel %vm6925_vm5, %v3639_v42, %v3640_v43  ;;  %v3644_v44 = vsel %vm6925_vm5, %v3642_v63, %v3643_v29  ;;  %v11332_v53 = vld [vmem:[#allocation6_spill] sm:$0xff]  ;;  %v11334_v29 = vld [vmem:[#allocation31_spill] sm:$0xff] }
 0x258   : > { %v3863_v2 = vadd.f32 %v3638_v16, %v3344_v13  ;;  %v3647_v6 = vsel %vm6925_vm5, %v3645_v7, %v3646_v59  ;;  %v3650_v51 = vsel %vm6925_vm5, %v3648_v8, %v3649_v9  ;;  %v3864_v19 = vadd.f32 %v3641_v18, %v3345_v58  ;;  %v11335_v59 = vld [vmem:[#allocation46_spill] sm:$0xff] }
 0x259   : > { %v3653_v13 = vsel %vm6925_vm5, %v3651_v33, %v3652_v56  ;;  %v11333_v43 = vrot.slane %v11332_v53, 7  ;;  %v3865_v42 = vadd.f32 %v3644_v44, %v3346_v47  ;;  %v3866_v30 = vadd.f32 %v3647_v6, %v3347_v55  ;;  %v11336_v44 = vld [vmem:[#allocation19_spill] sm:$0xff] }
 0x25a   : > { %v3867_v21 = vadd.f32 %v3650_v51, %v3348_v40  ;;  %v3868_v24 = vadd.f32 %v3653_v13, %v3349_v46  ;;  %v3971_v7 = vmul.f32 %v11334_v29, %v11268_v61  ;;  %v3972_v8 = vmul.f32 %v11335_v59, %v11269_v60 }
 0x25b   : > { %v3656_v16 = vsel %vm6925_vm5, %v3654_v20, %v11333_v43  ;;  %v3973_v58 = vmul.f32 %v11330_v50, %v11270_v25  ;;  %v3974_v56 = vmul.f32 %v11331_v12, %v11271_v22  ;;  %v3975_v9 = vmul.f32 %v11334_v29, %v11272_v49  ;;  %v11339_v29 = vld [vmem:[#allocation163_spill] sm:$0xff] }
 0x25c   : > { %v3869_v63 = vadd.f32 %v3656_v16, %v3350_v11  ;;  %v4146_v47 = vrot.slane %v3969_v1, 7  ;;  %v4149_v55 = vrot.slane %v3970_v28, 7  ;;  %v4152_v40 = vrot.slane %v3971_v7, 7 }
 0x25d   : > { %v4481_v46 = vmul.f32 %v11091_v32, %v11313_v23  ;;  %v4155_v11 = vrot.slane %v3972_v8, 7  ;;  %v4158_v18 = vrot.slane %v3973_v58, 7  ;;  %v4161_v33 = vrot.slane %v3974_v56, 7  ;;  %v11338_v56 = vld [vmem:[#allocation175_spill] sm:$0xff] }
 0x25e   : > { %v4164_v20 = vrot.slane %v3975_v9, 7  ;;  %v11337_v6 = vrot.slane %v11336_v44, 9  ;;  %v4148_v13 = vrot.slane %v4146_v47, 2  ;;  %v4151_v53 = vrot.slane %v4149_v55, 2 }
 0x25f   : > { %v4154_v43 = vrot.slane %v4152_v40, 2  ;;  %v4157_v16 = vrot.slane %v4155_v11, 2  ;;  %v4160_v59 = vrot.slane %v4158_v18, 2  ;;  %v4163_v1 = vrot.slane %v4161_v33, 2 }
 0x260   : > { %v4147_v51 = vsel %vm6925_vm5, %v11337_v6, %v4146_v47  ;;  %v4166_v28 = vrot.slane %v4164_v20, 2  ;;  %v4150_v7 = vsel %vm6925_vm5, %v4148_v13, %v4149_v55  ;;  %v4153_v8 = vsel %vm6925_vm5, %v4151_v53, %v4152_v40 }
 0x261   : > { %v4156_v58 = vsel %vm6925_vm5, %v4154_v43, %v4155_v11  ;;  %v4374_v9 = vadd.f32 %v4147_v51, %v11338_v56  ;;  %v4159_v47 = vsel %vm6925_vm5, %v4157_v16, %v4158_v18  ;;  %v4162_v44 = vsel %vm6925_vm5, %v4160_v59, %v4161_v33  ;;  %v11341_v18 = vld [vmem:[#allocation36_spill] sm:$0xff]  ;;  %v11342_v59 = vld [vmem:[#allocation37_spill] sm:$0xff] }
 0x262   : > { %v4165_v6 = vsel %vm6925_vm5, %v4163_v1, %v4164_v20  ;;  %v11340_v12 = vrot.slane %v11339_v29, 7  ;;  %v4375_v40 = vadd.f32 %v4150_v7, %v3863_v2  ;;  %v4376_v13 = vadd.f32 %v4153_v8, %v3864_v19  ;;  %v11343_v20 = vld [vmem:[#allocation58_spill] sm:$0xff]  ;;  %v11345_v8 = vld [vmem:[#allocation173_spill] sm:$0xff] }
 0x263   : > { %v4377_v53 = vadd.f32 %v4156_v58, %v3865_v42  ;;  %v4378_v11 = vadd.f32 %v4159_v47, %v3866_v30  ;;  %v4379_v43 = vadd.f32 %v4162_v44, %v3867_v21  ;;  %v4380_v51 = vadd.f32 %v4165_v6, %v3868_v24 }
 0x264   : > { %v4168_v55 = vsel %vm6925_vm5, %v4166_v28, %v11340_v12  ;;  %v4482_v16 = vmul.f32 %v11341_v18, %v11315_v0  ;;  %v4483_v33 = vmul.f32 %v11342_v59, %v11317_v34  ;;  %v4484_v1 = vmul.f32 %v11343_v20, %v11319_v17  ;;  %v11344_v12 = vld [vmem:[#allocation7_spill] sm:$0xff] }
 0x265   : > { %v4381_v56 = vadd.f32 %v4168_v55, %v3869_v63  ;;  %v4485_v29 = vmul.f32 %v11091_v32, %v11321_v52  ;;  %v4486_v2 = vmul.f32 %v11341_v18, %v11322_v57  ;;  %v4487_v30 = vmul.f32 %v11342_v59, %v11323_v35 }
 0x266   : > { %v4658_v21 = vrot.slane %v4481_v46, 7  ;;  %v4661_v24 = vrot.slane %v4482_v16, 7  ;;  %v4976_v19 = vmul.f32 %v11344_v12, %v11191_v10  ;;  %v4664_v42 = vrot.slane %v4483_v33, 7 }
 0x267   : > { %v4667_v63 = vrot.slane %v4484_v1, 7  ;;  %v4670_v28 = vrot.slane %v4485_v29, 7  ;;  %v4673_v7 = vrot.slane %v4486_v2, 7  ;;  %v11346_v58 = vrot.slane %v11345_v8, 9  ;;  %v11347_v8 = vld [vmem:[#allocation179_spill] sm:$0xff] }
 0x268   : > { %v4660_v44 = vrot.slane %v4658_v21, 2  ;;  %v4663_v6 = vrot.slane %v4661_v24, 2  ;;  %v4676_v55 = vrot.slane %v4487_v30, 7  ;;  %v4666_v20 = vrot.slane %v4664_v42, 2 }
 0x269   : > { %v4659_v47 = vsel %vm6925_vm5, %v11346_v58, %v4658_v21  ;;  %v4669_v18 = vrot.slane %v4667_v63, 2  ;;  %v4672_v59 = vrot.slane %v4670_v28, 2  ;;  %v4675_v46 = vrot.slane %v4673_v7, 2 }
 0x26a   : > { %v4662_v16 = vsel %vm6925_vm5, %v4660_v44, %v4661_v24  ;;  %v4665_v10 = vsel %vm6925_vm5, %v4663_v6, %v4664_v42  ;;  %v4678_v33 = vrot.slane %v4676_v55, 2  ;;  %v4886_v1 = vadd.f32 %v4659_v47, %v4374_v9 }
 0x26b   : > { %v4668_v29 = vsel %vm6925_vm5, %v4666_v20, %v4667_v63  ;;  %v4671_v2 = vsel %vm6925_vm5, %v4669_v18, %v4670_v28  ;;  %v4674_v30 = vsel %vm6925_vm5, %v4672_v59, %v4673_v7  ;;  %v4677_v21 = vsel %vm6925_vm5, %v4675_v46, %v4676_v55  ;;  %v11349_v18 = vld [vmem:[#allocation13_spill] sm:$0xff]  ;;  %v11350_v59 = vld [vmem:[#allocation12_spill] sm:$0xff] }
 0x26c   : > { %v11348_v58 = vrot.slane %v11347_v8, 7  ;;  %v4887_v42 = vadd.f32 %v4662_v16, %v4375_v40  ;;  %v4888_v44 = vadd.f32 %v4665_v10, %v4376_v13  ;;  %v4889_v9 = vadd.f32 %v4668_v29, %v4377_v53  ;;  %v11351_v55 = vld [vmem:[#allocation40_spill] sm:$0xff]  ;;  %v11352_v53 = vld [vmem:[#allocation10_spill] sm:$0xff] }
 0x26d   : > { %v4890_v47 = vadd.f32 %v4671_v2, %v4378_v11  ;;  %v4891_v6 = vadd.f32 %v4674_v30, %v4379_v43  ;;  %v4892_v20 = vadd.f32 %v4677_v21, %v4380_v51  ;;  %v4977_v28 = vmul.f32 %v11349_v18, %v11192_v62 }
 0x26e   : > { %v4680_v24 = vsel %vm6925_vm5, %v4678_v33, %v11348_v58  ;;  %v4978_v7 = vmul.f32 %v11350_v59, %v11193_v37  ;;  %v4979_v46 = vmul.f32 %v11351_v55, %v11194_v41  ;;  %v4980_v8 = vmul.f32 %v11344_v12, %v11196_v15 }
 0x26f   : > { %v4893_v63 = vadd.f32 %v4680_v24, %v4381_v56  ;;  %v4981_v40 = vmul.f32 %v11349_v18, %v11198_v36  ;;  %v4982_v13 = vmul.f32 %v11350_v59, %v11253_v54  ;;  %v4983_v11 = vmul.f32 %v11351_v55, %v11352_v53 }
 0x270   : > { %v5040_v43 = vadd.f32 %v4976_v19, %v4886_v1  ;;  %v5041_v62 = vadd.f32 %v4977_v28, %v4887_v42  ;;  %v5042_v51 = vadd.f32 %v4978_v7, %v4888_v44  ;;  %v5043_v56 = vadd.f32 %v4979_v46, %v4889_v9  ;;  %v11353_v28 = vld [vmem:[#allocation5_spill] sm:$0xff] }
 0x271   : > { %v5044_v37 = vadd.f32 %v4980_v8, %v4890_v47  ;;  %v5045_v16 = vadd.f32 %v4981_v40, %v4891_v6  ;;  %v5046_v10 = vadd.f32 %v4982_v13, %v4892_v20  ;;  %v5047_v41 = vadd.f32 %v4983_v11, %v4893_v63  ;;  %v11354_v13 = vld [vmem:[#allocation34_spill] sm:$0xff] }
 0x272   : > { %v5130_v15 = vmul.f32 %v11137_v26, %v11266_v27  ;;  %v5131_v36 = vmul.f32 %v11138_v39, %v11267_v14  ;;  %v5132_v54 = vmul.f32 %v11139_v4, %v11268_v61  ;;  %v5133_v33 = vmul.f32 %v11169_v5, %v11269_v60 }
 0x273   : > { %v5134_v19 = vmul.f32 %v11137_v26, %v11270_v25  ;;  %v5135_v1 = vmul.f32 %v11138_v39, %v11271_v22  ;;  %v5136_v29 = vmul.f32 %v11139_v4, %v11272_v49  ;;  %v5137_v2 = vmul.f32 %v11169_v5, %v11305_v38 }
 0x274   : > { %v5194_v30 = vadd.f32 %v5130_v15, %v5040_v43  ;;  %v5195_v21 = vadd.f32 %v5131_v36, %v5041_v62  ;;  %v5196_v58 = vadd.f32 %v5132_v54, %v5042_v51  ;;  %v5197_v24 = vadd.f32 %v5133_v33, %v5043_v56  ;;  %v11356_v36 = vld [vmem:[#allocation228_spill] sm:$0xff]  ;;  %v11357_v33 = vld [vmem:[#allocation227_spill] sm:$0xff] }
 0x275   : > { %v5198_v42 = vadd.f32 %v5134_v19, %v5044_v37  ;;  %v5199_v44 = vadd.f32 %v5135_v1, %v5045_v16  ;;  %v5200_v9 = vadd.f32 %v5136_v29, %v5046_v10  ;;  %v5201_v47 = vadd.f32 %v5137_v2, %v5047_v41  ;;  %v11355_v41 = vld [vmem:[#allocation223_spill] sm:$0xff] }
 0x276   : > { %v5284_v6 = vmul.f32 %v11170_v48, %v11313_v23  ;;  %v5285_v20 = vmul.f32 %v11171_v3, %v11315_v0  ;;  %v5286_v63 = vmul.f32 %v11142_v45, %v11317_v34  ;;  %v5287_v7 = vmul.f32 %v11353_v28, %v11319_v17  ;;  %v11358_v1 = vld [vmem:[#allocation27_spill] sm:$0xff] }
 0x277   : > { %v5288_v46 = vmul.f32 %v11170_v48, %v11321_v52  ;;  %v5289_v8 = vmul.f32 %v11171_v3, %v11322_v57  ;;  %v5290_v40 = vmul.f32 %v11142_v45, %v11323_v35  ;;  %v5291_v53 = vmul.f32 %v11353_v28, %v11354_v13  ;;  %v11374_v28 = vld [vmem:[#allocation49_spill] sm:$0xff]  ;;  %v11386_v48 = vld [vmem:[#allocation162_spill] sm:$0xff] }
 0x278   : > { %v5348_v11 = vadd.f32 %v5284_v6, %v5194_v30  ;;  %v5349_v43 = vadd.f32 %v5285_v20, %v5195_v21  ;;  %v5350_v62 = vadd.f32 %v5286_v63, %v5196_v58  ;;  %v5351_v51 = vadd.f32 %v5287_v7, %v5197_v24  ;;  %v11375_v45 = vld [vmem:[#allocation29_spill] sm:$0xff] }
 0x279   : > { %v5352_v56 = vadd.f32 %v5288_v46, %v5198_v42  ;;  %v5353_v37 = vadd.f32 %v5289_v8, %v5199_v44  ;;  %v5354_v16 = vadd.f32 %v5290_v40, %v5200_v9  ;;  %v5355_v10 = vadd.f32 %v5291_v53, %v5201_v47 }
 0x27a   : > { %v5439_v15 = vadd.f32 %v11355_v41, %v5348_v11  ;;  %v5440_v54 = vadd.f32 %v11356_v36, %v5349_v43  ;;  %v5441_v19 = vadd.f32 %v11357_v33, %v5350_v62  ;;  %v5442_v29 = vadd.f32 %v11358_v1, %v5351_v51  ;;  %v11359_v62 = vld [vmem:[#allocation39_spill] sm:$0xff] }
 0x27b   : > { %v5443_v2 = vadd.f32 %v11355_v41, %v5352_v56  ;;  %v5444_v13 = vadd.f32 %v11356_v36, %v5353_v37  ;;  %v5445_v30 = vadd.f32 %v11357_v33, %v5354_v16  ;;  %v5446_v21 = vadd.f32 %v11358_v1, %v5355_v10  ;;  %v11360_v16 = vld [vmem:[#allocation11_spill] sm:$0xff]  ;;  %v11368_v1 = vld [vmem:[#allocation22_spill] sm:$0xff]  ;;  %v11370_v36 = vld [vmem:[#allocation161_spill] sm:$0xff] }
 0x27c   : > { %v5503_v58 = vmax.f32 %v5439_v15, 0.0  ;;  %v5504_v24 = vmax.f32 %v5440_v54, 0.0  ;;  %v5505_v42 = vmax.f32 %v5441_v19, 0.0  ;;  %v5506_v44 = vmax.f32 %v5442_v29, 0.0  ;;  %v11361_v15 = vld [vmem:[#allocation41_spill] sm:$0xff]  ;;  %v11373_v41 = vld [vmem:[#allocation48_spill] sm:$0xff] }
 0x27d   : > { %v5507_v9 = vmax.f32 %v5443_v2, 0.0  ;;  %v5508_v47 = vmax.f32 %v5444_v13, 0.0  ;;  %v5509_v6 = vmax.f32 %v5445_v30, 0.0  ;;  %v5510_v20 = vmax.f32 %v5446_v21, 0.0  ;;  %v11362_v2 = vld [vmem:[#allocation9_spill] sm:$0xff]  ;;  %v11363_v21 = vld [vmem:[#allocation2_spill] sm:$0xff] }
 0x27e   : > { %v5567_v63 = vmin.f32 %v5503_v58, 6.0  ;;  %v5568_v7 = vmin.f32 %v5504_v24, 6.0  ;;  %v5569_v46 = vmin.f32 %v5505_v42, 6.0  ;;  %v5570_v8 = vmin.f32 %v5506_v44, 6.0 }
 0x27f   : > { %v5571_v40 = vmin.f32 %v5507_v9, 6.0  ;;  %v5572_v53 = vmin.f32 %v5508_v47, 6.0  ;;  %v5573_v11 = vmin.f32 %v5509_v6, 6.0  ;;  %v5574_v43 = vmin.f32 %v5510_v20, 6.0  ;;  %v11364_v6 = vld [vmem:[#allocation42_spill] sm:$0xff] }
 0x280   : > { %v2980_v51 = vmul.f32 %v11359_v62, %v11266_v27  ;;  %v5747_v56 = vcombine.low %v5567_v63, %v5568_v7  ;;  %v5748_v37 = vcombine.low %v5569_v46, %v5570_v8  ;;  %v2981_v10 = vmul.f32 %v11360_v16, %v11267_v14  ;;  %v11365_v63 = vld [vmem:[#allocation24_spill] sm:$0xff] }
 0x281   : > { %v2982_v54 = vmul.f32 %v11361_v15, %v11268_v61  ;;  %v5764_v19 = vcombine.low %v5571_v40, %v5572_v53  ;;  %v5765_v29 = vcombine.low %v5573_v11, %v5574_v43  ;;  %v2983_v13 = vmul.f32 %v11362_v2, %v11269_v60  ;;  %v11366_v8 = vld [vmem:[#allocation44_spill] sm:$0xff]  ;;  %v11367_v53 = vld [vmem:[#allocation14_spill] sm:$0xff] }
 0x282   : > { %v2984_v30 = vmul.f32 %v11359_v62, %v11270_v25  ;;  %v5755_v58 = vrot.slane %v5747_v56, %v11363_v21  ;;  %v5762_v24 = vrot.slane %v5748_v37, %v11363_v21  ;;  %v2985_v42 = vmul.f32 %v11360_v16, %v11271_v22 }
 0x283   : > { %v2986_v44 = vmul.f32 %v11361_v15, %v11272_v49  ;;  %v5772_v9 = vrot.slane %v5764_v19, %v11363_v21  ;;  %v5779_v47 = vrot.slane %v5765_v29, %v11363_v21  ;;  %v3134_v20 = vmul.f32 %v11364_v6, %v11313_v23 }
 0x284   : > { %v3135_v7 = vmul.f32 %v11365_v63, %v11315_v0  ;;  %v5763_v46 = vcombine.low %v5755_v58, %v5762_v24  ;;  %v3136_v40 = vmul.f32 %v11366_v8, %v11317_v34  ;;  %v3137_v11 = vmul.f32 %v11367_v53, %v11319_v17  ;;  %v11369_v53 = vld [vmem:[#allocation54_spill] sm:$0xff] }
 0x285   : > { %v3138_v43 = vmul.f32 %v11364_v6, %v11321_v52  ;;  %v5780_v56 = vcombine.low %v5772_v9, %v5779_v47  ;;  %v3139_v37 = vmul.f32 %v11365_v63, %v11322_v57  ;;  %v3140_v19 = vmul.f32 %v11366_v8, %v11323_v35  ;;  %v11371_v6 = vld [vmem:[#allocation33_spill] sm:$0xff]  ;;  %v11372_v47 = vld [vmem:[#allocation110_spill] sm:$0xff] }
 0x286   : > { %v3198_v29 = vadd.f32 %v3134_v20, %v2980_v51  ;;  %v3199_v21 = vadd.f32 %v3135_v7, %v2981_v10  ;;  %v3200_v2 = vadd.f32 %v3136_v40, %v2982_v54  ;;  %v3201_v58 = vadd.f32 %v3137_v11, %v2983_v13  ;;  %v11376_v51 = vld [vmem:[#allocation52_spill] sm:$0xff]  ;;  %v11379_v20 = vld [vmem:[#allocation15_spill] sm:$0xff] }
 0x287   : > { %v3202_v24 = vadd.f32 %v3138_v43, %v2984_v30  ;;  %v5969_v15 = vpack.c.bf16 %v5780_v56, %v5763_v46  ;;  %v3203_v16 = vadd.f32 %v3139_v37, %v2985_v42  ;;  %v3204_v62 = vadd.f32 %v3140_v19, %v2986_v44  ;;  %v11377_v54 = vld [vmem:[#allocation184_spill] sm:$0xff]  ;;  %v11378_v30 = vld [vmem:[#allocation186_spill] sm:$0xff]  ;;  %v11380_v19 = vld [vmem:[#allocation23_spill] sm:$0xff] }
 0x288   : > { %v3288_v33 = vmul.f32 %v11369_v53, %v11368_v1  ;;  %v3289_v9 = vmul.f32 %v11371_v6, %v11370_v36  ;;  %v3290_v63 = vmul.f32 %v11373_v41, %v11372_v47  ;;  %v3291_v8 = vmul.f32 %v11375_v45, %v11374_v28 }
 0x289   : > { %v3292_v10 = vmul.f32 %v11369_v53, %v11376_v51  ;;  %6426 = vmatprep.mubr.msk.bf16.mxu1 %vm5994_vm7, %v5969_v15  ;;  %v3293_v13 = vmul.f32 %v11371_v6, %v11377_v54  ;;  %v3294_v42 = vmul.f32 %v11373_v41, %v11378_v30  ;;  %v3466_v7 = vmul.f32 %v11379_v20, %v11266_v27  ;;  %v11381_v15 = vld [vmem:[#allocation16_spill] sm:$0xff]  ;;  %v11382_v6 = vld [vmem:[#allocation45_spill] sm:$0xff] }
 0x28a   : > { %v3352_v44 = vadd.f32 %v3288_v33, %v3198_v29  ;;  %v3353_v46 = vadd.f32 %v3289_v9, %v3199_v21  ;;  %v3354_v40 = vadd.f32 %v3290_v63, %v3200_v2  ;;  %v3355_v11 = vadd.f32 %v3291_v8, %v3201_v58 }
 0x28b   : > { %v3356_v43 = vadd.f32 %v3292_v10, %v3202_v24  ;;  %v3357_v56 = vadd.f32 %v3293_v13, %v3203_v16  ;;  %v3358_v37 = vadd.f32 %v3294_v42, %v3204_v62  ;;  %v3467_v45 = vmul.f32 %v11380_v19, %v11267_v14  ;;  %v11383_v10 = vld [vmem:[#allocation4_spill] sm:$0xff] }
 0x28c   : > { %v3468_v53 = vmul.f32 %v11381_v15, %v11268_v61  ;;  %v3469_v3 = vmul.f32 %v11382_v6, %v11269_v60  ;;  %v3470_v33 = vmul.f32 %v11379_v20, %v11270_v25  ;;  %v3471_v21 = vmul.f32 %v11380_v19, %v11271_v22 }
 0x28d   : > { %v3472_v2 = vmul.f32 %v11381_v15, %v11272_v49  ;;  %v3659_v16 = vrot.slane %v3466_v7, 7  ;;  %v3662_v62 = vrot.slane %v3467_v45, 7  ;;  %v3978_v8 = vmul.f32 %v11330_v50, %v11313_v23 }
 0x28e   : > { %v3665_v63 = vrot.slane %v3468_v53, 7  ;;  %v3668_v29 = vrot.slane %v3469_v3, 7  ;;  %v3671_v58 = vrot.slane %v3470_v33, 7  ;;  %v3674_v24 = vrot.slane %v3471_v21, 7  ;;  %v11385_v21 = vld [vmem:[#allocation174_spill] sm:$0xff] }
 0x28f   : > { %v3677_v9 = vrot.slane %v3472_v2, 7  ;;  %v11384_v13 = vrot.slane %v11383_v10, 9  ;;  %v3661_v20 = vrot.slane %v3659_v16, 2  ;;  %v3664_v6 = vrot.slane %v3662_v62, 2 }
 0x290   : > { %v3667_v19 = vrot.slane %v3665_v63, 2  ;;  %v3670_v41 = vrot.slane %v3668_v29, 2  ;;  %v3673_v15 = vrot.slane %v3671_v58, 2  ;;  %v3676_v7 = vrot.slane %v3674_v24, 2 }
 0x291   : > { %v3660_v42 = vsel %vm6925_vm5, %v11384_v13, %v3659_v16  ;;  %v3679_v45 = vrot.slane %v3677_v9, 2  ;;  %v3663_v53 = vsel %vm6925_vm5, %v3661_v20, %v3662_v62  ;;  %v3666_v3 = vsel %vm6925_vm5, %v3664_v6, %v3665_v63 }
 0x292   : > { %v3669_v33 = vsel %vm6925_vm5, %v3667_v19, %v3668_v29  ;;  %v3870_v2 = vadd.f32 %v3660_v42, %v11385_v21  ;;  %v3672_v16 = vsel %vm6925_vm5, %v3670_v41, %v3671_v58  ;;  %v3675_v10 = vsel %vm6925_vm5, %v3673_v15, %v3674_v24  ;;  %v11388_v41 = vld [vmem:[#allocation30_spill] sm:$0xff]  ;;  %v11389_v15 = vld [vmem:[#allocation31_spill] sm:$0xff] }
 0x293   : > { %v3678_v13 = vsel %vm6925_vm5, %v3676_v7, %v3677_v9  ;;  %v11387_v35 = vrot.slane %v11386_v48, 7  ;;  %v3871_v6 = vadd.f32 %v3663_v53, %v3352_v44  ;;  %v3872_v62 = vadd.f32 %v3666_v3, %v3353_v46  ;;  %v11390_v9 = vld [vmem:[#allocation46_spill] sm:$0xff]  ;;  %v11392_v3 = vld [vmem:[#allocation172_spill] sm:$0xff] }
 0x294   : > { %v3873_v63 = vadd.f32 %v3669_v33, %v3354_v40  ;;  %v3874_v19 = vadd.f32 %v3672_v16, %v3355_v11  ;;  %v3875_v29 = vadd.f32 %v3675_v10, %v3356_v43  ;;  %v3876_v42 = vadd.f32 %v3678_v13, %v3357_v56  ;;  %v11391_v40 = vld [vmem:[#allocation102_spill] sm:$0xff] }
 0x295   : > { %v3681_v20 = vsel %vm6925_vm5, %v3679_v45, %v11387_v35  ;;  %v3979_v58 = vmul.f32 %v11388_v41, %v11315_v0  ;;  %v3980_v24 = vmul.f32 %v11389_v15, %v11317_v34  ;;  %v3981_v7 = vmul.f32 %v11390_v9, %v11319_v17 }
 0x296   : > { %v3877_v21 = vadd.f32 %v3681_v20, %v3358_v37  ;;  %v3982_v48 = vmul.f32 %v11330_v50, %v11321_v52  ;;  %v3983_v35 = vmul.f32 %v11388_v41, %v11322_v57  ;;  %v4171_v44 = vrot.slane %v3978_v8, 7  ;;  %v11394_v20 = vld [vmem:[#allocation36_spill] sm:$0xff]  ;;  %v11396_v41 = vld [vmem:[#allocation178_spill] sm:$0xff] }
 0x297   : > { %v4174_v46 = vrot.slane %v3979_v58, 7  ;;  %v4490_v43 = vmul.f32 %v11091_v32, %v11368_v1  ;;  %v4177_v56 = vrot.slane %v3980_v24, 7  ;;  %v4180_v37 = vrot.slane %v3981_v7, 7 }
 0x298   : > { %v4389_v11 = vadd.f32 %v11391_v40, %v3877_v21  ;;  %v4183_v45 = vrot.slane %v3982_v48, 7  ;;  %v4186_v53 = vrot.slane %v3983_v35, 7  ;;  %v11393_v33 = vrot.slane %v11392_v3, 9  ;;  %v11395_v35 = vld [vmem:[#allocation37_spill] sm:$0xff] }
 0x299   : > { %v4173_v10 = vrot.slane %v4171_v44, 2  ;;  %v4176_v13 = vrot.slane %v4174_v46, 2  ;;  %v4491_v8 = vmul.f32 %v11394_v20, %v11370_v36  ;;  %v4179_v58 = vrot.slane %v4177_v56, 2  ;;  %v11398_v36 = vld [vmem:[#allocation58_spill] sm:$0xff] }
 0x29a   : > { %v4172_v16 = vsel %vm6925_vm5, %v11393_v33, %v4171_v44  ;;  %v4182_v9 = vrot.slane %v4180_v37, 2  ;;  %v4185_v21 = vrot.slane %v4183_v45, 2  ;;  %v4188_v40 = vrot.slane %v4186_v53, 2 }
 0x29b   : > { %v4175_v24 = vsel %vm6925_vm5, %v4173_v10, %v4174_v46  ;;  %v4178_v7 = vsel %vm6925_vm5, %v4176_v13, %v4177_v56  ;;  %v4382_v48 = vadd.f32 %v4172_v16, %v3870_v2  ;;  %v4492_v3 = vmul.f32 %v11395_v35, %v11372_v47 }
 0x29c   : > { %v4181_v44 = vsel %vm6925_vm5, %v4179_v58, %v4180_v37  ;;  %v4184_v33 = vsel %vm6925_vm5, %v4182_v9, %v4183_v45  ;;  %v4187_v15 = vsel %vm6925_vm5, %v4185_v21, %v4186_v53  ;;  %v11397_v50 = vrot.slane %v11396_v41, 7 }
 0x29d   : > { %v4383_v10 = vadd.f32 %v4175_v24, %v3871_v6  ;;  %v4384_v56 = vadd.f32 %v4178_v7, %v3872_v62  ;;  %v4385_v2 = vadd.f32 %v4181_v44, %v3873_v63  ;;  %v4386_v16 = vadd.f32 %v4184_v33, %v3874_v19 }
 0x29e   : > { %v4190_v46 = vsel %vm6925_vm5, %v4188_v40, %v11397_v50  ;;  %v4387_v13 = vadd.f32 %v4187_v15, %v3875_v29  ;;  %v4493_v37 = vmul.f32 %v11398_v36, %v11374_v28  ;;  %v4494_v9 = vmul.f32 %v11091_v32, %v11376_v51  ;;  %v11399_v29 = vld [vmem:[#allocation167_spill] sm:$0xff] }
 0x29f   : > { %v4388_v47 = vadd.f32 %v4190_v46, %v3876_v42  ;;  %v4495_v45 = vmul.f32 %v11394_v20, %v11377_v54  ;;  %v4496_v41 = vmul.f32 %v11395_v35, %v11378_v30  ;;  %v4683_v53 = vrot.slane %v4490_v43, 7 }
 0x2a0   : > { %v4686_v50 = vrot.slane %v4491_v8, 7  ;;  %v4689_v6 = vrot.slane %v4492_v3, 7  ;;  %v4692_v62 = vrot.slane %v4493_v37, 7  ;;  %v4695_v63 = vrot.slane %v4494_v9, 7 }
 0x2a1   : > { %v4984_v19 = vmul.f32 %v11344_v12, %v11266_v27  ;;  %v11400_v42 = vrot.slane %v11399_v29, 9  ;;  %v4685_v58 = vrot.slane %v4683_v53, 2  ;;  %v4698_v40 = vrot.slane %v4495_v45, 7 }
 0x2a2   : > { %v4688_v21 = vrot.slane %v4686_v50, 2  ;;  %v4691_v24 = vrot.slane %v4689_v6, 2  ;;  %v4694_v7 = vrot.slane %v4692_v62, 2  ;;  %v4697_v44 = vrot.slane %v4695_v63, 2 }
 0x2a3   : > { %v4684_v15 = vsel %vm6925_vm5, %v11400_v42, %v4683_v53  ;;  %v4701_v33 = vrot.slane %v4496_v41, 7  ;;  %v4687_v43 = vsel %vm6925_vm5, %v4685_v58, %v4686_v50  ;;  %v4700_v3 = vrot.slane %v4698_v40, 2  ;;  %v11401_v42 = vld [vmem:[#allocation193_spill] sm:$0xff] }
 0x2a4   : > { %v4690_v8 = vsel %vm6925_vm5, %v4688_v21, %v4689_v6  ;;  %v4894_v27 = vadd.f32 %v4684_v15, %v4382_v48  ;;  %v4693_v46 = vsel %vm6925_vm5, %v4691_v24, %v4692_v62  ;;  %v4696_v37 = vsel %vm6925_vm5, %v4694_v7, %v4695_v63 }
 0x2a5   : > { %v4699_v9 = vsel %vm6925_vm5, %v4697_v44, %v4698_v40  ;;  %v4703_v45 = vrot.slane %v4701_v33, 2  ;;  %v4702_v41 = vsel %vm6925_vm5, %v4700_v3, %v4701_v33  ;;  %v4895_v53 = vadd.f32 %v4687_v43, %v4383_v10  ;;  %v11403_v43 = vld [vmem:[#allocation158_spill] sm:$0xff]  ;;  %v11404_v3 = vld [vmem:[#allocation181_spill] sm:$0xff] }
 0x2a6   : > { %v4896_v50 = vadd.f32 %v4690_v8, %v4384_v56  ;;  %v4897_v29 = vadd.f32 %v4693_v46, %v4385_v2  ;;  %v11402_v6 = vrot.slane %v11401_v42, 7  ;;  %v4898_v15 = vadd.f32 %v4696_v37, %v4386_v16 }
 0x2a7   : > { %v4899_v62 = vadd.f32 %v4699_v9, %v4387_v13  ;;  %v4900_v58 = vadd.f32 %v4702_v41, %v4388_v47  ;;  %v4985_v63 = vmul.f32 %v11349_v18, %v11267_v14  ;;  %v4986_v40 = vmul.f32 %v11350_v59, %v11268_v61 }
 0x2a8   : > { %v4705_v48 = vsel %vm6925_vm5, %v4703_v45, %v11402_v6  ;;  %v4987_v10 = vmul.f32 %v11351_v55, %v11269_v60  ;;  %v4988_v56 = vmul.f32 %v11344_v12, %v11270_v25  ;;  %v4989_v2 = vmul.f32 %v11349_v18, %v11271_v22  ;;  %v11406_v6 = vld [vmem:[#allocation161_spill] sm:$0xff] }
 0x2a9   : > { %v4901_v21 = vadd.f32 %v4705_v48, %v4389_v11  ;;  %v4990_v16 = vmul.f32 %v11350_v59, %v11272_v49  ;;  %v4991_v47 = vmul.f32 %v11351_v55, %v11305_v38  ;;  %v5048_v11 = vadd.f32 %v4984_v19, %v4894_v27  ;;  %v11407_v48 = vld [vmem:[#allocation61_spill] sm:$0xff] }
 0x2aa   : > { %v5049_v14 = vadd.f32 %v4985_v63, %v4895_v53  ;;  %v5050_v13 = vadd.f32 %v4986_v40, %v4896_v50  ;;  %v5051_v24 = vadd.f32 %v4987_v10, %v4897_v29  ;;  %v5052_v61 = vadd.f32 %v4988_v56, %v4898_v15  ;;  %v11405_v29 = vld [vmem:[#allocation56_spill] sm:$0xff]  ;;  %v11410_v63 = vld [vmem:[#allocation5_spill] sm:$0xff] }
 0x2ab   : > { %v5053_v7 = vadd.f32 %v4989_v2, %v4899_v62  ;;  %v5054_v44 = vadd.f32 %v4990_v16, %v4900_v58  ;;  %v5055_v60 = vadd.f32 %v4991_v47, %v4901_v21  ;;  %v5138_v25 = vmul.f32 %v11137_v26, %v11313_v23  ;;  %v11408_v62 = vld [vmem:[#allocation110_spill] sm:$0xff]  ;;  %v11409_v58 = vld [vmem:[#allocation60_spill] sm:$0xff] }
 0x2ac   : > { %v5139_v22 = vmul.f32 %v11138_v39, %v11315_v0  ;;  %v5140_v49 = vmul.f32 %v11139_v4, %v11317_v34  ;;  %v5141_v38 = vmul.f32 %v11169_v5, %v11319_v17  ;;  %v5142_v19 = vmul.f32 %v11137_v26, %v11321_v52  ;;  %v11411_v16 = vld [vmem:[#allocation50_spill] sm:$0xff] }
 0x2ad   : > { %v5143_v33 = vmul.f32 %v11138_v39, %v11322_v57  ;;  %v5144_v8 = vmul.f32 %v11139_v4, %v11403_v43  ;;  %v5209_v27 = vadd.f32 %v11404_v3, %v5055_v60  ;;  %v5202_v46 = vadd.f32 %v5138_v25, %v5048_v11  ;;  %v11412_v25 = vld [vmem:[#allocation223_spill] sm:$0xff] }
 0x2ae   : > { %v5203_v37 = vadd.f32 %v5139_v22, %v5049_v14  ;;  %v5204_v9 = vadd.f32 %v5140_v49, %v5050_v13  ;;  %v5205_v45 = vadd.f32 %v5141_v38, %v5051_v24  ;;  %v5206_v41 = vadd.f32 %v5142_v19, %v5052_v61  ;;  %v11413_v49 = vld [vmem:[#allocation228_spill] sm:$0xff]  ;;  %v11414_v19 = vld [vmem:[#allocation227_spill] sm:$0xff] }
 0x2af   : > { %v5207_v53 = vadd.f32 %v5143_v33, %v5053_v7  ;;  %v5208_v50 = vadd.f32 %v5144_v8, %v5054_v44  ;;  %v5292_v42 = vmul.f32 %v11405_v29, %v11368_v1  ;;  %v5293_v15 = vmul.f32 %v11407_v48, %v11406_v6  ;;  %v11415_v8 = vld [vmem:[#allocation27_spill] sm:$0xff] }
 0x2b0   : > { %v5294_v21 = vmul.f32 %v11409_v58, %v11408_v62  ;;  %v5295_v40 = vmul.f32 %v11410_v63, %v11374_v28  ;;  %v5296_v10 = vmul.f32 %v11405_v29, %v11376_v51  ;;  %v5297_v56 = vmul.f32 %v11407_v48, %v11377_v54  ;;  %v11431_v48 = vld [vmem:[#allocation116_spill] sm:$0xff]  ;;  %v11432_v29 = vld [vmem:[#allocation29_spill] sm:$0xff] }
 0x2b1   : > { %v5298_v2 = vmul.f32 %v11409_v58, %v11378_v30  ;;  %v5299_v47 = vmul.f32 %v11410_v63, %v11411_v16  ;;  %v5356_v11 = vadd.f32 %v5292_v42, %v5202_v46  ;;  %v5357_v14 = vadd.f32 %v5293_v15, %v5203_v37 }
 0x2b2   : > { %v5358_v13 = vadd.f32 %v5294_v21, %v5204_v9  ;;  %v5359_v24 = vadd.f32 %v5295_v40, %v5205_v45  ;;  %v5360_v61 = vadd.f32 %v5296_v10, %v5206_v41  ;;  %v5361_v7 = vadd.f32 %v5297_v56, %v5207_v53 }
 0x2b3   : > { %v5362_v44 = vadd.f32 %v5298_v2, %v5208_v50  ;;  %v5363_v60 = vadd.f32 %v5299_v47, %v5209_v27  ;;  %v5447_v22 = vadd.f32 %v11412_v25, %v5356_v11  ;;  %v5448_v38 = vadd.f32 %v11413_v49, %v5357_v14 }
 0x2b4   : > { %v5449_v33 = vadd.f32 %v11414_v19, %v5358_v13  ;;  %v5450_v3 = vadd.f32 %v11415_v8, %v5359_v24  ;;  %v5451_v58 = vadd.f32 %v11412_v25, %v5360_v61  ;;  %v5452_v63 = vadd.f32 %v11413_v49, %v5361_v7  ;;  %v11416_v13 = vld [vmem:[#allocation39_spill] sm:$0xff]  ;;  %v11427_v49 = vld [vmem:[#allocation105_spill] sm:$0xff]  ;;  %v11430_v25 = vld [vmem:[#allocation48_spill] sm:$0xff] }
 0x2b5   : > { %v5453_v46 = vadd.f32 %v11414_v19, %v5362_v44  ;;  %v5454_v37 = vadd.f32 %v11415_v8, %v5363_v60  ;;  %v5511_v9 = vmax.f32 %v5447_v22, 0.0  ;;  %v5512_v45 = vmax.f32 %v5448_v38, 0.0  ;;  %v11417_v44 = vld [vmem:[#allocation11_spill] sm:$0xff] }
 0x2b6   : > { %v5513_v41 = vmax.f32 %v5449_v33, 0.0  ;;  %v5514_v27 = vmax.f32 %v5450_v3, 0.0  ;;  %v5515_v53 = vmax.f32 %v5451_v58, 0.0  ;;  %v5516_v50 = vmax.f32 %v5452_v63, 0.0  ;;  %v11418_v58 = vld [vmem:[#allocation41_spill] sm:$0xff]  ;;  %v11425_v8 = vld [vmem:[#allocation187_spill] sm:$0xff] }
 0x2b7   : > { %v5517_v42 = vmax.f32 %v5453_v46, 0.0  ;;  %v5518_v15 = vmax.f32 %v5454_v37, 0.0  ;;  %v5575_v21 = vmin.f32 %v5511_v9, 6.0  ;;  %v5576_v40 = vmin.f32 %v5512_v45, 6.0  ;;  %v11419_v33 = vld [vmem:[#allocation9_spill] sm:$0xff]  ;;  %v11420_v37 = vld [vmem:[#allocation2_spill] sm:$0xff] }
 0x2b8   : > { %v5577_v10 = vmin.f32 %v5513_v41, 6.0  ;;  %v5578_v56 = vmin.f32 %v5514_v27, 6.0  ;;  %v5579_v2 = vmin.f32 %v5515_v53, 6.0  ;;  %v5580_v47 = vmin.f32 %v5516_v50, 6.0 }
 0x2b9   : > { %v5581_v11 = vmin.f32 %v5517_v42, 6.0  ;;  %v5582_v14 = vmin.f32 %v5518_v15, 6.0  ;;  %v2988_v24 = vmul.f32 %v11416_v13, %v11313_v23  ;;  %v5781_v61 = vcombine.low %v5575_v21, %v5576_v40  ;;  %v11421_v42 = vld [vmem:[#allocation42_spill] sm:$0xff]  ;;  %v11422_v21 = vld [vmem:[#allocation24_spill] sm:$0xff] }
 0x2ba   : > { %v5782_v7 = vcombine.low %v5577_v10, %v5578_v56  ;;  %v2989_v60 = vmul.f32 %v11417_v44, %v11315_v0  ;;  %v2990_v63 = vmul.f32 %v11418_v58, %v11317_v34  ;;  %v5798_v22 = vcombine.low %v5579_v2, %v5580_v47  ;;  %v11423_v56 = vld [vmem:[#allocation44_spill] sm:$0xff]  ;;  %v11424_v47 = vld [vmem:[#allocation14_spill] sm:$0xff] }
 0x2bb   : > { %v5799_v38 = vcombine.low %v5581_v11, %v5582_v14  ;;  %v2991_v3 = vmul.f32 %v11419_v33, %v11319_v17  ;;  %v2992_v46 = vmul.f32 %v11416_v13, %v11321_v52  ;;  %v5789_v9 = vrot.slane %v5781_v61, %v11420_v37 }
 0x2bc   : > { %v5796_v45 = vrot.slane %v5782_v7, %v11420_v37  ;;  %v2993_v41 = vmul.f32 %v11417_v44, %v11322_v57  ;;  %v2994_v27 = vmul.f32 %v11418_v58, %v11403_v43  ;;  %v5806_v53 = vrot.slane %v5798_v22, %v11420_v37 }
 0x2bd   : > { %v5813_v50 = vrot.slane %v5799_v38, %v11420_v37  ;;  %v3142_v15 = vmul.f32 %v11421_v42, %v11368_v1  ;;  %v3143_v40 = vmul.f32 %v11422_v21, %v11406_v6  ;;  %v3144_v2 = vmul.f32 %v11423_v56, %v11408_v62 }
 0x2be   : > { %v5797_v10 = vcombine.low %v5789_v9, %v5796_v45  ;;  %v3145_v11 = vmul.f32 %v11424_v47, %v11374_v28  ;;  %v3146_v14 = vmul.f32 %v11421_v42, %v11376_v51  ;;  %v3147_v7 = vmul.f32 %v11422_v21, %v11377_v54  ;;  %v11426_v47 = vld [vmem:[#allocation54_spill] sm:$0xff]  ;;  %v11428_v42 = vld [vmem:[#allocation33_spill] sm:$0xff] }
 0x2bf   : > { %v5814_v61 = vcombine.low %v5806_v53, %v5813_v50  ;;  %v3148_v22 = vmul.f32 %v11423_v56, %v11378_v30  ;;  %v3206_v38 = vadd.f32 %v3142_v15, %v2988_v24  ;;  %v3207_v37 = vadd.f32 %v3143_v40, %v2989_v60  ;;  %v11429_v50 = vld [vmem:[#allocation115_spill] sm:$0xff]  ;;  %v11433_v24 = vld [vmem:[#allocation182_spill] sm:$0xff] }
 0x2c0   : > { %v3208_v33 = vadd.f32 %v3144_v2, %v2990_v63  ;;  %v3209_v9 = vadd.f32 %v3145_v11, %v2991_v3  ;;  %v3210_v45 = vadd.f32 %v3146_v14, %v2992_v46  ;;  %v3211_v44 = vadd.f32 %v3147_v7, %v2993_v41  ;;  %v11434_v63 = vld [vmem:[#allocation130_spill] sm:$0xff]  ;;  %v11435_v46 = vld [vmem:[#allocation43_spill] sm:$0xff] }
 0x2c1   : > { %v5970_v58 = vpack.c.bf16 %v5814_v61, %v5797_v10  ;;  %v3212_v13 = vadd.f32 %v3148_v22, %v2994_v27  ;;  %v3296_v19 = vmul.f32 %v11426_v47, %v11425_v8  ;;  %v3297_v53 = vmul.f32 %v11428_v42, %v11427_v49  ;;  %v11436_v15 = vld [vmem:[#allocation23_spill] sm:$0xff]  ;;  %v11437_v22 = vld [vmem:[#allocation16_spill] sm:$0xff] }
 0x2c2   : > { %v3298_v21 = vmul.f32 %v11430_v25, %v11429_v50  ;;  %v3299_v56 = vmul.f32 %v11432_v29, %v11431_v48  ;;  %v3300_v60 = vmul.f32 %v11426_v47, %v11433_v24  ;;  %v3301_v3 = vmul.f32 %v11428_v42, %v11434_v63  ;;  %v11439_v42 = vld [vmem:[#allocation15_spill] sm:$0xff] }
 0x2c3   : > { %6427 = vmatmul.mubr.msk.bf16.gmra.mrb[8].mxu1 %vm5994_vm7, %v5970_v58  ;;  %v3302_v41 = vmul.f32 %v11430_v25, %v11435_v46  ;;  %v3360_v27 = vadd.f32 %v3296_v19, %v3206_v38  ;;  %v3476_v40 = vmul.f32 %v11436_v15, %v11315_v0  ;;  %v3361_v10 = vadd.f32 %v3297_v53, %v3207_v37  ;;  %v11438_v58 = vld [vmem:[#allocation45_spill] sm:$0xff]  ;;  %v11440_v38 = vld [vmem:[#allocation171_spill] sm:$0xff] }
 0x2c4   : > { %v3362_v2 = vadd.f32 %v3298_v21, %v3208_v33  ;;  %v3363_v11 = vadd.f32 %v3299_v56, %v3209_v9  ;;  %v3364_v14 = vadd.f32 %v3300_v60, %v3210_v45  ;;  %v3365_v61 = vadd.f32 %v3301_v3, %v3211_v44  ;;  %v11442_v44 = vld [vmem:[#allocation190_spill] sm:$0xff]  ;;  %v11444_v45 = vld [vmem:[#allocation100_spill] sm:$0xff] }
 0x2c5   : > { %v3366_v7 = vadd.f32 %v3302_v41, %v3212_v13  ;;  %v3477_v29 = vmul.f32 %v11437_v22, %v11317_v34  ;;  %v3478_v47 = vmul.f32 %v11438_v58, %v11319_v17  ;;  %v3479_v16 = vmul.f32 %v11439_v42, %v11321_v52  ;;  %v11443_v13 = vld [vmem:[#allocation177_spill] sm:$0xff] }
 0x2c6   : > { %v3480_v19 = vmul.f32 %v11436_v15, %v11322_v57  ;;  %v11441_v25 = vrot.slane %v11440_v38, 7  ;;  %v3687_v33 = vrot.slane %v3476_v40, 7  ;;  %v3878_v9 = vadd.f32 %v11443_v13, %v11442_v44  ;;  %v11445_v38 = vld [vmem:[#allocation26_spill] sm:$0xff] }
 0x2c7   : > { %v3690_v21 = vrot.slane %v3477_v29, 7  ;;  %v3693_v56 = vrot.slane %v3478_v47, 7  ;;  %v3885_v53 = vadd.f32 %v11444_v45, %v3366_v7  ;;  %v3696_v41 = vrot.slane %v3479_v16, 7  ;;  %v11446_v44 = vld [vmem:[#allocation30_spill] sm:$0xff]  ;;  %v11448_v45 = vld [vmem:[#allocation176_spill] sm:$0xff] }
 0x2c8   : > { %v3686_v37 = vrot.slane %v11441_v25, 2  ;;  %v3689_v3 = vrot.slane %v3687_v33, 2  ;;  %v3699_v58 = vrot.slane %v3480_v19, 7  ;;  %v3987_v25 = vmul.f32 %v11445_v38, %v11368_v1 }
 0x2c9   : > { %v3692_v22 = vrot.slane %v3690_v21, 2  ;;  %v3695_v42 = vrot.slane %v3693_v56, 2  ;;  %v3698_v47 = vrot.slane %v3696_v41, 2  ;;  %v3988_v7 = vmul.f32 %v11446_v44, %v11406_v6 }
 0x2ca   : > { %v3688_v60 = vsel %vm6925_vm5, %v3686_v37, %v3687_v33  ;;  %v3691_v29 = vsel %vm6925_vm5, %v3689_v3, %v3690_v21  ;;  %v3701_v40 = vrot.slane %v3699_v58, 2  ;;  %v11449_v21 = vrot.slane %v11448_v45, 7 }
 0x2cb   : > { %v3879_v15 = vadd.f32 %v3688_v60, %v3360_v27  ;;  %v3694_v37 = vsel %vm6925_vm5, %v3692_v22, %v3693_v56  ;;  %v3697_v16 = vsel %vm6925_vm5, %v3695_v42, %v3696_v41  ;;  %v3880_v19 = vadd.f32 %v3691_v29, %v3361_v10  ;;  %v11447_v27 = vld [vmem:[#allocation31_spill] sm:$0xff]  ;;  %v11450_v22 = vld [vmem:[#allocation46_spill] sm:$0xff] }
 0x2cc   : > { %v3989_v33 = vmul.f32 %v11447_v27, %v11408_v62  ;;  %v3700_v13 = vsel %vm6925_vm5, %v3698_v47, %v3699_v58  ;;  %v3703_v60 = vsel %vm6925_vm5, %v3701_v40, %v11449_v21  ;;  %v3881_v3 = vadd.f32 %v3694_v37, %v3362_v2 }
 0x2cd   : > { %v3882_v5 = vadd.f32 %v3697_v16, %v3363_v11  ;;  %v3883_v4 = vadd.f32 %v3700_v13, %v3364_v14  ;;  %v3884_v39 = vadd.f32 %v3703_v60, %v3365_v61  ;;  %v3990_v56 = vmul.f32 %v11450_v22, %v11374_v28  ;;  %v11451_v14 = vld [vmem:[#allocation166_spill] sm:$0xff] }
 0x2ce   : > { %v3991_v42 = vmul.f32 %v11445_v38, %v11376_v51  ;;  %v3992_v10 = vmul.f32 %v11446_v44, %v11377_v54  ;;  %v3993_v58 = vmul.f32 %v11447_v27, %v11378_v30  ;;  %v4196_v41 = vrot.slane %v3987_v25, 7  ;;  %v11453_v44 = vld [vmem:[#allocation192_spill] sm:$0xff] }
 0x2cf   : > { %v4199_v29 = vrot.slane %v3988_v7, 7  ;;  %v4202_v47 = vrot.slane %v3989_v33, 7  ;;  %v4205_v40 = vrot.slane %v3990_v56, 7  ;;  %v4499_v11 = vmul.f32 %v11091_v32, %v11425_v8 }
 0x2d0   : > { %v4208_v2 = vrot.slane %v3991_v42, 7  ;;  %v11452_v61 = vrot.slane %v11451_v14, 9  ;;  %v4198_v16 = vrot.slane %v4196_v41, 2  ;;  %v4211_v45 = vrot.slane %v3992_v10, 7 }
 0x2d1   : > { %v4201_v13 = vrot.slane %v4199_v29, 2  ;;  %v4204_v21 = vrot.slane %v4202_v47, 2  ;;  %v4207_v60 = vrot.slane %v4205_v40, 2  ;;  %v4214_v27 = vrot.slane %v3993_v58, 7 }
 0x2d2   : > { %v4197_v37 = vsel %vm6925_vm5, %v11452_v61, %v4196_v41  ;;  %v4210_v22 = vrot.slane %v4208_v2, 2  ;;  %v4200_v25 = vsel %vm6925_vm5, %v4198_v16, %v4199_v29  ;;  %v4213_v33 = vrot.slane %v4211_v45, 2 }
 0x2d3   : > { %v4203_v7 = vsel %vm6925_vm5, %v4201_v13, %v4202_v47  ;;  %v4390_v56 = vadd.f32 %v4197_v37, %v3878_v9  ;;  %v4206_v42 = vsel %vm6925_vm5, %v4204_v21, %v4205_v40  ;;  %v4209_v41 = vsel %vm6925_vm5, %v4207_v60, %v4208_v2 }
 0x2d4   : > { %v4212_v10 = vsel %vm6925_vm5, %v4210_v22, %v4211_v45  ;;  %v4216_v14 = vrot.slane %v4214_v27, 2  ;;  %v4215_v58 = vsel %vm6925_vm5, %v4213_v33, %v4214_v27  ;;  %v4391_v61 = vadd.f32 %v4200_v25, %v3879_v15  ;;  %v11455_v45 = vld [vmem:[#allocation189_spill] sm:$0xff] }
 0x2d5   : > { %v4392_v29 = vadd.f32 %v4203_v7, %v3880_v19  ;;  %v4393_v16 = vadd.f32 %v4206_v42, %v3881_v3  ;;  %v11454_v47 = vrot.slane %v11453_v44, 7  ;;  %v4394_v37 = vadd.f32 %v4209_v41, %v3882_v5 }
 0x2d6   : > { %v4395_v40 = vadd.f32 %v4212_v10, %v3883_v4  ;;  %v4396_v13 = vadd.f32 %v4215_v58, %v3884_v39  ;;  %v4500_v2 = vmul.f32 %v11394_v20, %v11427_v49  ;;  %v4501_v22 = vmul.f32 %v11395_v35, %v11429_v50 }
 0x2d7   : > { %v4218_v9 = vsel %vm6925_vm5, %v4216_v14, %v11454_v47  ;;  %v4502_v15 = vmul.f32 %v11398_v36, %v11431_v48  ;;  %v4503_v19 = vmul.f32 %v11091_v32, %v11433_v24  ;;  %v4504_v44 = vmul.f32 %v11394_v20, %v11434_v63 }
 0x2d8   : > { %v4397_v21 = vadd.f32 %v4218_v9, %v3885_v53  ;;  %v4505_v4 = vmul.f32 %v11395_v35, %v11435_v46  ;;  %v4708_v39 = vrot.slane %v4499_v11, 7  ;;  %v4711_v5 = vrot.slane %v4500_v2, 7 }
 0x2d9   : > { %v4714_v53 = vrot.slane %v4501_v22, 7  ;;  %v4717_v27 = vrot.slane %v4502_v15, 7  ;;  %v4992_v3 = vmul.f32 %v11344_v12, %v11313_v23  ;;  %v11456_v60 = vrot.slane %v11455_v45, 9  ;;  %v11457_v45 = vld [vmem:[#allocation195_spill] sm:$0xff] }
 0x2da   : > { %v4710_v7 = vrot.slane %v4708_v39, 2  ;;  %v4720_v33 = vrot.slane %v4503_v19, 7  ;;  %v4723_v42 = vrot.slane %v4504_v44, 7  ;;  %v4713_v41 = vrot.slane %v4711_v5, 2 }
 0x2db   : > { %v4709_v25 = vsel %vm6925_vm5, %v11456_v60, %v4708_v39  ;;  %v4716_v10 = vrot.slane %v4714_v53, 2  ;;  %v4719_v14 = vrot.slane %v4717_v27, 2  ;;  %v4726_v58 = vrot.slane %v4505_v4, 7 }
 0x2dc   : > { %v4712_v11 = vsel %vm6925_vm5, %v4710_v7, %v4711_v5  ;;  %v4722_v47 = vrot.slane %v4720_v33, 2  ;;  %v4725_v9 = vrot.slane %v4723_v42, 2  ;;  %v4902_v2 = vadd.f32 %v4709_v25, %v4390_v56 }
 0x2dd   : > { %v4715_v23 = vsel %vm6925_vm5, %v4713_v41, %v4714_v53  ;;  %v4718_v22 = vsel %vm6925_vm5, %v4716_v10, %v4717_v27  ;;  %v4721_v15 = vsel %vm6925_vm5, %v4719_v14, %v4720_v33  ;;  %v4728_v19 = vrot.slane %v4726_v58, 2 }
 0x2de   : > { %v4724_v44 = vsel %vm6925_vm5, %v4722_v47, %v4723_v42  ;;  %v4727_v4 = vsel %vm6925_vm5, %v4725_v9, %v4726_v58  ;;  %v4903_v39 = vadd.f32 %v4712_v11, %v4391_v61  ;;  %v4904_v5 = vadd.f32 %v4715_v23, %v4392_v29 }
 0x2df   : > { %v11458_v56 = vrot.slane %v11457_v45, 7  ;;  %v4905_v60 = vadd.f32 %v4718_v22, %v4393_v16  ;;  %v4906_v25 = vadd.f32 %v4721_v15, %v4394_v37  ;;  %v4907_v27 = vadd.f32 %v4724_v44, %v4395_v40  ;;  %v11463_v15 = vld [vmem:[#allocation50_spill] sm:$0xff] }
 0x2e0   : > { %v4908_v7 = vadd.f32 %v4727_v4, %v4396_v13  ;;  %v4993_v33 = vmul.f32 %v11349_v18, %v11315_v0  ;;  %v4994_v42 = vmul.f32 %v11350_v59, %v11317_v34  ;;  %v4995_v61 = vmul.f32 %v11351_v55, %v11319_v17 }
 0x2e1   : > { %v4730_v53 = vsel %vm6925_vm5, %v4728_v19, %v11458_v56  ;;  %v4996_v29 = vmul.f32 %v11344_v12, %v11321_v52  ;;  %v4997_v10 = vmul.f32 %v11349_v18, %v11322_v57  ;;  %v4998_v16 = vmul.f32 %v11350_v59, %v11403_v43  ;;  %v11460_v52 = vld [vmem:[#allocation59_spill] sm:$0xff]  ;;  %v11461_v57 = vld [vmem:[#allocation28_spill] sm:$0xff] }
 0x2e2   : > { %v4909_v41 = vadd.f32 %v4730_v53, %v4397_v21  ;;  %v5056_v37 = vadd.f32 %v4992_v3, %v4902_v2  ;;  %v5057_v40 = vadd.f32 %v4993_v33, %v4903_v39  ;;  %v5058_v13 = vadd.f32 %v4994_v42, %v4904_v5  ;;  %v11459_v21 = vld [vmem:[#allocation180_spill] sm:$0xff]  ;;  %v11462_v43 = vld [vmem:[#allocation47_spill] sm:$0xff] }
 0x2e3   : > { %v5059_v14 = vadd.f32 %v4995_v61, %v4905_v60  ;;  %v5060_v58 = vadd.f32 %v4996_v29, %v4906_v25  ;;  %v5061_v34 = vadd.f32 %v4997_v10, %v4907_v27  ;;  %v5062_v11 = vadd.f32 %v4998_v16, %v4908_v7  ;;  %v11464_v25 = vld [vmem:[#allocation56_spill] sm:$0xff]  ;;  %v11465_v7 = vld [vmem:[#allocation61_spill] sm:$0xff] }
 0x2e4   : > { %v5063_v0 = vadd.f32 %v11459_v21, %v4909_v41  ;;  %v5146_v17 = vmul.f32 %v11137_v26, %v11368_v1  ;;  %v5147_v47 = vmul.f32 %v11460_v52, %v11406_v6  ;;  %v5148_v9 = vmul.f32 %v11461_v57, %v11408_v62  ;;  %v11466_v33 = vld [vmem:[#allocation60_spill] sm:$0xff]  ;;  %v11467_v61 = vld [vmem:[#allocation5_spill] sm:$0xff] }
 0x2e5   : > { %v5149_v3 = vmul.f32 %v11462_v43, %v11374_v28  ;;  %v5150_v2 = vmul.f32 %v11137_v26, %v11376_v51  ;;  %v5151_v23 = vmul.f32 %v11460_v52, %v11377_v54  ;;  %v5152_v22 = vmul.f32 %v11461_v57, %v11378_v30  ;;  %v11500_v57 = vld [vmem:[#allocation191_spill] sm:$0xff] }
 0x2e6   : > { %v5153_v19 = vmul.f32 %v11462_v43, %v11463_v15  ;;  %v5210_v44 = vadd.f32 %v5146_v17, %v5056_v37  ;;  %v5211_v4 = vadd.f32 %v5147_v47, %v5057_v40  ;;  %v5212_v39 = vadd.f32 %v5148_v9, %v5058_v13  ;;  %v11468_v40 = vld [vmem:[#allocation53_spill] sm:$0xff]  ;;  %v11469_v9 = vld [vmem:[#allocation223_spill] sm:$0xff] }
 0x2e7   : > { %v5213_v5 = vadd.f32 %v5149_v3, %v5059_v14  ;;  %v5214_v45 = vadd.f32 %v5150_v2, %v5060_v58  ;;  %v5215_v56 = vadd.f32 %v5151_v23, %v5061_v34  ;;  %v5216_v53 = vadd.f32 %v5152_v22, %v5062_v11  ;;  %v11470_v2 = vld [vmem:[#allocation228_spill] sm:$0xff]  ;;  %v11471_v22 = vld [vmem:[#allocation227_spill] sm:$0xff]  ;;  %v11489_v43 = vld [vmem:[#allocation29_spill] sm:$0xff] }
 0x2e8   : > { %v5217_v60 = vadd.f32 %v5153_v19, %v5063_v0  ;;  %v5300_v27 = vmul.f32 %v11464_v25, %v11425_v8  ;;  %v5301_v41 = vmul.f32 %v11465_v7, %v11427_v49  ;;  %v5302_v42 = vmul.f32 %v11466_v33, %v11429_v50 }
 0x2e9   : > { %v5303_v29 = vmul.f32 %v11467_v61, %v11431_v48  ;;  %v5304_v10 = vmul.f32 %v11464_v25, %v11433_v24  ;;  %v5305_v16 = vmul.f32 %v11465_v7, %v11434_v63  ;;  %v5306_v37 = vmul.f32 %v11466_v33, %v11435_v46  ;;  %v11472_v7 = vld [vmem:[#allocation27_spill] sm:$0xff] }
 0x2ea   : > { %v5307_v13 = vmul.f32 %v11467_v61, %v11468_v40  ;;  %v5364_v21 = vadd.f32 %v5300_v27, %v5210_v44  ;;  %v5365_v0 = vadd.f32 %v5301_v41, %v5211_v4  ;;  %v5366_v14 = vadd.f32 %v5302_v42, %v5212_v39  ;;  %v11488_v61 = vld [vmem:[#allocation199_spill] sm:$0xff] }
 0x2eb   : > { %v5367_v58 = vadd.f32 %v5303_v29, %v5213_v5  ;;  %v5368_v34 = vadd.f32 %v5304_v10, %v5214_v45  ;;  %v5369_v11 = vadd.f32 %v5305_v16, %v5215_v56  ;;  %v5370_v17 = vadd.f32 %v5306_v37, %v5216_v53 }
 0x2ec   : > { %v5371_v47 = vadd.f32 %v5307_v13, %v5217_v60  ;;  %v5455_v3 = vadd.f32 %v11469_v9, %v5364_v21  ;;  %v5456_v23 = vadd.f32 %v11470_v2, %v5365_v0  ;;  %v5457_v19 = vadd.f32 %v11471_v22, %v5366_v14 }
 0x2ed   : > { %v5458_v25 = vadd.f32 %v11472_v7, %v5367_v58  ;;  %v5459_v33 = vadd.f32 %v11469_v9, %v5368_v34  ;;  %v5460_v40 = vadd.f32 %v11470_v2, %v5369_v11  ;;  %v5461_v44 = vadd.f32 %v11471_v22, %v5370_v17  ;;  %v11473_v34 = vld [vmem:[#allocation39_spill] sm:$0xff]  ;;  %v11485_v22 = vld [vmem:[#allocation33_spill] sm:$0xff]  ;;  %v11487_v9 = vld [vmem:[#allocation48_spill] sm:$0xff] }
 0x2ee   : > { %v5462_v4 = vadd.f32 %v11472_v7, %v5371_v47  ;;  %v5519_v39 = vmax.f32 %v5455_v3, 0.0  ;;  %v5520_v5 = vmax.f32 %v5456_v23, 0.0  ;;  %v5521_v45 = vmax.f32 %v5457_v19, 0.0  ;;  %v11474_v17 = vld [vmem:[#allocation11_spill] sm:$0xff]  ;;  %v11475_v3 = vld [vmem:[#allocation41_spill] sm:$0xff]  ;;  %v11482_v7 = vld [vmem:[#allocation134_spill] sm:$0xff] }
 0x2ef   : > { %v5522_v56 = vmax.f32 %v5458_v25, 0.0  ;;  %v5523_v53 = vmax.f32 %v5459_v33, 0.0  ;;  %v5524_v60 = vmax.f32 %v5460_v40, 0.0  ;;  %v5525_v27 = vmax.f32 %v5461_v44, 0.0  ;;  %v11476_v19 = vld [vmem:[#allocation9_spill] sm:$0xff]  ;;  %v11477_v44 = vld [vmem:[#allocation2_spill] sm:$0xff] }
 0x2f0   : > { %v5526_v41 = vmax.f32 %v5462_v4, 0.0  ;;  %v5583_v42 = vmin.f32 %v5519_v39, 6.0  ;;  %v5584_v29 = vmin.f32 %v5520_v5, 6.0  ;;  %v5585_v10 = vmin.f32 %v5521_v45, 6.0  ;;  %v11486_v2 = vld [vmem:[#allocation57_spill] sm:$0xff] }
 0x2f1   : > { %v5586_v16 = vmin.f32 %v5522_v56, 6.0  ;;  %v5587_v37 = vmin.f32 %v5523_v53, 6.0  ;;  %v5588_v13 = vmin.f32 %v5524_v60, 6.0  ;;  %v5589_v21 = vmin.f32 %v5525_v27, 6.0  ;;  %v11478_v27 = vld [vmem:[#allocation42_spill] sm:$0xff] }
 0x2f2   : > { %v5590_v0 = vmin.f32 %v5526_v41, 6.0  ;;  %v5815_v14 = vcombine.low %v5583_v42, %v5584_v29  ;;  %v2996_v11 = vmul.f32 %v11473_v34, %v11368_v1  ;;  %v2997_v25 = vmul.f32 %v11474_v17, %v11406_v6  ;;  %v11479_v29 = vld [vmem:[#allocation24_spill] sm:$0xff] }
 0x2f3   : > { %v5816_v58 = vcombine.low %v5585_v10, %v5586_v16  ;;  %v5832_v33 = vcombine.low %v5587_v37, %v5588_v13  ;;  %v2998_v23 = vmul.f32 %v11475_v3, %v11408_v62  ;;  %v2999_v40 = vmul.f32 %v11476_v19, %v11374_v28  ;;  %v11480_v16 = vld [vmem:[#allocation44_spill] sm:$0xff]  ;;  %v11481_v13 = vld [vmem:[#allocation14_spill] sm:$0xff] }
 0x2f4   : > { %v5833_v47 = vcombine.low %v5589_v21, %v5590_v0  ;;  %v5823_v4 = vrot.slane %v5815_v14, %v11477_v44  ;;  %v3000_v5 = vmul.f32 %v11473_v34, %v11376_v51  ;;  %v3001_v45 = vmul.f32 %v11474_v17, %v11377_v54 }
 0x2f5   : > { %v5830_v39 = vrot.slane %v5816_v58, %v11477_v44  ;;  %v5840_v56 = vrot.slane %v5832_v33, %v11477_v44  ;;  %v3002_v60 = vmul.f32 %v11475_v3, %v11378_v30  ;;  %v3150_v41 = vmul.f32 %v11478_v27, %v11425_v8 }
 0x2f6   : > { %v5847_v53 = vrot.slane %v5833_v47, %v11477_v44  ;;  %v3151_v10 = vmul.f32 %v11479_v29, %v11427_v49  ;;  %v3152_v37 = vmul.f32 %v11480_v16, %v11429_v50  ;;  %v3153_v21 = vmul.f32 %v11481_v13, %v11431_v48  ;;  %v11483_v13 = vld [vmem:[#allocation54_spill] sm:$0xff] }
 0x2f7   : > { %v5831_v42 = vcombine.low %v5823_v4, %v5830_v39  ;;  %v3154_v14 = vmul.f32 %v11478_v27, %v11433_v24  ;;  %v3155_v58 = vmul.f32 %v11479_v29, %v11434_v63  ;;  %v3156_v34 = vmul.f32 %v11480_v16, %v11435_v46 }
 0x2f8   : > { %v5848_v0 = vcombine.low %v5840_v56, %v5847_v53  ;;  %v3214_v17 = vadd.f32 %v3150_v41, %v2996_v11  ;;  %v3215_v33 = vadd.f32 %v3151_v10, %v2997_v25  ;;  %v3216_v47 = vadd.f32 %v3152_v37, %v2998_v23  ;;  %v11484_v53 = vld [vmem:[#allocation136_spill] sm:$0xff]  ;;  %v11490_v11 = vld [vmem:[#allocation55_spill] sm:$0xff] }
 0x2f9   : > { %v3217_v3 = vadd.f32 %v3153_v21, %v2999_v40  ;;  %v3218_v4 = vadd.f32 %v3154_v14, %v3000_v5  ;;  %v3219_v39 = vadd.f32 %v3155_v58, %v3001_v45  ;;  %v3220_v44 = vadd.f32 %v3156_v34, %v3002_v60  ;;  %v11491_v23 = vld [vmem:[#allocation203_spill] sm:$0xff]  ;;  %v11492_v5 = vld [vmem:[#allocation204_spill] sm:$0xff] }
 0x2fa   : > { %v5971_v19 = vpack.c.bf16 %v5848_v0, %v5831_v42  ;;  %v3304_v56 = vmul.f32 %v11483_v13, %v11482_v7  ;;  %v3305_v27 = vmul.f32 %v11485_v22, %v11484_v53  ;;  %v3306_v29 = vmul.f32 %v11487_v9, %v11486_v2  ;;  %v11493_v60 = vld [vmem:[#allocation15_spill] sm:$0xff] }
 0x2fb   : > { %v3307_v16 = vmul.f32 %v11489_v43, %v11488_v61  ;;  %v3308_v25 = vmul.f32 %v11483_v13, %v11490_v11  ;;  %v3309_v40 = vmul.f32 %v11485_v22, %v11491_v23  ;;  %v3310_v45 = vmul.f32 %v11487_v9, %v11492_v5  ;;  %v11494_v58 = vld [vmem:[#allocation23_spill] sm:$0xff]  ;;  %v11496_v22 = vld [vmem:[#allocation45_spill] sm:$0xff] }
 0x2fc   : > { %6430 = vmatprep.mubr.msk.bf16.mxu1 %vm5994_vm7, %v5971_v19  ;;  %v3484_v41 = vmul.f32 %v11493_v60, %v11368_v1  ;;  %v3368_v42 = vadd.f32 %v3304_v56, %v3214_v17  ;;  %v3369_v10 = vadd.f32 %v3305_v27, %v3215_v33  ;;  %v3370_v37 = vadd.f32 %v3306_v29, %v3216_v47  ;;  %v11495_v19 = vld [vmem:[#allocation16_spill] sm:$0xff]  ;;  %v11497_v29 = vld [vmem:[#allocation165_spill] sm:$0xff] }
 0x2fd   : > { %v3371_v21 = vadd.f32 %v3307_v16, %v3217_v3  ;;  %v3372_v0 = vadd.f32 %v3308_v25, %v3218_v4  ;;  %v3373_v43 = vadd.f32 %v3309_v40, %v3219_v39  ;;  %v3374_v14 = vadd.f32 %v3310_v45, %v3220_v44 }
 0x2fe   : > { %v3485_v34 = vmul.f32 %v11494_v58, %v11406_v6  ;;  %v3486_v13 = vmul.f32 %v11495_v19, %v11408_v62  ;;  %v3487_v46 = vmul.f32 %v11496_v22, %v11374_v28  ;;  %v3488_v9 = vmul.f32 %v11493_v60, %v11376_v51 }
 0x2ff   : > { %v3489_v17 = vmul.f32 %v11494_v58, %v11377_v54  ;;  %v3490_v33 = vmul.f32 %v11495_v19, %v11378_v30  ;;  %v3709_v47 = vrot.slane %v3484_v41, 7  ;;  %v3996_v3 = vmul.f32 %v11445_v38, %v11425_v8 }
 0x300   : > { %v3712_v44 = vrot.slane %v3485_v34, 7  ;;  %v3715_v4 = vrot.slane %v3486_v13, 7  ;;  %v3718_v39 = vrot.slane %v3487_v46, 7  ;;  %v3721_v56 = vrot.slane %v3488_v9, 7  ;;  %v11499_v9 = vld [vmem:[#allocation197_spill] sm:$0xff] }
 0x301   : > { %v3724_v27 = vrot.slane %v3489_v17, 7  ;;  %v11498_v16 = vrot.slane %v11497_v29, 9  ;;  %v3711_v40 = vrot.slane %v3709_v47, 2  ;;  %v3727_v60 = vrot.slane %v3490_v33, 7 }
 0x302   : > { %v3714_v45 = vrot.slane %v3712_v44, 2  ;;  %v3717_v22 = vrot.slane %v3715_v4, 2  ;;  %v3720_v58 = vrot.slane %v3718_v39, 2  ;;  %v3723_v19 = vrot.slane %v3721_v56, 2 }
 0x303   : > { %v3710_v25 = vsel %vm6925_vm5, %v11498_v16, %v3709_v47  ;;  %v3726_v41 = vrot.slane %v3724_v27, 2  ;;  %v3713_v34 = vsel %vm6925_vm5, %v3711_v40, %v3712_v44  ;;  %v3729_v13 = vrot.slane %v3727_v60, 2 }
 0x304   : > { %v3716_v46 = vsel %vm6925_vm5, %v3714_v45, %v3715_v4  ;;  %v3886_v17 = vadd.f32 %v3710_v25, %v11499_v9  ;;  %v3719_v29 = vsel %vm6925_vm5, %v3717_v22, %v3718_v39  ;;  %v3722_v47 = vsel %vm6925_vm5, %v3720_v58, %v3721_v56  ;;  %v11502_v58 = vld [vmem:[#allocation30_spill] sm:$0xff] }
 0x305   : > { %v3725_v33 = vsel %vm6925_vm5, %v3723_v19, %v3724_v27  ;;  %v3728_v16 = vsel %vm6925_vm5, %v3726_v41, %v3727_v60  ;;  %v11501_v44 = vrot.slane %v11500_v57, 7  ;;  %v3887_v40 = vadd.f32 %v3713_v34, %v3368_v42  ;;  %v11503_v19 = vld [vmem:[#allocation31_spill] sm:$0xff]  ;;  %v11504_v60 = vld [vmem:[#allocation46_spill] sm:$0xff] }
 0x306   : > { %v3888_v45 = vadd.f32 %v3716_v46, %v3369_v10  ;;  %v3889_v25 = vadd.f32 %v3719_v29, %v3370_v37  ;;  %v3890_v9 = vadd.f32 %v3722_v47, %v3371_v21  ;;  %v3891_v52 = vadd.f32 %v3725_v33, %v3372_v0  ;;  %v11505_v37 = vld [vmem:[#allocation117_spill] sm:$0xff] }
 0x307   : > { %v3731_v4 = vsel %vm6925_vm5, %v3729_v13, %v11501_v44  ;;  %v3892_v22 = vadd.f32 %v3728_v16, %v3373_v43  ;;  %v3997_v56 = vmul.f32 %v11502_v58, %v11427_v49  ;;  %v3998_v27 = vmul.f32 %v11503_v19, %v11429_v50  ;;  %v11506_v13 = vld [vmem:[#allocation188_spill] sm:$0xff] }
 0x308   : > { %v3893_v39 = vadd.f32 %v3731_v4, %v3374_v14  ;;  %v3999_v41 = vmul.f32 %v11504_v60, %v11431_v48  ;;  %v4000_v57 = vmul.f32 %v11445_v38, %v11433_v24  ;;  %v4001_v42 = vmul.f32 %v11502_v58, %v11434_v63  ;;  %v11508_v38 = vld [vmem:[#allocation194_spill] sm:$0xff] }
 0x309   : > { %v4221_v10 = vrot.slane %v3996_v3, 7  ;;  %v4508_v0 = vmul.f32 %v11091_v32, %v11482_v7  ;;  %v4224_v43 = vrot.slane %v3997_v56, 7  ;;  %v4227_v14 = vrot.slane %v3998_v27, 7 }
 0x30a   : > { %v9913_v21 = vadd.f32 %v11505_v37, %v3893_v39  ;;  %v4230_v34 = vrot.slane %v3999_v41, 7  ;;  %v4233_v46 = vrot.slane %v4000_v57, 7  ;;  %v11507_v29 = vrot.slane %v11506_v13, 9 }
 0x30b   : > { %v4223_v33 = vrot.slane %v4221_v10, 2  ;;  %v4236_v16 = vrot.slane %v4001_v42, 7  ;;  %v4509_v3 = vmul.f32 %v11394_v20, %v11484_v53  ;;  %v4226_v44 = vrot.slane %v4224_v43, 2 }
 0x30c   : > { %v4222_v47 = vsel %vm6925_vm5, %v11507_v29, %v4221_v10  ;;  %v4229_v4 = vrot.slane %v4227_v14, 2  ;;  %v4232_v39 = vrot.slane %v4230_v34, 2  ;;  %v4235_v37 = vrot.slane %v4233_v46, 2 }
 0x30d   : > { %v4225_v56 = vsel %vm6925_vm5, %v4223_v33, %v4224_v43  ;;  %v4238_v27 = vrot.slane %v4236_v16, 2  ;;  %v4398_v41 = vadd.f32 %v4222_v47, %v3886_v17  ;;  %v4510_v57 = vmul.f32 %v11395_v35, %v11486_v2 }
 0x30e   : > { %v4228_v13 = vsel %vm6925_vm5, %v4226_v44, %v4227_v14  ;;  %v4231_v42 = vsel %vm6925_vm5, %v4229_v4, %v4230_v34  ;;  %v4234_v10 = vsel %vm6925_vm5, %v4232_v39, %v4233_v46  ;;  %v4237_v29 = vsel %vm6925_vm5, %v4235_v37, %v4236_v16 }
 0x30f   : > { %v11509_v60 = vrot.slane %v11508_v38, 7  ;;  %v4399_v43 = vadd.f32 %v4225_v56, %v3887_v40  ;;  %v4400_v47 = vadd.f32 %v4228_v13, %v3888_v45  ;;  %v4401_v33 = vadd.f32 %v4231_v42, %v3889_v25  ;;  %v11510_v25 = vld [vmem:[#allocation196_spill] sm:$0xff] }
 0x310   : > { %v4402_v19 = vadd.f32 %v4234_v10, %v3890_v9  ;;  %v4403_v58 = vadd.f32 %v4237_v29, %v3891_v52  ;;  %v4511_v34 = vmul.f32 %v11398_v36, %v11488_v61  ;;  %v4512_v46 = vmul.f32 %v11091_v32, %v11490_v11 }
 0x311   : > { %v4240_v17 = vsel %vm6925_vm5, %v4238_v27, %v11509_v60  ;;  %v4513_v16 = vmul.f32 %v11394_v20, %v11491_v23  ;;  %v4514_v38 = vmul.f32 %v11395_v35, %v11492_v5  ;;  %v4733_v44 = vrot.slane %v4508_v0, 7 }
 0x312   : > { %v4404_v14 = vadd.f32 %v4240_v17, %v3892_v22  ;;  %v4736_v60 = vrot.slane %v4509_v3, 7  ;;  %v4739_v40 = vrot.slane %v4510_v57, 7  ;;  %v4742_v45 = vrot.slane %v4511_v34, 7 }
 0x313   : > { %v5000_v52 = vmul.f32 %v11344_v12, %v11368_v1  ;;  %v11511_v9 = vrot.slane %v11510_v25, 9  ;;  %v4735_v22 = vrot.slane %v4733_v44, 2  ;;  %v4745_v32 = vrot.slane %v4512_v46, 7  ;;  %v11512_v46 = vld [vmem:[#allocation205_spill] sm:$0xff] }
 0x314   : > { %v4748_v4 = vrot.slane %v4513_v16, 7  ;;  %v4738_v39 = vrot.slane %v4736_v60, 2  ;;  %v4741_v20 = vrot.slane %v4739_v40, 2  ;;  %v4744_v37 = vrot.slane %v4742_v45, 2 }
 0x315   : > { %v4734_v36 = vsel %vm6925_vm5, %v11511_v9, %v4733_v44  ;;  %v4751_v56 = vrot.slane %v4514_v38, 7  ;;  %v4737_v35 = vsel %vm6925_vm5, %v4735_v22, %v4736_v60  ;;  %v4747_v0 = vrot.slane %v4745_v32, 2 }
 0x316   : > { %v4750_v3 = vrot.slane %v4748_v4, 2  ;;  %v4910_v27 = vadd.f32 %v4734_v36, %v4398_v41  ;;  %v4740_v1 = vsel %vm6925_vm5, %v4738_v39, %v4739_v40  ;;  %v4743_v57 = vsel %vm6925_vm5, %v4741_v20, %v4742_v45  ;;  %v11515_v39 = vld [vmem:[#allocation28_spill] sm:$0xff]  ;;  %v11516_v20 = vld [vmem:[#allocation47_spill] sm:$0xff] }
 0x317   : > { %v4746_v13 = vsel %vm6925_vm5, %v4744_v37, %v4745_v32  ;;  %v4753_v42 = vrot.slane %v4751_v56, 2  ;;  %v4749_v10 = vsel %vm6925_vm5, %v4747_v0, %v4748_v4  ;;  %v4911_v17 = vadd.f32 %v4737_v35, %v4399_v43  ;;  %v11514_v4 = vld [vmem:[#allocation59_spill] sm:$0xff] }
 0x318   : > { %v4752_v29 = vsel %vm6925_vm5, %v4750_v3, %v4751_v56  ;;  %v4912_v34 = vadd.f32 %v4740_v1, %v4400_v47  ;;  %v11513_v41 = vrot.slane %v11512_v46, 7  ;;  %v4913_v38 = vadd.f32 %v4743_v57, %v4401_v33  ;;  %v11517_v56 = vld [vmem:[#allocation43_spill] sm:$0xff]  ;;  %v11518_v1 = vld [vmem:[#allocation198_spill] sm:$0xff]  ;;  %v11520_v46 = vld [vmem:[#allocation61_spill] sm:$0xff] }
 0x319   : > { %v4914_v44 = vadd.f32 %v4746_v13, %v4402_v19  ;;  %v4915_v60 = vadd.f32 %v4749_v10, %v4403_v58  ;;  %v4916_v40 = vadd.f32 %v4752_v29, %v4404_v14  ;;  %v5001_v25 = vmul.f32 %v11349_v18, %v11406_v6 }
 0x31a   : > { %v4755_v16 = vsel %vm6925_vm5, %v4753_v42, %v11513_v41  ;;  %v5002_v9 = vmul.f32 %v11350_v59, %v11408_v62  ;;  %v5003_v43 = vmul.f32 %v11351_v55, %v11374_v28  ;;  %v5004_v47 = vmul.f32 %v11344_v12, %v11376_v51 }
 0x31b   : > { %v4917_v45 = vadd.f32 %v4755_v16, %v9913_v21  ;;  %v5005_v33 = vmul.f32 %v11349_v18, %v11377_v54  ;;  %v5006_v58 = vmul.f32 %v11350_v59, %v11378_v30  ;;  %v5007_v19 = vmul.f32 %v11351_v55, %v11463_v15  ;;  %v11521_v16 = vld [vmem:[#allocation60_spill] sm:$0xff] }
 0x31c   : > { %v5064_v21 = vadd.f32 %v5000_v52, %v4910_v27  ;;  %v5065_v6 = vadd.f32 %v5001_v25, %v4911_v17  ;;  %v5066_v14 = vadd.f32 %v5002_v9, %v4912_v34  ;;  %v5067_v36 = vadd.f32 %v5003_v43, %v4913_v38  ;;  %v11519_v17 = vld [vmem:[#allocation56_spill] sm:$0xff]  ;;  %v11523_v9 = vld [vmem:[#allocation62_spill] sm:$0xff] }
 0x31d   : > { %v5068_v62 = vadd.f32 %v5004_v47, %v4914_v44  ;;  %v5069_v22 = vadd.f32 %v5005_v33, %v4915_v60  ;;  %v5070_v32 = vadd.f32 %v5006_v58, %v4916_v40  ;;  %v5071_v28 = vadd.f32 %v5007_v19, %v4917_v45  ;;  %v11522_v44 = vld [vmem:[#allocation5_spill] sm:$0xff] }
 0x31e   : > { %v5154_v51 = vmul.f32 %v11137_v26, %v11425_v8  ;;  %v5155_v54 = vmul.f32 %v11514_v4, %v11427_v49  ;;  %v5156_v30 = vmul.f32 %v11515_v39, %v11429_v50  ;;  %v5157_v15 = vmul.f32 %v11516_v20, %v11431_v48 }
 0x31f   : > { %v5158_v52 = vmul.f32 %v11137_v26, %v11433_v24  ;;  %v5159_v37 = vmul.f32 %v11514_v4, %v11434_v63  ;;  %v5160_v35 = vmul.f32 %v11515_v39, %v11517_v56  ;;  %v5225_v57 = vadd.f32 %v11518_v1, %v5071_v28 }
 0x320   : > { %v5218_v0 = vadd.f32 %v5154_v51, %v5064_v21  ;;  %v5219_v3 = vadd.f32 %v5155_v54, %v5065_v6  ;;  %v5220_v27 = vadd.f32 %v5156_v30, %v5066_v14  ;;  %v5221_v13 = vadd.f32 %v5157_v15, %v5067_v36  ;;  %v11526_v51 = vld [vmem:[#allocation227_spill] sm:$0xff] }
 0x321   : > { %v5222_v42 = vadd.f32 %v5158_v52, %v5068_v62  ;;  %v5223_v10 = vadd.f32 %v5159_v37, %v5069_v22  ;;  %v5224_v29 = vadd.f32 %v5160_v35, %v5070_v32  ;;  %v5308_v34 = vmul.f32 %v11519_v17, %v11482_v7  ;;  %v11524_v62 = vld [vmem:[#allocation223_spill] sm:$0xff]  ;;  %v11525_v32 = vld [vmem:[#allocation228_spill] sm:$0xff] }
 0x322   : > { %v5309_v41 = vmul.f32 %v11520_v46, %v11484_v53  ;;  %v5310_v38 = vmul.f32 %v11521_v16, %v11486_v2  ;;  %v5311_v60 = vmul.f32 %v11522_v44, %v11488_v61  ;;  %v5312_v40 = vmul.f32 %v11519_v17, %v11490_v11  ;;  %v11527_v30 = vld [vmem:[#allocation27_spill] sm:$0xff] }
 0x323   : > { %v5313_v45 = vmul.f32 %v11520_v46, %v11491_v23  ;;  %v5314_v25 = vmul.f32 %v11521_v16, %v11492_v5  ;;  %v5315_v43 = vmul.f32 %v11522_v44, %v11523_v9  ;;  %v5372_v47 = vadd.f32 %v5308_v34, %v5218_v0  ;;  %v10023_v34 = vpop.f32.mrb[4].mxu1 }
 0x324   : > { %v5373_v33 = vadd.f32 %v5309_v41, %v5219_v3  ;;  %v5374_v58 = vadd.f32 %v5310_v38, %v5220_v27  ;;  %v5375_v19 = vadd.f32 %v5311_v60, %v5221_v13  ;;  %v5376_v21 = vadd.f32 %v5312_v40, %v5222_v42  ;;  %11528 = vst [vmem:[#allocation3_spill] sm:$0xff] %v10023_v34 }
 0x325   : > { %v5377_v6 = vadd.f32 %v5313_v45, %v5223_v10  ;;  %v5378_v14 = vadd.f32 %v5314_v25, %v5224_v29  ;;  %v5379_v36 = vadd.f32 %v5315_v43, %v5225_v57  ;;  %v5463_v22 = vadd.f32 %v11524_v62, %v5372_v47  ;;  %v10025_v45 = vpop.f32.mrb[5].mxu1 }
 0x326   : > { %v5464_v28 = vadd.f32 %v11525_v32, %v5373_v33  ;;  %v5465_v54 = vadd.f32 %v11526_v51, %v5374_v58  ;;  %v5466_v15 = vadd.f32 %v11527_v30, %v5375_v19  ;;  %v5467_v52 = vadd.f32 %v11524_v62, %v5376_v21  ;;  %11529 = vst [vmem:[#allocation151_spill] sm:$0xff] %v10025_v45  ;;  %v10027_v33 = vpop.f32.mrb[6].mxu1  ;;  %v11531_v21 = vld [vmem:[#allocation23_spill] sm:$0xff] }
 0x327   : > { %v5468_v37 = vadd.f32 %v11525_v32, %v5377_v6  ;;  %v5469_v35 = vadd.f32 %v11526_v51, %v5378_v14  ;;  %v5470_v0 = vadd.f32 %v11527_v30, %v5379_v36  ;;  %v5527_v3 = vmax.f32 %v5463_v22, 0.0  ;;  %11530 = vst [vmem:[#allocation64_spill] sm:$0xff] %v10027_v33  ;;  %v11532_v14 = vld [vmem:[#allocation16_spill] sm:$0xff]  ;;  %v10033_v22 = vpop.f32.mrb[7].mxu1 }
 0x328   : > { %v5528_v27 = vmax.f32 %v5464_v28, 0.0  ;;  %v5529_v1 = vmax.f32 %v5465_v54, 0.0  ;;  %v5530_v57 = vmax.f32 %v5466_v15, 0.0  ;;  %v5531_v13 = vmax.f32 %v5467_v52, 0.0  ;;  %11533 = vst [vmem:[#allocation152_spill] sm:$0xff] %v10033_v22  ;;  %v11534_v15 = vld [vmem:[#allocation45_spill] sm:$0xff] }
 0x329   : > { %v5532_v42 = vmax.f32 %v5468_v37, 0.0  ;;  %v5533_v10 = vmax.f32 %v5469_v35, 0.0  ;;  %v5534_v29 = vmax.f32 %v5470_v0, 0.0  ;;  %v5591_v41 = vmin.f32 %v5527_v3, 6.0  ;;  %v11535_v37 = vld [vmem:[#allocation15_spill] sm:$0xff]  ;;  %v11536_v0 = vld [vmem:[#allocation2_spill] sm:$0xff] }
 0x32a   : > { %v5592_v38 = vmin.f32 %v5528_v27, 6.0  ;;  %v5593_v60 = vmin.f32 %v5529_v1, 6.0  ;;  %v5594_v40 = vmin.f32 %v5530_v57, 6.0  ;;  %v5595_v25 = vmin.f32 %v5531_v13, 6.0  ;;  %v11559_v22 = vld [vmem:[#allocation214_spill] sm:$0xff] }
 0x32b   : > { %v5596_v9 = vmin.f32 %v5532_v42, 6.0  ;;  %v5597_v43 = vmin.f32 %v5533_v10, 6.0  ;;  %v5598_v47 = vmin.f32 %v5534_v29, 6.0  ;;  %v3494_v6 = vmul.f32 %v11531_v21, %v11427_v49 }
 0x32c   : > { %v5849_v58 = vcombine.low %v5591_v41, %v5592_v38  ;;  %v5850_v19 = vcombine.low %v5593_v60, %v5594_v40  ;;  %v3495_v36 = vmul.f32 %v11532_v14, %v11429_v50  ;;  %v3496_v52 = vmul.f32 %v11534_v15, %v11431_v48  ;;  %v11537_v38 = vld [vmem:[#allocation210_spill] sm:$0xff] }
 0x32d   : > { %v5866_v28 = vcombine.low %v5595_v25, %v5596_v9  ;;  %v5867_v54 = vcombine.low %v5597_v43, %v5598_v47  ;;  %v3497_v35 = vmul.f32 %v11535_v37, %v11433_v24  ;;  %v3498_v1 = vmul.f32 %v11531_v21, %v11434_v63 }
 0x32e   : > { %v5857_v3 = vrot.slane %v5849_v58, %v11536_v0  ;;  %v5864_v27 = vrot.slane %v5850_v19, %v11536_v0  ;;  %v3737_v57 = vrot.slane %v3494_v6, 7  ;;  %v3740_v10 = vrot.slane %v3495_v36, 7  ;;  %v11538_v6 = vld [vmem:[#allocation206_spill] sm:$0xff] }
 0x32f   : > { %v5874_v13 = vrot.slane %v5866_v28, %v11536_v0  ;;  %v5881_v42 = vrot.slane %v5867_v54, %v11536_v0  ;;  %v3743_v29 = vrot.slane %v3496_v52, 7  ;;  %v3746_v25 = vrot.slane %v3497_v35, 7  ;;  %v11539_v36 = vld [vmem:[#allocation30_spill] sm:$0xff] }
 0x330   : > { %v5865_v41 = vcombine.low %v5857_v3, %v5864_v27  ;;  %v3738_v60 = vsel %vm6925_vm5, %v11537_v38, %v3737_v57  ;;  %v3739_v40 = vrot.slane %v3737_v57, 2  ;;  %v3742_v43 = vrot.slane %v3740_v10, 2  ;;  %v11540_v3 = vld [vmem:[#allocation207_spill] sm:$0xff]  ;;  %v11545_v38 = vld [vmem:[#allocation225_spill] sm:$0xff] }
 0x331   : > { %v5882_v9 = vcombine.low %v5874_v13, %v5881_v42  ;;  %v3745_v47 = vrot.slane %v3743_v29, 2  ;;  %v3749_v58 = vrot.slane %v3498_v1, 7  ;;  %v3748_v21 = vrot.slane %v3746_v25, 2  ;;  %v11541_v1 = vld [vmem:[#allocation208_spill] sm:$0xff] }
 0x332   : > { %v3741_v19 = vsel %vm6925_vm5, %v3739_v40, %v3740_v10  ;;  %v3895_v14 = vadd.f32 %v3738_v60, %v11538_v6  ;;  %v4006_v28 = vmul.f32 %v11539_v36, %v11484_v53  ;;  %v3744_v15 = vsel %vm6925_vm5, %v3742_v43, %v3743_v29  ;;  %v11542_v13 = vld [vmem:[#allocation224_spill] sm:$0xff]  ;;  %v11543_v10 = vld [vmem:[#allocation185_spill] sm:$0xff]  ;;  %v11546_v40 = vld [vmem:[#allocation31_spill] sm:$0xff] }
 0x333   : > { %v5972_v54 = vpack.c.bf16 %v5882_v9, %v5865_v41  ;;  %v3747_v52 = vsel %vm6925_vm5, %v3745_v47, %v3746_v25  ;;  %v3751_v37 = vrot.slane %v3749_v58, 2  ;;  %v3750_v35 = vsel %vm6925_vm5, %v3748_v21, %v3749_v58  ;;  %v11547_v9 = vld [vmem:[#allocation46_spill] sm:$0xff] }
 0x334   : > { %v3896_v27 = vadd.f32 %v3741_v19, %v11540_v3  ;;  %v3897_v57 = vadd.f32 %v3744_v15, %v11541_v1  ;;  %v3898_v42 = vadd.f32 %v3747_v52, %v11542_v13  ;;  %v11544_v41 = vrot.slane %v11543_v10, 7  ;;  %v11548_v47 = vld [vmem:[#allocation226_spill] sm:$0xff]  ;;  %v11553_v13 = vld [vmem:[#allocation209_spill] sm:$0xff] }
 0x335   : > { %6431 = vmatmul.mubr.msk.bf16.gmra.mrb[12].mxu1 %vm5994_vm7, %v5972_v54  ;;  %v3899_v60 = vadd.f32 %v3750_v35, %v11545_v38  ;;  %v4007_v25 = vmul.f32 %v11546_v40, %v11486_v2  ;;  %v4008_v43 = vmul.f32 %v11547_v9, %v11488_v61  ;;  %v11549_v19 = vld [vmem:[#allocation26_spill] sm:$0xff]  ;;  %v4010_v6 = vmul.f32 %v11539_v36, %v11491_v23  ;;  %v11552_v35 = vld [vmem:[#allocation212_spill] sm:$0xff]  ;;  %v11556_v38 = vld [vmem:[#allocation211_spill] sm:$0xff] }
 0x336   : > { %v3753_v29 = vsel %vm6925_vm5, %v3751_v37, %v11544_v41  ;;  %v4009_v21 = vmul.f32 %v11549_v19, %v11490_v11  ;;  %v4249_v54 = vrot.slane %v4006_v28, 7  ;;  %v11550_v37 = vld [vmem:[#allocation35_spill] sm:$0xff]  ;;  %v11554_v10 = vrot.slane %v11553_v13, 7  ;;  %v11555_v41 = vld [vmem:[#allocation213_spill] sm:$0xff]  ;;  %v11557_v19 = vld [vmem:[#allocation220_spill] sm:$0xff] }
 0x337   : > { %v3900_v58 = vadd.f32 %v3753_v29, %v11548_v47  ;;  %v4252_v15 = vrot.slane %v4007_v25, 7  ;;  %v4255_v52 = vrot.slane %v4008_v43, 7  ;;  %v11551_v3 = vrot.slane %v11550_v37, 7 }
 0x338   : > { %v4765_v29 = vsel %vm6925_vm5, %v11555_v41, %v11554_v10  ;;  %v4250_v40 = vsel %vm6925_vm5, %v11556_v38, %v4249_v54  ;;  %v4251_v36 = vrot.slane %v4249_v54, 2  ;;  %v4258_v28 = vrot.slane %v4009_v21, 7  ;;  %v11560_v41 = vld [vmem:[#allocation221_spill] sm:$0xff] }
 0x339   : > { %v4762_v1 = vsel %vm6925_vm5, %v11552_v35, %v11551_v3  ;;  %v4261_v25 = vrot.slane %v4010_v6, 7  ;;  %v4254_v9 = vrot.slane %v4252_v15, 2  ;;  %v4257_v43 = vrot.slane %v4255_v52, 2  ;;  %v11562_v38 = vld [vmem:[#allocation229_spill] sm:$0xff] }
 0x33a   : > { %v4407_v47 = vadd.f32 %v4250_v40, %v3895_v14  ;;  %v11558_v37 = vrot.slane %v11557_v19, 7  ;;  %v4253_v35 = vsel %vm6925_vm5, %v4251_v36, %v4252_v15  ;;  %v4260_v13 = vrot.slane %v4258_v28, 2  ;;  %v11563_v40 = vld [vmem:[#allocation222_spill] sm:$0xff] }
 0x33b   : > { %v4263_v10 = vrot.slane %v4261_v25, 2  ;;  %v11561_v33 = vrot.slane %v11560_v41, 7  ;;  %v4256_v14 = vsel %vm6925_vm5, %v4254_v9, %v4255_v52  ;;  %v4259_v6 = vsel %vm6925_vm5, %v4257_v43, %v4258_v28  ;;  %v11565_v19 = vld [vmem:[#allocation230_spill] sm:$0xff]  ;;  %v11568_v28 = vld [vmem:[#allocation236_spill] sm:$0xff]  ;;  %v11570_v43 = vld [vmem:[#allocation231_spill] sm:$0xff] }
 0x33c   : > { %v4768_v3 = vsel %vm6925_vm5, %v11559_v22, %v11558_v37  ;;  %v4408_v54 = vadd.f32 %v4253_v35, %v3896_v27  ;;  %v11564_v22 = vrot.slane %v11563_v40, 7  ;;  %v4262_v36 = vsel %vm6925_vm5, %v4260_v13, %v4261_v25  ;;  %v11566_v37 = vld [vmem:[#allocation234_spill] sm:$0xff] }
 0x33d   : > { %v4771_v21 = vsel %vm6925_vm5, %v11562_v38, %v11561_v33  ;;  %v11567_v41 = vrot.slane %v11566_v37, 7  ;;  %v4409_v38 = vadd.f32 %v4256_v14, %v3897_v57  ;;  %v4410_v52 = vadd.f32 %v4259_v6, %v3898_v42 }
 0x33e   : > { %v4774_v15 = vsel %vm6925_vm5, %v11565_v19, %v11564_v22  ;;  %v4411_v9 = vadd.f32 %v4262_v36, %v3899_v60  ;;  %v11569_v27 = vrot.slane %v11568_v28, 7  ;;  %v4919_v40 = vadd.f32 %v4762_v1, %v4407_v47  ;;  %v11571_v1 = vld [vmem:[#allocation216_spill] sm:$0xff]  ;;  %v11579_v28 = vld [vmem:[#allocation51_spill] sm:$0xff] }
 0x33f   : > { %v4265_v33 = vsel %vm6925_vm5, %v4263_v10, %v11567_v41  ;;  %v4920_v22 = vadd.f32 %v4765_v29, %v4408_v54  ;;  %v4921_v19 = vadd.f32 %v4768_v3, %v4409_v38  ;;  %v4922_v34 = vadd.f32 %v4771_v21, %v4410_v52  ;;  %v11578_v41 = vld [vmem:[#allocation219_spill] sm:$0xff] }
 0x340   : > { %v4412_v45 = vadd.f32 %v4265_v33, %v3900_v58  ;;  %v4777_v35 = vsel %vm6925_vm5, %v11570_v43, %v11569_v27  ;;  %v5008_v25 = vmul.f32 %v11344_v12, %v11425_v8  ;;  %v4923_v13 = vadd.f32 %v4774_v15, %v4411_v9  ;;  %v11577_v15 = vld [vmem:[#allocation218_spill] sm:$0xff] }
 0x341   : > { %v5009_v57 = vmul.f32 %v11349_v18, %v11427_v49  ;;  %v5010_v42 = vmul.f32 %v11350_v59, %v11429_v50  ;;  %v5011_v60 = vmul.f32 %v11351_v55, %v11431_v48  ;;  %v5012_v31 = vmul.f32 %v11344_v12, %v11433_v24 }
 0x342   : > { %v4924_v37 = vadd.f32 %v4777_v35, %v4412_v45  ;;  %v5013_v58 = vmul.f32 %v11349_v18, %v11434_v63  ;;  %v5014_v8 = vmul.f32 %v11350_v59, %v11517_v56  ;;  %v5072_v45 = vadd.f32 %v5008_v25, %v11571_v1  ;;  %v11572_v56 = vld [vmem:[#allocation200_spill] sm:$0xff] }
 0x343   : > { %v5073_v29 = vadd.f32 %v5009_v57, %v4919_v40  ;;  %v5074_v47 = vadd.f32 %v5010_v42, %v4920_v22  ;;  %v5162_v49 = vmul.f32 %v11137_v26, %v11482_v7  ;;  %v5075_v50 = vadd.f32 %v5011_v60, %v4921_v19 }
 0x344   : > { %v5076_v3 = vadd.f32 %v5012_v31, %v4922_v34  ;;  %v5077_v10 = vadd.f32 %v5013_v58, %v4923_v13  ;;  %v5078_v55 = vadd.f32 %v5014_v8, %v4924_v37  ;;  %v5163_v12 = vmul.f32 %v11514_v4, %v11484_v53  ;;  %v11582_v8 = vld [vmem:[#allocation183_spill] sm:$0xff] }
 0x345   : > { %v5164_v18 = vmul.f32 %v11515_v39, %v11486_v2  ;;  %v5165_v59 = vmul.f32 %v11516_v20, %v11488_v61  ;;  %v5166_v48 = vmul.f32 %v11137_v26, %v11490_v11  ;;  %v5167_v24 = vmul.f32 %v11514_v4, %v11491_v23  ;;  %v11573_v61 = vld [vmem:[#allocation201_spill] sm:$0xff]  ;;  %v11574_v26 = vld [vmem:[#allocation202_spill] sm:$0xff]  ;;  %v11575_v23 = vld [vmem:[#allocation215_spill] sm:$0xff] }
 0x346   : > { %v5168_v63 = vmul.f32 %v11515_v39, %v11492_v5  ;;  %v5226_v7 = vadd.f32 %v5162_v49, %v5072_v45  ;;  %v5316_v34 = vmul.f32 %v11519_v17, %v11572_v56  ;;  %v5227_v53 = vadd.f32 %v5163_v12, %v5073_v29  ;;  %v11576_v5 = vld [vmem:[#allocation217_spill] sm:$0xff] }
 0x347   : > { %v5228_v21 = vadd.f32 %v5164_v18, %v5074_v47  ;;  %v5229_v14 = vadd.f32 %v5165_v59, %v5075_v50  ;;  %v5230_v2 = vadd.f32 %v5166_v48, %v5076_v3  ;;  %v5231_v6 = vadd.f32 %v5167_v24, %v5077_v10  ;;  %v11585_v24 = vld [vmem:[#allocation235_spill] sm:$0xff] }
 0x348   : > { %v5232_v54 = vadd.f32 %v5168_v63, %v5078_v55  ;;  %v5317_v20 = vmul.f32 %v11520_v46, %v11573_v61  ;;  %v5318_v11 = vmul.f32 %v11521_v16, %v11574_v26  ;;  %v5319_v4 = vmul.f32 %v11522_v44, %v11575_v23  ;;  %v11583_v55 = vld [vmem:[#allocation232_spill] sm:$0xff] }
 0x349   : > { %v5320_v39 = vmul.f32 %v11519_v17, %v11576_v5  ;;  %v5321_v36 = vmul.f32 %v11520_v46, %v11577_v15  ;;  %v5322_v33 = vmul.f32 %v11521_v16, %v11578_v41  ;;  %v5380_v38 = vadd.f32 %v5316_v34, %v5226_v7  ;;  %v11581_v46 = vld [vmem:[#allocation132_spill] sm:$0xff]  ;;  %v11588_v41 = vld [vmem:[#allocation18_spill] sm:$0xff] }
 0x34a   : > { %v5381_v52 = vadd.f32 %v5317_v20, %v5227_v53  ;;  %v5382_v9 = vadd.f32 %v5318_v11, %v5228_v21  ;;  %v11580_v27 = vmax.f32 %v11579_v28, 0.0  ;;  %v5383_v35 = vadd.f32 %v5319_v4, %v5229_v14  ;;  %v11586_v7 = vld [vmem:[#allocation32_spill] sm:$0xff]  ;;  %v10184_v20 = vld [vmem:[%s10317_s6] ss:$0 sm:$0xff]  ;;  %v11590_v28 = vld [vmem:[#allocation3_spill] sm:$0xff] }
 0x34b   : > { %v5384_v40 = vadd.f32 %v5320_v39, %v5230_v2  ;;  %v5385_v22 = vadd.f32 %v5321_v36, %v5231_v6  ;;  %v5386_v19 = vadd.f32 %v5322_v33, %v5232_v54  ;;  %v5471_v44 = vadd.f32 %v11524_v62, %v5380_v38  ;;  %v11587_v36 = vld [vmem:[#allocation38_spill] sm:$0xff] }
 0x34c   : > { %v5606_v43 = vmin.f32 %v11580_v27, 6.0  ;;  %v5472_v17 = vadd.f32 %v11525_v32, %v5381_v52  ;;  %v5473_v25 = vadd.f32 %v11526_v51, %v5382_v9  ;;  %v5543_v13 = vmax.f32 %v11581_v46, 0.0  ;;  %v11591_v46 = vld [vmem:[#allocation151_spill] sm:$0xff] }
 0x34d   : > { %v5474_v16 = vadd.f32 %v11527_v30, %v5383_v35  ;;  %v5475_v37 = vadd.f32 %v11524_v62, %v5384_v40  ;;  %v5476_v57 = vadd.f32 %v11525_v32, %v5385_v22  ;;  %v5477_v42 = vadd.f32 %v11526_v51, %v5386_v19  ;;  %v11584_v51 = vld [vmem:[#allocation233_spill] sm:$0xff]  ;;  %v6513_v22 = vld [vmem:[%s6681_s18 + $0x30] sm:$0xff] }
 0x34e   : > { %v5535_v60 = vmax.f32 %v5471_v44, 0.0  ;;  %v5536_v31 = vmax.f32 %v5472_v17, 0.0  ;;  %v5537_v58 = vmax.f32 %v5473_v25, 0.0  ;;  %v5544_v1 = vmax.f32 %v11582_v8, 0.0  ;;  %v6514_v17 = vld [vmem:[%s6681_s18 + $0x38] sm:$0xff] }
 0x34f   : > { %v5538_v45 = vmax.f32 %v5474_v16, 0.0  ;;  %v5539_v29 = vmax.f32 %v5475_v37, 0.0  ;;  %v5540_v47 = vmax.f32 %v5476_v57, 0.0  ;;  %v5541_v49 = vmax.f32 %v5477_v42, 0.0  ;;  %v6515_v16 = vld [vmem:[%s6681_s18 + $0x18] sm:$0xff] }
 0x350   : > { %v5599_v50 = vmin.f32 %v5535_v60, 6.0  ;;  %v5600_v3 = vmin.f32 %v5536_v31, 6.0  ;;  %v5601_v10 = vmin.f32 %v5537_v58, 6.0  ;;  %v5545_v30 = vmax.f32 %v11583_v55, 0.0  ;;  %v6516_v60 = vld [vmem:[%s6681_s18 + $0x20] sm:$0xff]  ;;  %v11592_v58 = vld [vmem:[#allocation64_spill] sm:$0xff] }
 0x351   : > { %v5602_v12 = vmin.f32 %v5538_v45, 6.0  ;;  %v5603_v62 = vmin.f32 %v5539_v29, 6.0  ;;  %v5604_v18 = vmin.f32 %v5540_v47, 6.0  ;;  %v5605_v32 = vmin.f32 %v5541_v49, 6.0  ;;  %v6517_v45 = vld [vmem:[%s6681_s18 + $0x40] sm:$0x3] }
 0x352   : > { %v5883_v59 = vcombine.low %v5599_v50, %v5600_v3  ;;  %v5546_v48 = vmax.f32 %v11584_v51, 0.0  ;;  %v5547_v63 = vmax.f32 %v11585_v24, 0.0  ;;  %v5548_v56 = vmax.f32 %v11586_v7, 0.0  ;;  %v11593_v47 = vld [vmem:[#allocation152_spill] sm:$0xff]  ;;  %v6518_v49 = vld [vmem:[%s6681_s18 + $0x28] sm:$0x3] }
 0x353   : > { %v5884_v34 = vcombine.low %v5601_v10, %v5602_v12  ;;  %v5900_v53 = vcombine.low %v5603_v62, %v5604_v18  ;;  %v5901_v21 = vcombine.low %v5605_v32, %v5606_v43  ;;  %v5607_v14 = vmin.f32 %v5543_v13, 6.0  ;;  %v6519_v51 = vld [vmem:[%s6681_s18 + $0x60] sm:$0xff]  ;;  %v6520_v24 = vld [vmem:[%s6681_s18 + $0x68] sm:$0xff] }
 0x354   : > { %v5891_v2 = vrot.slane %v5883_v59, %v11536_v0  ;;  %v5608_v6 = vmin.f32 %v5544_v1, 6.0  ;;  %v5609_v54 = vmin.f32 %v5545_v30, 6.0  ;;  %v5610_v61 = vmin.f32 %v5546_v48, 6.0  ;;  %v6521_v7 = vld [vmem:[%s6681_s18 + $0x48] sm:$0xff] }
 0x355   : > { %v5898_v26 = vrot.slane %v5884_v34, %v11536_v0  ;;  %v5908_v11 = vrot.slane %v5900_v53, %v11536_v0  ;;  %v5915_v23 = vrot.slane %v5901_v21, %v11536_v0  ;;  %v5611_v4 = vmin.f32 %v5547_v63, 6.0  ;;  %v6522_v34 = vld [vmem:[%s6681_s18 + $0x50] sm:$0xff] }
 0x356   : > { %v5612_v5 = vmin.f32 %v5548_v56, 6.0  ;;  %v5917_v39 = vcombine.low %v5607_v14, %v5608_v6  ;;  %v5918_v15 = vcombine.low %v5609_v54, %v5610_v61  ;;  %v11589_v33 = vcombine.low %v11587_v36, %v11588_v41  ;;  %v6523_v21 = vld [vmem:[%s6681_s18 + $0x70] sm:$0x3] }
 0x357   : > { %v5899_v52 = vcombine.low %v5891_v2, %v5898_v26  ;;  %v5916_v9 = vcombine.low %v5908_v11, %v5915_v23  ;;  %v6066_v27 = vadd.f32 %v11590_v28, %v10184_v20  ;;  %v6126_v19 = vrot.slane %v6513_v22, 1  ;;  %v6524_v2 = vld [vmem:[%s6681_s18 + $0x58] sm:$0x3] }
 0x358   : > { %v5949_v38 = vrot.slane %v11589_v33, %v11536_v0  ;;  %v5925_v43 = vrot.slane %v5917_v39, %v11536_v0  ;;  %v5932_v35 = vrot.slane %v5918_v15, %v11536_v0  ;;  %v5934_v40 = vcombine.low %v5611_v4, %v5612_v5  ;;  %v6527_v22 = vld [vmem:[%s6681_s18 + $0x78] sm:$0xff] }
 0x359   : > { %v5973_v44 = vpack.c.bf16 %v5916_v9, %v5899_v52  ;;  %v6127_v25 = vrot.slane %v6514_v17, 1  ;;  %v6058_v13 = vadd.f32 %v10184_v20, %v11591_v46  ;;  %v6121_v37 = vrot.slane %v6515_v16, 1 }
 0x35a   : > { %v5933_v57 = vcombine.low %v5925_v43, %v5932_v35  ;;  %v5942_v42 = vrot.slane %v5934_v40, %v11536_v0  ;;  %v6122_v31 = vrot.slane %v6516_v60, 1  ;;  %v6069_v8 = vadd.f32 %v11592_v58, %v10184_v20  ;;  %v6526_v35 = vld [vmem:[%s6681_s18 + $0x98] sm:$0xff] }
 0x35b   : > { %6434 = vmatprep.mubr.msk.bf16.mxu1 %vm5994_vm7, %v5973_v44  ;;  %v6128_v1 = vsel %vm6120_vm8, %v6126_v19, %v6127_v25  ;;  %v6129_v29 = vrot.slane %v6517_v45, 1  ;;  %v6061_v0 = vadd.f32 %v10184_v20, %v11593_v47  ;;  %v6124_v50 = vrot.slane %v6518_v49, 1  ;;  %v6528_v44 = vld [vmem:[%s6681_s18 + $0x80] sm:$0xff] }
 0x35c   : > { %v5950_v3 = vcombine.low %v5942_v42, %v5949_v38  ;;  %v6179_v10 = vadd.f32 %v6128_v1, %v6066_v27  ;;  %v6123_v55 = vsel %vm6120_vm8, %v6121_v37, %v6122_v31  ;;  %v6136_v48 = vrot.slane %v6519_v51, 1  ;;  %v6525_v27 = vld [vmem:[%s6681_s18 + $0x90] sm:$0xff] }
 0x35d   : > { %v6177_v30 = vadd.f32 %v6123_v55, %v6058_v13  ;;  %v6130_v12 = vsel %vm6120_vm8, %v6127_v25, %v6129_v29  ;;  %v6125_v62 = vsel %vm6120_vm8, %v6122_v31, %v6124_v50  ;;  %v6137_v63 = vrot.slane %v6520_v24, 1  ;;  %v6529_v25 = vld [vmem:[%s6681_s18 + $0xa0] sm:$0x3]  ;;  %v6530_v13 = vld [vmem:[%s6681_s18 + $0x88] sm:$0x3] }
 0x35e   : > { %v5974_v18 = vpack.c.bf16 %v5950_v3, %v5933_v57  ;;  %6195 = vst.msk [vmem:[%s10210_s23 + $0x10] sm:$0xff] %vm1203_vm1, %v6179_v10  ;;  %v6180_v32 = vadd.f32 %v6130_v12, %v6069_v8  ;;  %v6178_v59 = vadd.f32 %v6125_v62, %v6061_v0  ;;  %v6131_v56 = vrot.slane %v6521_v7, 1  ;;  %v6531_v55 = vld [vmem:[%s6681_s18 + $0xc0] sm:$0xff]  ;;  %v6532_v12 = vld [vmem:[%s6681_s18 + $0xc8] sm:$0xff] }
 0x35f   : > { %6193 = vst.msk [vmem:[%s10210_s23] sm:$0xff] %vm1203_vm1, %v6177_v30  ;;  %v6132_v53 = vrot.slane %v6522_v34, 1  ;;  %v6139_v14 = vrot.slane %v6523_v21, 1  ;;  %v6134_v6 = vrot.slane %v6524_v2, 1  ;;  %v6138_v61 = vsel %vm6120_vm8, %v6136_v48, %v6137_v63  ;;  %v6535_v48 = vld [vmem:[%s6681_s18 + $0xd0] sm:$0x3] }
 0x360   : > { %6435 = vmatmul.mubr.msk.bf16.gmra.mrb[16].mxu1 %vm5994_vm7, %v5974_v18  ;;  %6196 = vst.msk [vmem:[%s10210_s23 + $0x18] sm:$0xff] %vm1203_vm1, %v6180_v32  ;;  %6194 = vst.msk [vmem:[%s10210_s23 + $0x8] sm:$0xff] %vm1203_vm1, %v6178_v59  ;;  %v6146_v43 = vrot.slane %v6525_v27, 1  ;;  %v6147_v40 = vrot.slane %v6526_v35, 1  ;;  %v6141_v19 = vrot.slane %v6527_v22, 1  ;;  %v6142_v17 = vrot.slane %v6528_v44, 1 }
 0x361   : > { %v6133_v23 = vsel %vm6120_vm8, %v6131_v56, %v6132_v53  ;;  %v6140_v39 = vsel %vm6120_vm8, %v6137_v63, %v6139_v14  ;;  %v6135_v33 = vsel %vm6120_vm8, %v6132_v53, %v6134_v6  ;;  %v6149_v46 = vrot.slane %v6529_v25, 1  ;;  %v6533_v18 = vld [vmem:[%s6681_s18 + $0xa8] sm:$0xff]  ;;  %v6534_v59 = vld [vmem:[%s6681_s18 + $0xb0] sm:$0xff]  ;;  %v6536_v63 = vld [vmem:[%s6681_s18 + $0xb8] sm:$0x3] }
 0x362   : > { %v6144_v16 = vrot.slane %v6530_v13, 1  ;;  %v6148_v57 = vsel %vm6120_vm8, %v6146_v43, %v6147_v40  ;;  %v6143_v31 = vsel %vm6120_vm8, %v6141_v19, %v6142_v17  ;;  %v6156_v30 = vrot.slane %v6531_v55, 1 }
 0x363   : > { %v6150_v1 = vsel %vm6120_vm8, %v6147_v40, %v6149_v46  ;;  %v6157_v62 = vrot.slane %v6532_v12, 1  ;;  %v6151_v32 = vrot.slane %v6533_v18, 1  ;;  %v6152_v51 = vrot.slane %v6534_v59, 1 }
 0x364   : > { %v6145_v0 = vsel %vm6120_vm8, %v6142_v17, %v6144_v16  ;;  %v6159_v24 = vrot.slane %v6535_v48, 1  ;;  %v6154_v7 = vrot.slane %v6536_v63, 1 }
 0x365   : > { %v6158_v34 = vsel %vm6120_vm8, %v6156_v30, %v6157_v62  ;;  %v6153_v14 = vsel %vm6120_vm8, %v6151_v32, %v6152_v51 }
 0x396   : > { %v6428_v54 = vpop.f32.mrb[8].mxu1 }
 0x397   : > { %v6082_v26 = vadd.f32 %v6428_v54, %v10184_v20  ;;  %v6073_v11 = vpop.f32.mrb[9].mxu1  ;;  %v6160_v54 = vsel %vm6120_vm8, %v6157_v62, %v6159_v24 }
 0x398   : > { %v6074_v4 = vadd.f32 %v10184_v20, %v6073_v11  ;;  %v6429_v5 = vpop.f32.mrb[10].mxu1 }
 0x399   : > { %v6183_v15 = vadd.f32 %v6138_v61, %v6082_v26  ;;  %v6085_v36 = vadd.f32 %v6429_v5, %v10184_v20  ;;  %v6076_v41 = vpop.f32.mrb[11].mxu1 }
 0x39a   : > { %v6181_v38 = vadd.f32 %v6133_v23, %v6074_v4  ;;  %v6077_v52 = vadd.f32 %v10184_v20, %v6076_v41  ;;  %v6155_v23 = vsel %vm6120_vm8, %v6152_v51, %v6154_v7 }
 0x39b   : > { %6199 = vst.msk [vmem:[%s10210_s23 + $0x30] sm:$0xff] %vm1203_vm1, %v6183_v15  ;;  %v6184_v9 = vadd.f32 %v6140_v39, %v6085_v36 }
 0x39c   : > { %6197 = vst.msk [vmem:[%s10210_s23 + $0x20] sm:$0xff] %vm1203_vm1, %v6181_v38  ;;  %v6182_v28 = vadd.f32 %v6135_v33, %v6077_v52 }
 0x39d   : > { %6200 = vst.msk [vmem:[%s10210_s23 + $0x38] sm:$0xff] %vm1203_vm1, %v6184_v9 }
 0x39e   : > { %6198 = vst.msk [vmem:[%s10210_s23 + $0x28] sm:$0xff] %vm1203_vm1, %v6182_v28 }
 0x408   : > { %v6432_v37 = vpop.f32.mrb[12].mxu1 }
 0x409   : > { %v6098_v42 = vadd.f32 %v6432_v37, %v10184_v20  ;;  %v6089_v60 = vpop.f32.mrb[13].mxu1 }
 0x40a   : > { %v6090_v58 = vadd.f32 %v10184_v20, %v6089_v60  ;;  %v6433_v8 = vpop.f32.mrb[14].mxu1 }
 0x40b   : > { %v6187_v45 = vadd.f32 %v6148_v57, %v6098_v42  ;;  %v6101_v29 = vadd.f32 %v6433_v8, %v10184_v20  ;;  %v6092_v47 = vpop.f32.mrb[15].mxu1 }
 0x40c   : > { %v6185_v49 = vadd.f32 %v6143_v31, %v6090_v58  ;;  %v6093_v50 = vadd.f32 %v10184_v20, %v6092_v47 }
 0x40d   : > { %6203 = vst.msk [vmem:[%s10210_s23 + $0x50] sm:$0xff] %vm1203_vm1, %v6187_v45  ;;  %v6188_v3 = vadd.f32 %v6150_v1, %v6101_v29 }
 0x40e   : > { %6201 = vst.msk [vmem:[%s10210_s23 + $0x40] sm:$0xff] %vm1203_vm1, %v6185_v49  ;;  %v6186_v10 = vadd.f32 %v6145_v0, %v6093_v50 }
 0x40f   : > { %6204 = vst.msk [vmem:[%s10210_s23 + $0x58] sm:$0xff] %vm1203_vm1, %v6188_v3 }
 0x410   : > { %6202 = vst.msk [vmem:[%s10210_s23 + $0x48] sm:$0xff] %vm1203_vm1, %v6186_v10 }
 0x433   : > { %v6436_v56 = vpop.f32.mrb[16].mxu1 }
 0x434   : > { %v6114_v53 = vadd.f32 %v6436_v56, %v10184_v20  ;;  %v6105_v21 = vpop.f32.mrb[17].mxu1 }
 0x435   : > { %v6106_v2 = vadd.f32 %v10184_v20, %v6105_v21  ;;  %v6437_v6 = vpop.f32.mrb[18].mxu1 }
 0x436   : > { %v6191_v61 = vadd.f32 %v6158_v34, %v6114_v53  ;;  %v6117_v26 = vadd.f32 %v6437_v6, %v10184_v20  ;;  %v6108_v11 = vpop.f32.mrb[19].mxu1 }
 0x437   : > { %v6189_v4 = vadd.f32 %v6153_v14, %v6106_v2  ;;  %v6109_v5 = vadd.f32 %v10184_v20, %v6108_v11 }
 0x438   : > { %6207 = vst.msk [vmem:[%s10210_s23 + $0x70] sm:$0xff] %vm1203_vm1, %v6191_v61  ;;  %v6192_v39 = vadd.f32 %v6160_v54, %v6117_v26 }
 0x439   : > { %6205 = vst.msk [vmem:[%s10210_s23 + $0x60] sm:$0xff] %vm1203_vm1, %v6189_v4  ;;  %v6190_v15 = vadd.f32 %v6155_v23, %v6109_v5 }
 0x43a   : > { %6208 = vst.msk [vmem:[%s10210_s23 + $0x78] sm:$0xff] %vm1203_vm1, %v6192_v39 }
 0x43b   : > { %6206 = vst.msk [vmem:[%s10210_s23 + $0x68] sm:$0xff] %vm1203_vm1, %v6190_v15 }
 0x43c PF: > { %s17_s28 = sadd.s32 1, %s6583_s28   ;;  %s11594_s24 = smov %s6575_s26 }
 0x43d   : > { %p14_p7 = scmp.ge.s32.totalorder %s17_s28, 6   ;;  %s11595_s25 = smov %s6579_s27 }
 0x43e   : > { %s11596_s26 = smov %s11599_s29  ;;  %s11597_s27 = smov %s11603_s30 }
 0x43f   :  { %16 = sbr.rel (!%p14_p7) target bundleno = 3 (0x3), region = 79 }

</bundles_post_ra>
